<compile_context>
chip_gen: v7x
topology: tpu7x:2x2x1
jax: 0.10.0
libtpu: 0.0.40
codegen_flags: <defaults>
</compile_context>

<pallas_src>
import functools
import math

import jax
import jax.numpy as jnp
from jax import lax
from jax.experimental import pallas as pl
from jax.experimental.pallas import tpu as pltpu


def _round_up(x, m):
    return (x + m - 1) // m * m


# --------------------------------------------------------------------------- kernel
def convnet_kernel(p_ref, w1_ref, w2_ref, wfc_ref, bfc_ref, o_ref, h1pad_ref):
    """Fused conv1 -> ReLU -> conv2 -> ReLU -> GAP -> FC for one batch tile.

    p_ref    : [TB, Ho*Wo, KP] bf16  im2col patches of the input (conv1, stride 2)
    w1_ref   : [KP, C1]        bf16  conv1 weight in im2col layout
    w2_ref   : [9, C1, C2]     bf16  conv2 weight, one [C1, C2] matrix per 3x3 tap
    wfc_ref  : [C2, NP]        bf16  fc weight (transposed, classes padded to 128)
    bfc_ref  : [1, NP]         f32   fc bias (padded)
    o_ref    : [TB, NP]        f32   logits
    h1pad_ref: VMEM scratch [TB, Ho+2, Wo+2, C1] f32 (zero-padded conv1 activation)
    """
    tb, hp, wp, c1 = h1pad_ref.shape
    ho, wo = hp - 2, wp - 2
    kp = p_ref.shape[-1]
    c2 = w2_ref.shape[-1]
    r = tb * ho * wo

    # ---- conv1 (3x3, stride 2, pad 1, no bias) as one im2col matmul + ReLU ----
    patches = p_ref[...].reshape(r, kp)                                  # bf16
    h1 = jnp.dot(patches, w1_ref[...], preferred_element_type=jnp.float32)
    h1 = jnp.maximum(h1, 0.0)                                            # [r, c1] f32

    # ---- zero-padded (spatial pad=1) activation buffer for conv2 ----
    h1pad_ref[...] = jnp.zeros_like(h1pad_ref)
    h1pad_ref[:, 1:ho + 1, 1:wo + 1, :] = h1.reshape(tb, ho, wo, c1)

    # ---- conv2 (3x3, stride 1, pad 1, no bias): 9 accumulated MXU matmuls + ReLU ----
    acc = jnp.zeros((r, c2), jnp.float32)
    for kh in range(3):
        for kw in range(3):
            tap = h1pad_ref[:, kh:kh + ho, kw:kw + wo, :].reshape(r, c1)
            acc = acc + jnp.dot(tap.astype(jnp.bfloat16), w2_ref[kh * 3 + kw],
                                preferred_element_type=jnp.float32)
    h2 = jnp.maximum(acc, 0.0)                                           # [r, c2] f32

    # ---- global average pool over the Ho*Wo spatial positions ----
    pooled = jnp.mean(h2.reshape(tb, ho * wo, c2), axis=1)               # [tb, c2] f32

    # ---- fc: Linear(c2 -> num_classes), lane-dense (padded-to-128) store ----
    logits = jnp.dot(pooled.astype(jnp.bfloat16), wfc_ref[...],
                     preferred_element_type=jnp.float32)
    o_ref[...] = (logits + bfc_ref[...]).astype(o_ref.dtype)


# --------------------------------------------------------------------------- wrapper
def _im2col_stride2(x_nhwc):
    """3x3 / stride 2 / pad 1 patch extraction (layout plumbing only, no MACs)."""
    b, h, w, c = x_nhwc.shape
    ho = (h + 2 - 3) // 2 + 1
    wo = (w + 2 - 3) // 2 + 1
    xp = jnp.pad(x_nhwc, ((0, 0), (1, 1), (1, 1), (0, 0)))
    cols = []
    for kh in range(3):
        for kw in range(3):
            cols.append(xp[:, kh:kh + 2 * ho:2, kw:kw + 2 * wo:2, :])
    patches = jnp.concatenate(cols, axis=-1)            # [b, ho, wo, 9*c], (kh,kw,cin) order
    return patches.reshape(b, ho * wo, 9 * c), ho, wo


def pack_params(params, kp, np_cls):
    """Repack PyTorch-layout params into kernel-friendly bf16 matrices."""
    w1, w2, wfc, bfc = params                            # [C1,Cin,3,3],[C2,C1,3,3],[N,C2],[N]
    c1, cin = w1.shape[0], w1.shape[1]
    c2 = w2.shape[0]
    ncls = wfc.shape[0]

    w1col = jnp.transpose(w1, (2, 3, 1, 0)).reshape(9 * cin, c1)         # (kh,kw,cin) x c1
    w1col = jnp.pad(w1col, ((0, kp - 9 * cin), (0, 0))).astype(jnp.bfloat16)

    w2taps = jnp.transpose(w2, (2, 3, 1, 0)).reshape(9, c1, c2).astype(jnp.bfloat16)

    wfc_p = jnp.pad(wfc.T, ((0, 0), (0, np_cls - ncls))).astype(jnp.bfloat16)   # [c2, NP]
    bfc_p = jnp.pad(bfc, (0, np_cls - ncls)).reshape(1, np_cls).astype(jnp.float32)
    return w1col, w2taps, wfc_p, bfc_p


@functools.partial(jax.jit, static_argnames=("tb",))
def convnet_forward(x_nchw, params, *, tb=8):
    w1, w2, wfc, _ = params
    cin, c1, c2 = w1.shape[1], w1.shape[0], w2.shape[0]
    ncls = wfc.shape[0]

    b = x_nchw.shape[0]
    kp = _round_up(9 * cin, 8)          # 27 -> 32 (sublane-aligned contraction dim)
    np_cls = _round_up(ncls, 128)       # 100 -> 128 (lane-dense output store)
    bp = _round_up(b, tb)               # batch padded to tile multiple of 8

    # NCHW -> NHWC + im2col for the stride-2 stem conv (pure data movement).
    x = jnp.transpose(x_nchw, (0, 2, 3, 1)).astype(jnp.float32)
    patches, ho, wo = _im2col_stride2(x)                                  # [b, ho*wo, 27]
    patches = jnp.pad(patches, ((0, bp - b), (0, 0), (0, kp - patches.shape[-1])))
    patches = patches.astype(jnp.bfloat16)

    w1col, w2taps, wfc_p, bfc_p = pack_params(params, kp, np_cls)

    hw = ho * wo
    grid = (bp // tb,)

    flops = 2 * bp * hw * (kp * c1 + 9 * c1 * c2) + 2 * bp * c2 * np_cls
    bytes_accessed = (patches.size * 2 + w1col.size * 2 + w2taps.size * 2
                      + wfc_p.size * 2 + bfc_p.size * 4 + bp * np_cls * 4)

    out = pl.pallas_call(
        convnet_kernel,
        out_shape=jax.ShapeDtypeStruct((bp, np_cls), jnp.float32),
        grid_spec=pltpu.PrefetchScalarGridSpec(
            num_scalar_prefetch=0,
            grid=grid,
            in_specs=[
                pl.BlockSpec((tb, hw, kp), lambda i: (i, 0, 0)),      # batch-tiled
                pl.BlockSpec((kp, c1), lambda i: (0, 0)),             # resident weight
                pl.BlockSpec((9, c1, c2), lambda i: (0, 0, 0)),       # resident weight
                pl.BlockSpec((c2, np_cls), lambda i: (0, 0)),         # resident weight
                pl.BlockSpec((1, np_cls), lambda i: (0, 0)),          # resident bias
            ],
            out_specs=pl.BlockSpec((tb, np_cls), lambda i: (i, 0)),
            scratch_shapes=[pltpu.VMEM((tb, ho + 2, wo + 2, c1), jnp.float32)],
        ),
        compiler_params=pltpu.CompilerParams(
            dimension_semantics=("parallel",),
            vmem_limit_bytes=32 * 1024 * 1024,
        ),
        cost_estimate=pl.CostEstimate(flops=flops, transcendentals=0,
                                      bytes_accessed=bytes_accessed),
    )(patches, w1col, w2taps, wfc_p, bfc_p)

    return out[:b, :ncls]


# --------------------------------------------------------------------------- reference
def init_params(key, ws=(16, 32), num_classes=100, cin=3):
    """PyTorch default inits (kaiming_uniform(a=sqrt(5)) == U(+-1/sqrt(fan_in)))."""
    k1, k2, k3, k4 = jax.random.split(key, 4)
    b1 = 1.0 / math.sqrt(cin * 9)
    w1 = jax.random.uniform(k1, (ws[0], cin, 3, 3), jnp.float32, -b1, b1)
    b2 = 1.0 / math.sqrt(ws[0] * 9)
    w2 = jax.random.uniform(k2, (ws[1], ws[0], 3, 3), jnp.float32, -b2, b2)
    b3 = 1.0 / math.sqrt(ws[1])
    wfc = jax.random.uniform(k3, (num_classes, ws[1]), jnp.float32, -b3, b3)
    bfc = jax.random.uniform(k4, (num_classes,), jnp.float32, -b3, b3)
    return w1, w2, wfc, bfc


def reference_forward(x_nchw, params):
    """Pure-JAX reference with the same bf16/f32 quantization points as the kernel."""
    w1, w2, wfc, bfc = params
    dn = ("NCHW", "OIHW", "NCHW")
    h = lax.conv_general_dilated(
        x_nchw.astype(jnp.bfloat16), w1.astype(jnp.bfloat16),
        window_strides=(2, 2), padding=((1, 1), (1, 1)),
        dimension_numbers=dn, preferred_element_type=jnp.float32)
    h = jnp.maximum(h, 0.0).astype(jnp.bfloat16)
    h = lax.conv_general_dilated(
        h, w2.astype(jnp.bfloat16),
        window_strides=(1, 1), padding=((1, 1), (1, 1)),
        dimension_numbers=dn, preferred_element_type=jnp.float32)
    h = jnp.maximum(h, 0.0)                               # f32 [B, C2, Ho, Wo]
    pooled = jnp.mean(h, axis=(2, 3))                     # f32 [B, C2]
    logits = jnp.dot(pooled.astype(jnp.bfloat16), wfc.T.astype(jnp.bfloat16),
                     preferred_element_type=jnp.float32) + bfc
    return logits


if __name__ == "__main__":
    B, CIN, H, W = 2, 3, 16, 16
    WS = (16, 32)
    NUM_CLASSES = 100

    key = jax.random.PRNGKey(0)
    kx, kparams = jax.random.split(key)
    x = jax.random.normal(kx, (B, CIN, H, W), jnp.float32)
    params = init_params(kparams, ws=WS, num_classes=NUM_CLASSES, cin=CIN)

    out = convnet_forward(x, params)
    out = jax.block_until_ready(out)
    assert out.shape == (B, NUM_CLASSES)

    ref = reference_forward(x, params)
    max_err = float(jnp.max(jnp.abs(out - ref)))
    assert jnp.allclose(out, ref, atol=5e-3, rtol=5e-3), max_err

    print("KERNEL_OK")
</pallas_src>

<mosaic_0001>
module attributes {stable_mosaic.version = 11 : i64} {
  func.func @convnet_kernel(%arg0: i32, %arg1: memref<8x64x32xbf16, #tpu.memory_space<vmem>>, %arg2: memref<32x16xbf16, #tpu.memory_space<vmem>>, %arg3: memref<9x16x32xbf16, #tpu.memory_space<vmem>>, %arg4: memref<32x128xbf16, #tpu.memory_space<vmem>>, %arg5: memref<1x128xf32, #tpu.memory_space<vmem>>, %arg6: memref<8x128xf32, #tpu.memory_space<vmem>>, %arg7: memref<8x10x10x16xf32, #tpu.memory_space<vmem>>) attributes {dimension_semantics = [#tpu.dimension_semantics<parallel>], iteration_bounds = array<i64: 1>, scalar_prefetch = 0 : i64, scratch_operands = 1 : i64, tpu.core_type = #tpu.core_type<tc>, window_params = [{transform_indices = @transform_0, window_bounds = array<i64: 8, 64, 32>}, {pipeline_mode = #tpu.pipeline_mode<synchronous>, transform_indices = @transform_1, window_bounds = array<i64: 32, 16>}, {pipeline_mode = #tpu.pipeline_mode<synchronous>, transform_indices = @transform_2, window_bounds = array<i64: 9, 16, 32>}, {pipeline_mode = #tpu.pipeline_mode<synchronous>, transform_indices = @transform_3, window_bounds = array<i64: 32, 128>}, {pipeline_mode = #tpu.pipeline_mode<synchronous>, transform_indices = @transform_4, window_bounds = array<i64: 1, 128>}, {transform_indices = @transform_5, window_bounds = array<i64: 8, 128>}]} {
    %c0 = arith.constant 0 : index
    %c0_0 = arith.constant 0 : index
    %c0_1 = arith.constant 0 : index
    %0 = vector.load %arg1[%c0, %c0_0, %c0_1] : memref<8x64x32xbf16, #tpu.memory_space<vmem>>, vector<8x64x32xbf16>
    %1 = vector.shape_cast %0 : vector<8x64x32xbf16> to vector<512x32xbf16>
    %c0_2 = arith.constant 0 : index
    %c0_3 = arith.constant 0 : index
    %2 = vector.load %arg2[%c0_2, %c0_3] : memref<32x16xbf16, #tpu.memory_space<vmem>>, vector<32x16xbf16>
    %cst = arith.constant dense<0.000000e+00> : vector<512x16xf32>
    %3 = tpu.matmul %1, %2, %cst {dimension_numbers = #tpu.dot_dimension_numbers<[1], [0], [0], [1], [0, 0, 1, 1], [], []>} : vector<512x32xbf16>, vector<32x16xbf16>, vector<512x16xf32> -> vector<512x16xf32>
    %cst_4 = arith.constant 0.000000e+00 : f32
    %4 = vector.broadcast %cst_4 : f32 to vector<512x16xf32>
    %5 = arith.maximumf %3, %4 : vector<512x16xf32>
    %cst_5 = arith.constant 0.000000e+00 : f32
    %6 = vector.broadcast %cst_5 : f32 to vector<8x10x10x16xf32>
    %c0_6 = arith.constant 0 : index
    %c0_7 = arith.constant 0 : index
    %c0_8 = arith.constant 0 : index
    %c0_9 = arith.constant 0 : index
    %7 = vector.load %arg7[%c0_6, %c0_7, %c0_8, %c0_9] : memref<8x10x10x16xf32, #tpu.memory_space<vmem>>, vector<8x10x10x16xf32>
    tpu.vector_store %arg7[%c0_6, %c0_7, %c0_8, %c0_9], %6 {strides = array<i32>} : memref<8x10x10x16xf32, #tpu.memory_space<vmem>>, vector<8x10x10x16xf32>,
    %8 = vector.shape_cast %5 : vector<512x16xf32> to vector<8x8x8x16xf32>
    %c0_10 = arith.constant 0 : index
    %c1 = arith.constant 1 : index
    %c1_11 = arith.constant 1 : index
    %c0_12 = arith.constant 0 : index
    %9 = vector.load %arg7[%c0_10, %c1, %c1_11, %c0_12] : memref<8x10x10x16xf32, #tpu.memory_space<vmem>>, vector<8x8x8x16xf32>
    tpu.vector_store %arg7[%c0_10, %c1, %c1_11, %c0_12], %8 {strides = array<i32>} : memref<8x10x10x16xf32, #tpu.memory_space<vmem>>, vector<8x8x8x16xf32>,
    %cst_13 = arith.constant 0.000000e+00 : f32
    %10 = vector.broadcast %cst_13 : f32 to vector<512x32xf32>
    %c0_14 = arith.constant 0 : index
    %c0_15 = arith.constant 0 : index
    %c0_16 = arith.constant 0 : index
    %c0_17 = arith.constant 0 : index
    %11 = vector.load %arg7[%c0_14, %c0_15, %c0_16, %c0_17] : memref<8x10x10x16xf32, #tpu.memory_space<vmem>>, vector<8x8x8x16xf32>
    %12 = vector.shape_cast %11 : vector<8x8x8x16xf32> to vector<512x16xf32>
    %13 = arith.truncf %12 : vector<512x16xf32> to vector<512x16xbf16>
    %c0_18 = arith.constant 0 : index
    %c0_19 = arith.constant 0 : index
    %c0_20 = arith.constant 0 : index
    %14 = vector.load %arg3[%c0_18, %c0_19, %c0_20] : memref<9x16x32xbf16, #tpu.memory_space<vmem>>, vector<1x16x32xbf16>
    %15 = vector.shape_cast %14 : vector<1x16x32xbf16> to vector<16x32xbf16>
    %cst_21 = arith.constant dense<0.000000e+00> : vector<512x32xf32>
    %16 = tpu.matmul %13, %15, %cst_21 {dimension_numbers = #tpu.dot_dimension_numbers<[1], [0], [0], [1], [0, 0, 1, 1], [], []>} : vector<512x16xbf16>, vector<16x32xbf16>, vector<512x32xf32> -> vector<512x32xf32>
    %17 = arith.addf %10, %16 : vector<512x32xf32>
    %c0_22 = arith.constant 0 : index
    %c0_23 = arith.constant 0 : index
    %c1_24 = arith.constant 1 : index
    %c0_25 = arith.constant 0 : index
    %18 = vector.load %arg7[%c0_22, %c0_23, %c1_24, %c0_25] : memref<8x10x10x16xf32, #tpu.memory_space<vmem>>, vector<8x8x8x16xf32>
    %19 = vector.shape_cast %18 : vector<8x8x8x16xf32> to vector<512x16xf32>
    %20 = arith.truncf %19 : vector<512x16xf32> to vector<512x16xbf16>
    %c1_26 = arith.constant 1 : index
    %c0_27 = arith.constant 0 : index
    %c0_28 = arith.constant 0 : index
    %21 = vector.load %arg3[%c1_26, %c0_27, %c0_28] : memref<9x16x32xbf16, #tpu.memory_space<vmem>>, vector<1x16x32xbf16>
    %22 = vector.shape_cast %21 : vector<1x16x32xbf16> to vector<16x32xbf16>
    %cst_29 = arith.constant dense<0.000000e+00> : vector<512x32xf32>
    %23 = tpu.matmul %20, %22, %cst_29 {dimension_numbers = #tpu.dot_dimension_numbers<[1], [0], [0], [1], [0, 0, 1, 1], [], []>} : vector<512x16xbf16>, vector<16x32xbf16>, vector<512x32xf32> -> vector<512x32xf32>
    %24 = arith.addf %17, %23 : vector<512x32xf32>
    %c0_30 = arith.constant 0 : index
    %c0_31 = arith.constant 0 : index
    %c2 = arith.constant 2 : index
    %c0_32 = arith.constant 0 : index
    %25 = vector.load %arg7[%c0_30, %c0_31, %c2, %c0_32] : memref<8x10x10x16xf32, #tpu.memory_space<vmem>>, vector<8x8x8x16xf32>
    %26 = vector.shape_cast %25 : vector<8x8x8x16xf32> to vector<512x16xf32>
    %27 = arith.truncf %26 : vector<512x16xf32> to vector<512x16xbf16>
    %c2_33 = arith.constant 2 : index
    %c0_34 = arith.constant 0 : index
    %c0_35 = arith.constant 0 : index
    %28 = vector.load %arg3[%c2_33, %c0_34, %c0_35] : memref<9x16x32xbf16, #tpu.memory_space<vmem>>, vector<1x16x32xbf16>
    %29 = vector.shape_cast %28 : vector<1x16x32xbf16> to vector<16x32xbf16>
    %cst_36 = arith.constant dense<0.000000e+00> : vector<512x32xf32>
    %30 = tpu.matmul %27, %29, %cst_36 {dimension_numbers = #tpu.dot_dimension_numbers<[1], [0], [0], [1], [0, 0, 1, 1], [], []>} : vector<512x16xbf16>, vector<16x32xbf16>, vector<512x32xf32> -> vector<512x32xf32>
    %31 = arith.addf %24, %30 : vector<512x32xf32>
    %c0_37 = arith.constant 0 : index
    %c1_38 = arith.constant 1 : index
    %c0_39 = arith.constant 0 : index
    %c0_40 = arith.constant 0 : index
    %32 = vector.load %arg7[%c0_37, %c1_38, %c0_39, %c0_40] : memref<8x10x10x16xf32, #tpu.memory_space<vmem>>, vector<8x8x8x16xf32>
    %33 = vector.shape_cast %32 : vector<8x8x8x16xf32> to vector<512x16xf32>
    %34 = arith.truncf %33 : vector<512x16xf32> to vector<512x16xbf16>
    %c3 = arith.constant 3 : index
    %c0_41 = arith.constant 0 : index
    %c0_42 = arith.constant 0 : index
    %35 = vector.load %arg3[%c3, %c0_41, %c0_42] : memref<9x16x32xbf16, #tpu.memory_space<vmem>>, vector<1x16x32xbf16>
    %36 = vector.shape_cast %35 : vector<1x16x32xbf16> to vector<16x32xbf16>
    %cst_43 = arith.constant dense<0.000000e+00> : vector<512x32xf32>
    %37 = tpu.matmul %34, %36, %cst_43 {dimension_numbers = #tpu.dot_dimension_numbers<[1], [0], [0], [1], [0, 0, 1, 1], [], []>} : vector<512x16xbf16>, vector<16x32xbf16>, vector<512x32xf32> -> vector<512x32xf32>
    %38 = arith.addf %31, %37 : vector<512x32xf32>
    %c0_44 = arith.constant 0 : index
    %c1_45 = arith.constant 1 : index
    %c1_46 = arith.constant 1 : index
    %c0_47 = arith.constant 0 : index
    %39 = vector.load %arg7[%c0_44, %c1_45, %c1_46, %c0_47] : memref<8x10x10x16xf32, #tpu.memory_space<vmem>>, vector<8x8x8x16xf32>
    %40 = vector.shape_cast %39 : vector<8x8x8x16xf32> to vector<512x16xf32>
    %41 = arith.truncf %40 : vector<512x16xf32> to vector<512x16xbf16>
    %c4 = arith.constant 4 : index
    %c0_48 = arith.constant 0 : index
    %c0_49 = arith.constant 0 : index
    %42 = vector.load %arg3[%c4, %c0_48, %c0_49] : memref<9x16x32xbf16, #tpu.memory_space<vmem>>, vector<1x16x32xbf16>
    %43 = vector.shape_cast %42 : vector<1x16x32xbf16> to vector<16x32xbf16>
    %cst_50 = arith.constant dense<0.000000e+00> : vector<512x32xf32>
    %44 = tpu.matmul %41, %43, %cst_50 {dimension_numbers = #tpu.dot_dimension_numbers<[1], [0], [0], [1], [0, 0, 1, 1], [], []>} : vector<512x16xbf16>, vector<16x32xbf16>, vector<512x32xf32> -> vector<512x32xf32>
    %45 = arith.addf %38, %44 : vector<512x32xf32>
    %c0_51 = arith.constant 0 : index
    %c1_52 = arith.constant 1 : index
    %c2_53 = arith.constant 2 : index
    %c0_54 = arith.constant 0 : index
    %46 = vector.load %arg7[%c0_51, %c1_52, %c2_53, %c0_54] : memref<8x10x10x16xf32, #tpu.memory_space<vmem>>, vector<8x8x8x16xf32>
    %47 = vector.shape_cast %46 : vector<8x8x8x16xf32> to vector<512x16xf32>
    %48 = arith.truncf %47 : vector<512x16xf32> to vector<512x16xbf16>
    %c5 = arith.constant 5 : index
    %c0_55 = arith.constant 0 : index
    %c0_56 = arith.constant 0 : index
    %49 = vector.load %arg3[%c5, %c0_55, %c0_56] : memref<9x16x32xbf16, #tpu.memory_space<vmem>>, vector<1x16x32xbf16>
    %50 = vector.shape_cast %49 : vector<1x16x32xbf16> to vector<16x32xbf16>
    %cst_57 = arith.constant dense<0.000000e+00> : vector<512x32xf32>
    %51 = tpu.matmul %48, %50, %cst_57 {dimension_numbers = #tpu.dot_dimension_numbers<[1], [0], [0], [1], [0, 0, 1, 1], [], []>} : vector<512x16xbf16>, vector<16x32xbf16>, vector<512x32xf32> -> vector<512x32xf32>
    %52 = arith.addf %45, %51 : vector<512x32xf32>
    %c0_58 = arith.constant 0 : index
    %c2_59 = arith.constant 2 : index
    %c0_60 = arith.constant 0 : index
    %c0_61 = arith.constant 0 : index
    %53 = vector.load %arg7[%c0_58, %c2_59, %c0_60, %c0_61] : memref<8x10x10x16xf32, #tpu.memory_space<vmem>>, vector<8x8x8x16xf32>
    %54 = vector.shape_cast %53 : vector<8x8x8x16xf32> to vector<512x16xf32>
    %55 = arith.truncf %54 : vector<512x16xf32> to vector<512x16xbf16>
    %c6 = arith.constant 6 : index
    %c0_62 = arith.constant 0 : index
    %c0_63 = arith.constant 0 : index
    %56 = vector.load %arg3[%c6, %c0_62, %c0_63] : memref<9x16x32xbf16, #tpu.memory_space<vmem>>, vector<1x16x32xbf16>
    %57 = vector.shape_cast %56 : vector<1x16x32xbf16> to vector<16x32xbf16>
    %cst_64 = arith.constant dense<0.000000e+00> : vector<512x32xf32>
    %58 = tpu.matmul %55, %57, %cst_64 {dimension_numbers = #tpu.dot_dimension_numbers<[1], [0], [0], [1], [0, 0, 1, 1], [], []>} : vector<512x16xbf16>, vector<16x32xbf16>, vector<512x32xf32> -> vector<512x32xf32>
    %59 = arith.addf %52, %58 : vector<512x32xf32>
    %c0_65 = arith.constant 0 : index
    %c2_66 = arith.constant 2 : index
    %c1_67 = arith.constant 1 : index
    %c0_68 = arith.constant 0 : index
    %60 = vector.load %arg7[%c0_65, %c2_66, %c1_67, %c0_68] : memref<8x10x10x16xf32, #tpu.memory_space<vmem>>, vector<8x8x8x16xf32>
    %61 = vector.shape_cast %60 : vector<8x8x8x16xf32> to vector<512x16xf32>
    %62 = arith.truncf %61 : vector<512x16xf32> to vector<512x16xbf16>
    %c7 = arith.constant 7 : index
    %c0_69 = arith.constant 0 : index
    %c0_70 = arith.constant 0 : index
    %63 = vector.load %arg3[%c7, %c0_69, %c0_70] : memref<9x16x32xbf16, #tpu.memory_space<vmem>>, vector<1x16x32xbf16>
    %64 = vector.shape_cast %63 : vector<1x16x32xbf16> to vector<16x32xbf16>
    %cst_71 = arith.constant dense<0.000000e+00> : vector<512x32xf32>
    %65 = tpu.matmul %62, %64, %cst_71 {dimension_numbers = #tpu.dot_dimension_numbers<[1], [0], [0], [1], [0, 0, 1, 1], [], []>} : vector<512x16xbf16>, vector<16x32xbf16>, vector<512x32xf32> -> vector<512x32xf32>
    %66 = arith.addf %59, %65 : vector<512x32xf32>
    %c0_72 = arith.constant 0 : index
    %c2_73 = arith.constant 2 : index
    %c2_74 = arith.constant 2 : index
    %c0_75 = arith.constant 0 : index
    %67 = vector.load %arg7[%c0_72, %c2_73, %c2_74, %c0_75] : memref<8x10x10x16xf32, #tpu.memory_space<vmem>>, vector<8x8x8x16xf32>
    %68 = vector.shape_cast %67 : vector<8x8x8x16xf32> to vector<512x16xf32>
    %69 = arith.truncf %68 : vector<512x16xf32> to vector<512x16xbf16>
    %c8 = arith.constant 8 : index
    %c0_76 = arith.constant 0 : index
    %c0_77 = arith.constant 0 : index
    %70 = vector.load %arg3[%c8, %c0_76, %c0_77] : memref<9x16x32xbf16, #tpu.memory_space<vmem>>, vector<1x16x32xbf16>
    %71 = vector.shape_cast %70 : vector<1x16x32xbf16> to vector<16x32xbf16>
    %cst_78 = arith.constant dense<0.000000e+00> : vector<512x32xf32>
    %72 = tpu.matmul %69, %71, %cst_78 {dimension_numbers = #tpu.dot_dimension_numbers<[1], [0], [0], [1], [0, 0, 1, 1], [], []>} : vector<512x16xbf16>, vector<16x32xbf16>, vector<512x32xf32> -> vector<512x32xf32>
    %73 = arith.addf %66, %72 : vector<512x32xf32>
    %cst_79 = arith.constant 0.000000e+00 : f32
    %74 = vector.broadcast %cst_79 : f32 to vector<512x32xf32>
    %75 = arith.maximumf %73, %74 : vector<512x32xf32>
    %76 = vector.shape_cast %75 : vector<512x32xf32> to vector<8x64x32xf32>
    %cst_80 = arith.constant dense<0.000000e+00> : vector<8x32xf32>
    %77 = vector.multi_reduction <add>, %76, %cst_80 [1] : vector<8x64x32xf32> to vector<8x32xf32>
    %cst_81 = arith.constant 6.400000e+01 : f32
    %78 = vector.broadcast %cst_81 : f32 to vector<8x32xf32>
    %79 = arith.divf %77, %78 : vector<8x32xf32>
    %80 = arith.truncf %79 : vector<8x32xf32> to vector<8x32xbf16>
    %c0_82 = arith.constant 0 : index
    %c0_83 = arith.constant 0 : index
    %81 = vector.load %arg4[%c0_82, %c0_83] : memref<32x128xbf16, #tpu.memory_space<vmem>>, vector<32x128xbf16>
    %cst_84 = arith.constant dense<0.000000e+00> : vector<8x128xf32>
    %82 = tpu.matmul %80, %81, %cst_84 {dimension_numbers = #tpu.dot_dimension_numbers<[1], [0], [0], [1], [0, 0, 1, 1], [], []>} : vector<8x32xbf16>, vector<32x128xbf16>, vector<8x128xf32> -> vector<8x128xf32>
    %c0_85 = arith.constant 0 : index
    %c0_86 = arith.constant 0 : index
    %83 = vector.load %arg5[%c0_85, %c0_86] : memref<1x128xf32, #tpu.memory_space<vmem>>, vector<1x128xf32>
    %84 = vector.broadcast %83 : vector<1x128xf32> to vector<8x128xf32>
    %85 = arith.addf %82, %84 : vector<8x128xf32>
    %c0_87 = arith.constant 0 : index
    %c0_88 = arith.constant 0 : index
    %86 = vector.load %arg6[%c0_87, %c0_88] : memref<8x128xf32, #tpu.memory_space<vmem>>, vector<8x128xf32>
    tpu.vector_store %arg6[%c0_87, %c0_88], %85 {strides = array<i32>} : memref<8x128xf32, #tpu.memory_space<vmem>>, vector<8x128xf32>,
    return
  }
  func.func @transform_0(%arg0: i32) -> (i32, i32, i32) {
    %c0_i32 = arith.constant 0 : i32
    %c0_i32_0 = arith.constant 0 : i32
    %c0_i32_1 = arith.constant 0 : i32
    return %arg0, %c0_i32, %c0_i32_0 : i32, i32, i32
  }
  func.func @transform_1(%arg0: i32) -> (i32, i32) {
    %c0_i32 = arith.constant 0 : i32
    %c0_i32_0 = arith.constant 0 : i32
    %c0_i32_1 = arith.constant 0 : i32
    return %c0_i32, %c0_i32_0 : i32, i32
  }
  func.func @transform_2(%arg0: i32) -> (i32, i32, i32) {
    %c0_i32 = arith.constant 0 : i32
    %c0_i32_0 = arith.constant 0 : i32
    %c0_i32_1 = arith.constant 0 : i32
    %c0_i32_2 = arith.constant 0 : i32
    return %c0_i32, %c0_i32_0, %c0_i32_1 : i32, i32, i32
  }
  func.func @transform_3(%arg0: i32) -> (i32, i32) {
    %c0_i32 = arith.constant 0 : i32
    %c0_i32_0 = arith.constant 0 : i32
    %c0_i32_1 = arith.constant 0 : i32
    return %c0_i32, %c0_i32_0 : i32, i32
  }
  func.func @transform_4(%arg0: i32) -> (i32, i32) {
    %c0_i32 = arith.constant 0 : i32
    %c0_i32_0 = arith.constant 0 : i32
    %c0_i32_1 = arith.constant 0 : i32
    return %c0_i32, %c0_i32_0 : i32, i32
  }
  func.func @transform_5(%arg0: i32) -> (i32, i32) {
    %c0_i32 = arith.constant 0 : i32
    %c0_i32_0 = arith.constant 0 : i32
    return %arg0, %c0_i32 : i32, i32
  }
}

</mosaic_0001>

<bundles_post_ra>
// kernel: convnet_forward.1
= control target key start
LH: loop header
LB: loop body
LE: loop exit
PB: predicated region body
PF: predicated region fallthrough
CT: control target
= control target key end

     0   :  { %vm261_vm0 = vcmask 261120   ;;  %vm711_vm1 = vcmask 130048   ;;  %vm713_vm2 = vcmask 123904   ;;  %v9580_v27 = vmov 0.0   ;;  %s9574_s1 = inlined_call_operand.vmem [shape: bf16[32,16], index: 1, kind: input, shape index: {}]   ;;  %s9575_s0 = inlined_call_operand.vmem [shape: bf16[8,64,32], index: 0, kind: input, shape index: {}]   ;;  %s9576_s2 = inlined_call_operand.vmem [shape: bf16[9,16,32], index: 2, kind: input, shape index: {}]   ;;  %s9577_s3 = inlined_call_operand.vmem [shape: bf16[32,128], index: 3, kind: input, shape index: {}]   ;;  %s9578_s4 = inlined_call_operand.vmem [shape: f32[1,128], index: 4, kind: input, shape index: {}]   ;;  %s9579_s5 = inlined_call_operand.vmem [shape: f32[8,128], index: 5, kind: output, shape index: {}]  }
   0x1   :  { %v8050_v0 = vld [vmem:[%s9574_s1] sm:$0xff]   ;;  %v8051_v1 = vld [vmem:[%s9574_s1 + $0x8] sm:$0xff]   ;;  %v8054_v4 = vld [vmem:[%s9575_s0 + $0x10] sm:$0xff]   ;;  %719 = vst.msk [vmem:[#allocation2 + $0x30] sm:$0xff] %vm711_vm1, %v9580_v27  ;;  %vm8097_vm3 = vmmov 0   ;;  %vm6072_vm4 = vcmask 1041409  }
   0x2   :  { %6864 = vmatprep.subr.bf16.mxu0 %v8050_v0  ;;  %v8052_v2 = vld [vmem:[%s9575_s0] sm:$0xff]   ;;  %v8053_v3 = vld [vmem:[%s9575_s0 + $0x8] sm:$0xff]   ;;  %v8055_v5 = vld [vmem:[%s9575_s0 + $0x18] sm:$0xff]   ;;  %720 = vst.msk [vmem:[#allocation2 + $0x38] sm:$0x3] %vm713_vm2, %v9580_v27  ;;  %vm6074_vm5 = vcmask 1042434  }
   0x3   :  { %6865 = vmatpush3.bf16.msra.mxu0 %v8050_v0  ;;  %6868 = vmatprep.mubr.msk.bf16.mxu0 %vm261_vm0, %v8052_v2  ;;  %v8056_v6 = vld [vmem:[%s9575_s0 + $0x20] sm:$0xff]   ;;  %v8057_v7 = vld [vmem:[%s9575_s0 + $0x28] sm:$0xff]   ;;  %v8058_v8 = vld [vmem:[%s9575_s0 + $0x30] sm:$0xff]   ;;  %712 = vst.msk [vmem:[#allocation2] sm:$0xff] %vm711_vm1, %v9580_v27  ;;  %vm6076_vm6 = vcmask 1043459   ;;  %vm6078_vm7 = vcmask 1044484  }
   0x4   :  { %6866 = vmatprep.subr.bf16.mxu0 %v8051_v1  ;;  %v8059_v9 = vld [vmem:[%s9575_s0 + $0x38] sm:$0xff]   ;;  %v8060_v10 = vld [vmem:[%s9575_s0 + $0x40] sm:$0xff]   ;;  %v8061_v11 = vld [vmem:[%s9575_s0 + $0x48] sm:$0xff]   ;;  %714 = vst.msk [vmem:[#allocation2 + $0x8] sm:$0x3] %vm713_vm2, %v9580_v27  ;;  %vm6080_vm8 = vcmask 1045509  }
   0x5   :  { %v8062_v12 = vld [vmem:[%s9575_s0 + $0x50] sm:$0xff]   ;;  %v8063_v13 = vld [vmem:[%s9575_s0 + $0x58] sm:$0xff]   ;;  %v8064_v14 = vld [vmem:[%s9575_s0 + $0x60] sm:$0xff]   ;;  %715 = vst.msk [vmem:[#allocation2 + $0x10] sm:$0xff] %vm711_vm1, %v9580_v27  ;;  %vm6082_vm9 = vcmask 1046534   ;;  %vm6084_vm10 = vcmask 1047559  }
   0x6   :  { %v8065_v15 = vld [vmem:[%s9575_s0 + $0x68] sm:$0xff]   ;;  %v8066_v16 = vld [vmem:[%s9575_s0 + $0x70] sm:$0xff]   ;;  %v8067_v17 = vld [vmem:[%s9575_s0 + $0x78] sm:$0xff]   ;;  %716 = vst.msk [vmem:[#allocation2 + $0x18] sm:$0x3] %vm713_vm2, %v9580_v27 }
   0x7   :  { %6867 = vmatpush3.bf16.msra.mxu0 %v8051_v1  ;;  %v8068_v18 = vld [vmem:[%s9575_s0 + $0x80] sm:$0xff]   ;;  %v8069_v19 = vld [vmem:[%s9575_s0 + $0x88] sm:$0xff]   ;;  %v8070_v20 = vld [vmem:[%s9575_s0 + $0x90] sm:$0xff]   ;;  %717 = vst.msk [vmem:[#allocation2 + $0x20] sm:$0xff] %vm711_vm1, %v9580_v27 }
   0x8   :  { %v8071_v21 = vld [vmem:[%s9575_s0 + $0x98] sm:$0xff]   ;;  %v8072_v22 = vld [vmem:[%s9575_s0 + $0xa0] sm:$0xff]   ;;  %v8073_v23 = vld [vmem:[%s9575_s0 + $0xa8] sm:$0xff]   ;;  %718 = vst.msk [vmem:[#allocation2 + $0x28] sm:$0x3] %vm713_vm2, %v9580_v27 }
   0x9   :  { %v8074_v24 = vld [vmem:[%s9575_s0 + $0xb0] sm:$0xff]   ;;  %v8229_v25 = vld [vmem:[%s9575_s0 + $0xb8] sm:$0xff]   ;;  %v8234_v26 = vld [vmem:[%s9575_s0 + $0xc0] sm:$0xff]   ;;  %721 = vst.msk [vmem:[#allocation2 + $0x40] sm:$0xff] %vm711_vm1, %v9580_v27 }
   0xa   :  { %6869 = vmatmul.mubr.msk.bf16.vlgmr.msra.gmra.mrb[0].mxu0 %vm261_vm0, %v8053_v3  ;;  %722 = vst.msk [vmem:[#allocation2 + $0x48] sm:$0x3] %vm713_vm2, %v9580_v27  ;;  %724 = vst.msk [vmem:[#allocation2 + $0x58] sm:$0x3] %vm713_vm2, %v9580_v27  ;;  %v8077_v28 = vld [vmem:[%s9575_s0 + $0xc8] sm:$0xff]   ;;  %v8078_v29 = vld [vmem:[%s9575_s0 + $0xd0] sm:$0xff]  }
   0xb   :  { %6872 = vmatprep.mubr.msk.bf16.mxu0 %vm261_vm0, %v8054_v4  ;;  %723 = vst.msk [vmem:[#allocation2 + $0x50] sm:$0xff] %vm711_vm1, %v9580_v27  ;;  %725 = vst.msk [vmem:[#allocation2 + $0x60] sm:$0xff] %vm711_vm1, %v9580_v27  ;;  %v8084_v30 = vld [vmem:[%s9576_s2 + $0x8] sm:$0xff]   ;;  %v8079_v31 = vld [vmem:[%s9575_s0 + $0xd8] sm:$0xff]  }
   0xc   :  { %726 = vst.msk [vmem:[#allocation2 + $0x68] sm:$0x3] %vm713_vm2, %v9580_v27  ;;  %728 = vst.msk [vmem:[#allocation2 + $0x78] sm:$0x3] %vm713_vm2, %v9580_v27  ;;  %6932 = vmatprep.subr.bf16.mxu0 %v8084_v30  ;;  %v8080_v32 = vld [vmem:[%s9575_s0 + $0xe0] sm:$0xff]   ;;  %v8081_v33 = vld [vmem:[%s9575_s0 + $0xe8] sm:$0xff]  }
   0xd   :  { %727 = vst.msk [vmem:[#allocation2 + $0x70] sm:$0xff] %vm711_vm1, %v9580_v27  ;;  %729 = vst.msk [vmem:[#allocation2 + $0x80] sm:$0xff] %vm711_vm1, %v9580_v27  ;;  %6933 = vmatpush3.bf16.msra.mxu0 %v8084_v30  ;;  %v8082_v34 = vld [vmem:[%s9575_s0 + $0xf0] sm:$0xff]   ;;  %v8083_v35 = vld [vmem:[%s9575_s0 + $0xf8] sm:$0xff]  }
   0xe   :  { %730 = vst.msk [vmem:[#allocation2 + $0x88] sm:$0x3] %vm713_vm2, %v9580_v27  ;;  %732 = vst.msk [vmem:[#allocation2 + $0x98] sm:$0x3] %vm713_vm2, %v9580_v27  ;;  %v8594_v37 = vld [vmem:[%s9576_s2 + $0x18] sm:$0xff]   ;;  %v8605_v46 = vld [vmem:[%s9576_s2 + $0x20] sm:$0xff]  }
   0xf   :  { %731 = vst.msk [vmem:[#allocation2 + $0x90] sm:$0xff] %vm711_vm1, %v9580_v27  ;;  %733 = vst.msk [vmem:[#allocation2 + $0xa0] sm:$0xff] %vm711_vm1, %v9580_v27  ;;  %7534 = vmatprep.subr.bf16.mxu1 %v8594_v37  ;;  %v1036_v49 = vld [vmem:[#allocation2 + $0x1] sm:$0xff] }
  0x10   :  { %734 = vst.msk [vmem:[#allocation2 + $0xa8] sm:$0x3] %vm713_vm2, %v9580_v27  ;;  %736 = vst.msk [vmem:[#allocation2 + $0xb8] sm:$0x3] %vm713_vm2, %v9580_v27  ;;  %7535 = vmatpush3.bf16.msra.mxu1 %v8594_v37  ;;  %v8087_v52 = vld [vmem:[%s9576_s2] sm:$0xff]  }
  0x11   :  { %735 = vst.msk [vmem:[#allocation2 + $0xb0] sm:$0xff] %vm711_vm1, %v9580_v27  ;;  %737 = vst.msk [vmem:[#allocation2 + $0xc0] sm:$0xff] %vm711_vm1, %v9580_v27  ;;  %7196 = vmatprep.subr.bf16.mxu1 %v8605_v46  ;;  %6998 = vmatprep.subr.bf16.mxu0 %v8087_v52 }
  0x12   :  { %6873 = vmatmul.mubr.msk.bf16.gmra.mrb[4].mxu0 %vm261_vm0, %v8055_v5  ;;  %738 = vst.msk [vmem:[#allocation2 + $0xc8] sm:$0x3] %vm713_vm2, %v9580_v27  ;;  %740 = vst.msk [vmem:[#allocation2 + $0xd8] sm:$0x3] %vm713_vm2, %v9580_v27 }
  0x13   :  { %6876 = vmatprep.mubr.msk.bf16.mxu0 %vm261_vm0, %v8056_v6  ;;  %739 = vst.msk [vmem:[#allocation2 + $0xd0] sm:$0xff] %vm711_vm1, %v9580_v27  ;;  %741 = vst.msk [vmem:[#allocation2 + $0xe0] sm:$0xff] %vm711_vm1, %v9580_v27 }
  0x14   :  { %742 = vst.msk [vmem:[#allocation2 + $0xe8] sm:$0x3] %vm713_vm2, %v9580_v27  ;;  %744 = vst.msk [vmem:[#allocation2 + $0xf8] sm:$0x3] %vm713_vm2, %v9580_v27 }
  0x15   :  { %743 = vst.msk [vmem:[#allocation2 + $0xf0] sm:$0xff] %vm711_vm1, %v9580_v27  ;;  %745 = vst.msk [vmem:[#allocation2 + $0x100] sm:$0xff] %vm711_vm1, %v9580_v27 }
  0x16   :  { %746 = vst.msk [vmem:[#allocation2 + $0x108] sm:$0x3] %vm713_vm2, %v9580_v27  ;;  %748 = vst.msk [vmem:[#allocation2 + $0x118] sm:$0x3] %vm713_vm2, %v9580_v27 }
  0x17   :  { %747 = vst.msk [vmem:[#allocation2 + $0x110] sm:$0xff] %vm711_vm1, %v9580_v27  ;;  %749 = vst.msk [vmem:[#allocation2 + $0x120] sm:$0xff] %vm711_vm1, %v9580_v27 }
  0x18   :  { %750 = vst.msk [vmem:[#allocation2 + $0x128] sm:$0x3] %vm713_vm2, %v9580_v27  ;;  %752 = vst.msk [vmem:[#allocation2 + $0x138] sm:$0x3] %vm713_vm2, %v9580_v27 }
  0x19   :  { %751 = vst.msk [vmem:[#allocation2 + $0x130] sm:$0xff] %vm711_vm1, %v9580_v27  ;;  %753 = vst.msk [vmem:[#allocation2 + $0x140] sm:$0xff] %vm711_vm1, %v9580_v27 }
  0x1a   :  { %6877 = vmatmul.mubr.msk.bf16.gmra.mrb[8].mxu0 %vm261_vm0, %v8057_v7  ;;  %754 = vst.msk [vmem:[#allocation2 + $0x148] sm:$0x3] %vm713_vm2, %v9580_v27  ;;  %756 = vst.msk [vmem:[#allocation2 + $0x158] sm:$0x3] %vm713_vm2, %v9580_v27 }
  0x1b   :  { %6880 = vmatprep.mubr.msk.bf16.mxu0 %vm261_vm0, %v8058_v8  ;;  %755 = vst.msk [vmem:[#allocation2 + $0x150] sm:$0xff] %vm711_vm1, %v9580_v27  ;;  %757 = vst.msk [vmem:[#allocation2 + $0x160] sm:$0xff] %vm711_vm1, %v9580_v27 }
  0x1c   :  { %758 = vst.msk [vmem:[#allocation2 + $0x168] sm:$0x3] %vm713_vm2, %v9580_v27  ;;  %760 = vst.msk [vmem:[#allocation2 + $0x178] sm:$0x3] %vm713_vm2, %v9580_v27 }
  0x1d   :  { %759 = vst.msk [vmem:[#allocation2 + $0x170] sm:$0xff] %vm711_vm1, %v9580_v27  ;;  %761 = vst.msk [vmem:[#allocation2 + $0x180] sm:$0xff] %vm711_vm1, %v9580_v27 }
  0x1e   :  { %762 = vst.msk [vmem:[#allocation2 + $0x188] sm:$0x3] %vm713_vm2, %v9580_v27  ;;  %764 = vst.msk [vmem:[#allocation2 + $0x198] sm:$0x3] %vm713_vm2, %v9580_v27 }
  0x1f   :  { %763 = vst.msk [vmem:[#allocation2 + $0x190] sm:$0xff] %vm711_vm1, %v9580_v27  ;;  %765 = vst.msk [vmem:[#allocation2 + $0x1a0] sm:$0xff] %vm711_vm1, %v9580_v27 }
  0x20   :  { %766 = vst.msk [vmem:[#allocation2 + $0x1a8] sm:$0x3] %vm713_vm2, %v9580_v27  ;;  %768 = vst.msk [vmem:[#allocation2 + $0x1b8] sm:$0x3] %vm713_vm2, %v9580_v27 }
  0x21   :  { %767 = vst.msk [vmem:[#allocation2 + $0x1b0] sm:$0xff] %vm711_vm1, %v9580_v27  ;;  %769 = vst.msk [vmem:[#allocation2 + $0x1c0] sm:$0xff] %vm711_vm1, %v9580_v27 }
  0x22   :  { %6881 = vmatmul.mubr.msk.bf16.gmra.mrb[12].mxu0 %vm261_vm0, %v8059_v9  ;;  %770 = vst.msk [vmem:[#allocation2 + $0x1c8] sm:$0x3] %vm713_vm2, %v9580_v27  ;;  %772 = vst.msk [vmem:[#allocation2 + $0x1d8] sm:$0x3] %vm713_vm2, %v9580_v27 }
  0x23   :  { %6884 = vmatprep.mubr.msk.bf16.mxu0 %vm261_vm0, %v8060_v10  ;;  %771 = vst.msk [vmem:[#allocation2 + $0x1d0] sm:$0xff] %vm711_vm1, %v9580_v27  ;;  %773 = vst.msk [vmem:[#allocation2 + $0x1e0] sm:$0xff] %vm711_vm1, %v9580_v27 }
  0x24   :  { %774 = vst.msk [vmem:[#allocation2 + $0x1e8] sm:$0x3] %vm713_vm2, %v9580_v27  ;;  %776 = vst.msk [vmem:[#allocation2 + $0x1f8] sm:$0x3] %vm713_vm2, %v9580_v27 }
  0x25   :  { %775 = vst.msk [vmem:[#allocation2 + $0x1f0] sm:$0xff] %vm711_vm1, %v9580_v27  ;;  %777 = vst.msk [vmem:[#allocation2 + $0x200] sm:$0xff] %vm711_vm1, %v9580_v27 }
  0x26   :  { %778 = vst.msk [vmem:[#allocation2 + $0x208] sm:$0x3] %vm713_vm2, %v9580_v27  ;;  %780 = vst.msk [vmem:[#allocation2 + $0x218] sm:$0x3] %vm713_vm2, %v9580_v27 }
  0x27   :  { %779 = vst.msk [vmem:[#allocation2 + $0x210] sm:$0xff] %vm711_vm1, %v9580_v27  ;;  %781 = vst.msk [vmem:[#allocation2 + $0x220] sm:$0xff] %vm711_vm1, %v9580_v27 }
  0x28   :  { %782 = vst.msk [vmem:[#allocation2 + $0x228] sm:$0x3] %vm713_vm2, %v9580_v27  ;;  %784 = vst.msk [vmem:[#allocation2 + $0x238] sm:$0x3] %vm713_vm2, %v9580_v27 }
  0x29   :  { %783 = vst.msk [vmem:[#allocation2 + $0x230] sm:$0xff] %vm711_vm1, %v9580_v27  ;;  %785 = vst.msk [vmem:[#allocation2 + $0x240] sm:$0xff] %vm711_vm1, %v9580_v27 }
  0x2a   :  { %6885 = vmatmul.mubr.msk.bf16.gmra.mrb[16].mxu0 %vm261_vm0, %v8061_v11  ;;  %786 = vst.msk [vmem:[#allocation2 + $0x248] sm:$0x3] %vm713_vm2, %v9580_v27  ;;  %788 = vst.msk [vmem:[#allocation2 + $0x258] sm:$0x3] %vm713_vm2, %v9580_v27 }
  0x2b   :  { %6888 = vmatprep.mubr.msk.bf16.mxu0 %vm261_vm0, %v8062_v12  ;;  %787 = vst.msk [vmem:[#allocation2 + $0x250] sm:$0xff] %vm711_vm1, %v9580_v27  ;;  %789 = vst.msk [vmem:[#allocation2 + $0x260] sm:$0xff] %vm711_vm1, %v9580_v27 }
  0x2c   :  { %790 = vst.msk [vmem:[#allocation2 + $0x268] sm:$0x3] %vm713_vm2, %v9580_v27  ;;  %792 = vst.msk [vmem:[#allocation2 + $0x278] sm:$0x3] %vm713_vm2, %v9580_v27 }
  0x2d   :  { %791 = vst.msk [vmem:[#allocation2 + $0x270] sm:$0xff] %vm711_vm1, %v9580_v27  ;;  %793 = vst.msk [vmem:[#allocation2 + $0x280] sm:$0xff] %vm711_vm1, %v9580_v27 }
  0x2e   :  { %794 = vst.msk [vmem:[#allocation2 + $0x288] sm:$0x3] %vm713_vm2, %v9580_v27  ;;  %796 = vst.msk [vmem:[#allocation2 + $0x298] sm:$0x3] %vm713_vm2, %v9580_v27 }
  0x2f   :  { %795 = vst.msk [vmem:[#allocation2 + $0x290] sm:$0xff] %vm711_vm1, %v9580_v27  ;;  %797 = vst.msk [vmem:[#allocation2 + $0x2a0] sm:$0xff] %vm711_vm1, %v9580_v27 }
  0x30   :  { %798 = vst.msk [vmem:[#allocation2 + $0x2a8] sm:$0x3] %vm713_vm2, %v9580_v27  ;;  %800 = vst.msk [vmem:[#allocation2 + $0x2b8] sm:$0x3] %vm713_vm2, %v9580_v27 }
  0x31   :  { %799 = vst.msk [vmem:[#allocation2 + $0x2b0] sm:$0xff] %vm711_vm1, %v9580_v27  ;;  %801 = vst.msk [vmem:[#allocation2 + $0x2c0] sm:$0xff] %vm711_vm1, %v9580_v27 }
  0x32   :  { %6889 = vmatmul.mubr.msk.bf16.gmra.mrb[20].mxu0 %vm261_vm0, %v8063_v13  ;;  %802 = vst.msk [vmem:[#allocation2 + $0x2c8] sm:$0x3] %vm713_vm2, %v9580_v27  ;;  %804 = vst.msk [vmem:[#allocation2 + $0x2d8] sm:$0x3] %vm713_vm2, %v9580_v27 }
  0x33   :  { %6892 = vmatprep.mubr.msk.bf16.mxu0 %vm261_vm0, %v8064_v14  ;;  %803 = vst.msk [vmem:[#allocation2 + $0x2d0] sm:$0xff] %vm711_vm1, %v9580_v27  ;;  %805 = vst.msk [vmem:[#allocation2 + $0x2e0] sm:$0xff] %vm711_vm1, %v9580_v27 }
  0x34   :  { %806 = vst.msk [vmem:[#allocation2 + $0x2e8] sm:$0x3] %vm713_vm2, %v9580_v27  ;;  %808 = vst.msk [vmem:[#allocation2 + $0x2f8] sm:$0x3] %vm713_vm2, %v9580_v27 }
  0x35   :  { %807 = vst.msk [vmem:[#allocation2 + $0x2f0] sm:$0xff] %vm711_vm1, %v9580_v27  ;;  %809 = vst.msk [vmem:[#allocation2 + $0x300] sm:$0xff] %vm711_vm1, %v9580_v27 }
  0x36   :  { %810 = vst.msk [vmem:[#allocation2 + $0x308] sm:$0x3] %vm713_vm2, %v9580_v27  ;;  %812 = vst.msk [vmem:[#allocation2 + $0x318] sm:$0x3] %vm713_vm2, %v9580_v27 }
  0x37   :  { %811 = vst.msk [vmem:[#allocation2 + $0x310] sm:$0xff] %vm711_vm1, %v9580_v27  ;;  %813 = vst.msk [vmem:[#allocation2 + $0x320] sm:$0xff] %vm711_vm1, %v9580_v27 }
  0x38   :  { %814 = vst.msk [vmem:[#allocation2 + $0x328] sm:$0x3] %vm713_vm2, %v9580_v27  ;;  %816 = vst.msk [vmem:[#allocation2 + $0x338] sm:$0x3] %vm713_vm2, %v9580_v27 }
  0x39   :  { %815 = vst.msk [vmem:[#allocation2 + $0x330] sm:$0xff] %vm711_vm1, %v9580_v27  ;;  %817 = vst.msk [vmem:[#allocation2 + $0x340] sm:$0xff] %vm711_vm1, %v9580_v27 }
  0x3a   :  { %6893 = vmatmul.mubr.msk.bf16.gmra.mrb[24].mxu0 %vm261_vm0, %v8065_v15  ;;  %818 = vst.msk [vmem:[#allocation2 + $0x348] sm:$0x3] %vm713_vm2, %v9580_v27  ;;  %820 = vst.msk [vmem:[#allocation2 + $0x358] sm:$0x3] %vm713_vm2, %v9580_v27 }
  0x3b   :  { %6896 = vmatprep.mubr.msk.bf16.mxu0 %vm261_vm0, %v8066_v16  ;;  %819 = vst.msk [vmem:[#allocation2 + $0x350] sm:$0xff] %vm711_vm1, %v9580_v27  ;;  %821 = vst.msk [vmem:[#allocation2 + $0x360] sm:$0xff] %vm711_vm1, %v9580_v27 }
  0x3c   :  { %822 = vst.msk [vmem:[#allocation2 + $0x368] sm:$0x3] %vm713_vm2, %v9580_v27  ;;  %824 = vst.msk [vmem:[#allocation2 + $0x378] sm:$0x3] %vm713_vm2, %v9580_v27 }
  0x3d   :  { %823 = vst.msk [vmem:[#allocation2 + $0x370] sm:$0xff] %vm711_vm1, %v9580_v27  ;;  %825 = vst.msk [vmem:[#allocation2 + $0x380] sm:$0xff] %vm711_vm1, %v9580_v27 }
  0x3e   :  { %826 = vst.msk [vmem:[#allocation2 + $0x388] sm:$0x3] %vm713_vm2, %v9580_v27  ;;  %828 = vst.msk [vmem:[#allocation2 + $0x398] sm:$0x3] %vm713_vm2, %v9580_v27 }
  0x3f   :  { %827 = vst.msk [vmem:[#allocation2 + $0x390] sm:$0xff] %vm711_vm1, %v9580_v27  ;;  %829 = vst.msk [vmem:[#allocation2 + $0x3a0] sm:$0xff] %vm711_vm1, %v9580_v27 }
  0x40   :  { %830 = vst.msk [vmem:[#allocation2 + $0x3a8] sm:$0x3] %vm713_vm2, %v9580_v27  ;;  %832 = vst.msk [vmem:[#allocation2 + $0x3b8] sm:$0x3] %vm713_vm2, %v9580_v27 }
  0x41   :  { %831 = vst.msk [vmem:[#allocation2 + $0x3b0] sm:$0xff] %vm711_vm1, %v9580_v27  ;;  %833 = vst.msk [vmem:[#allocation2 + $0x3c0] sm:$0xff] %vm711_vm1, %v9580_v27 }
  0x42   :  { %6897 = vmatmul.mubr.msk.bf16.gmra.mrb[28].mxu0 %vm261_vm0, %v8067_v17  ;;  %834 = vst.msk [vmem:[#allocation2 + $0x3c8] sm:$0x3] %vm713_vm2, %v9580_v27  ;;  %836 = vst.msk [vmem:[#allocation2 + $0x3d8] sm:$0x3] %vm713_vm2, %v9580_v27  ;;  %v1044_v17 = vld [vmem:[#allocation2 + $0xa1] sm:$0xff] }
  0x43   :  { %6900 = vmatprep.mubr.msk.bf16.mxu0 %vm261_vm0, %v8068_v18  ;;  %835 = vst.msk [vmem:[#allocation2 + $0x3d0] sm:$0xff] %vm711_vm1, %v9580_v27  ;;  %837 = vst.msk [vmem:[#allocation2 + $0x3e0] sm:$0xff] %vm711_vm1, %v9580_v27 }
  0x44   :  { %838 = vst.msk [vmem:[#allocation2 + $0x3e8] sm:$0x3] %vm713_vm2, %v9580_v27  ;;  %840 = vst.msk [vmem:[#allocation2 + $0x3f8] sm:$0x3] %vm713_vm2, %v9580_v27 }
  0x45   :  { %839 = vst.msk [vmem:[#allocation2 + $0x3f0] sm:$0xff] %vm711_vm1, %v9580_v27  ;;  %841 = vst.msk [vmem:[#allocation2 + $0x400] sm:$0xff] %vm711_vm1, %v9580_v27 }
  0x46   :  { %842 = vst.msk [vmem:[#allocation2 + $0x408] sm:$0x3] %vm713_vm2, %v9580_v27  ;;  %844 = vst.msk [vmem:[#allocation2 + $0x418] sm:$0x3] %vm713_vm2, %v9580_v27 }
  0x47   :  { %843 = vst.msk [vmem:[#allocation2 + $0x410] sm:$0xff] %vm711_vm1, %v9580_v27  ;;  %845 = vst.msk [vmem:[#allocation2 + $0x420] sm:$0xff] %vm711_vm1, %v9580_v27 }
  0x48   :  { %846 = vst.msk [vmem:[#allocation2 + $0x428] sm:$0x3] %vm713_vm2, %v9580_v27  ;;  %848 = vst.msk [vmem:[#allocation2 + $0x438] sm:$0x3] %vm713_vm2, %v9580_v27 }
  0x49   :  { %847 = vst.msk [vmem:[#allocation2 + $0x430] sm:$0xff] %vm711_vm1, %v9580_v27  ;;  %849 = vst.msk [vmem:[#allocation2 + $0x440] sm:$0xff] %vm711_vm1, %v9580_v27 }
  0x4a   :  { %6901 = vmatmul.mubr.msk.bf16.gmra.mrb[32].mxu0 %vm261_vm0, %v8069_v19  ;;  %850 = vst.msk [vmem:[#allocation2 + $0x448] sm:$0x3] %vm713_vm2, %v9580_v27  ;;  %852 = vst.msk [vmem:[#allocation2 + $0x458] sm:$0x3] %vm713_vm2, %v9580_v27 }
  0x4b   :  { %6904 = vmatprep.mubr.msk.bf16.mxu0 %vm261_vm0, %v8070_v20  ;;  %851 = vst.msk [vmem:[#allocation2 + $0x450] sm:$0xff] %vm711_vm1, %v9580_v27  ;;  %853 = vst.msk [vmem:[#allocation2 + $0x460] sm:$0xff] %vm711_vm1, %v9580_v27 }
  0x4c   :  { %854 = vst.msk [vmem:[#allocation2 + $0x468] sm:$0x3] %vm713_vm2, %v9580_v27  ;;  %856 = vst.msk [vmem:[#allocation2 + $0x478] sm:$0x3] %vm713_vm2, %v9580_v27 }
  0x4d   :  { %855 = vst.msk [vmem:[#allocation2 + $0x470] sm:$0xff] %vm711_vm1, %v9580_v27  ;;  %857 = vst.msk [vmem:[#allocation2 + $0x480] sm:$0xff] %vm711_vm1, %v9580_v27 }
  0x4e   :  { %858 = vst.msk [vmem:[#allocation2 + $0x488] sm:$0x3] %vm713_vm2, %v9580_v27  ;;  %860 = vst.msk [vmem:[#allocation2 + $0x498] sm:$0x3] %vm713_vm2, %v9580_v27 }
  0x4f   :  { %859 = vst.msk [vmem:[#allocation2 + $0x490] sm:$0xff] %vm711_vm1, %v9580_v27  ;;  %861 = vst.msk [vmem:[#allocation2 + $0x4a0] sm:$0xff] %vm711_vm1, %v9580_v27 }
  0x50   :  { %862 = vst.msk [vmem:[#allocation2 + $0x4a8] sm:$0x3] %vm713_vm2, %v9580_v27  ;;  %864 = vst.msk [vmem:[#allocation2 + $0x4b8] sm:$0x3] %vm713_vm2, %v9580_v27 }
  0x51   :  { %863 = vst.msk [vmem:[#allocation2 + $0x4b0] sm:$0xff] %vm711_vm1, %v9580_v27  ;;  %865 = vst.msk [vmem:[#allocation2 + $0x4c0] sm:$0xff] %vm711_vm1, %v9580_v27 }
  0x52   :  { %6905 = vmatmul.mubr.msk.bf16.gmra.mrb[36].mxu0 %vm261_vm0, %v8071_v21  ;;  %866 = vst.msk [vmem:[#allocation2 + $0x4c8] sm:$0x3] %vm713_vm2, %v9580_v27  ;;  %868 = vst.msk [vmem:[#allocation2 + $0x4d8] sm:$0x3] %vm713_vm2, %v9580_v27 }
  0x53   :  { %6908 = vmatprep.mubr.msk.bf16.mxu0 %vm261_vm0, %v8072_v22  ;;  %867 = vst.msk [vmem:[#allocation2 + $0x4d0] sm:$0xff] %vm711_vm1, %v9580_v27  ;;  %869 = vst.msk [vmem:[#allocation2 + $0x4e0] sm:$0xff] %vm711_vm1, %v9580_v27 }
  0x54   :  { %870 = vst.msk [vmem:[#allocation2 + $0x4e8] sm:$0x3] %vm713_vm2, %v9580_v27  ;;  %872 = vst.msk [vmem:[#allocation2 + $0x4f8] sm:$0x3] %vm713_vm2, %v9580_v27 }
  0x55   :  { %871 = vst.msk [vmem:[#allocation2 + $0x4f0] sm:$0xff] %vm711_vm1, %v9580_v27 }
  0x5a   :  { %6909 = vmatmul.mubr.msk.bf16.gmra.mrb[40].mxu0 %vm261_vm0, %v8073_v23 }
  0x5b   :  { %6912 = vmatprep.mubr.msk.bf16.mxu0 %vm261_vm0, %v8074_v24 }
  0x62   :  { %6913 = vmatmul.mubr.msk.bf16.gmra.mrb[44].mxu0 %vm261_vm0, %v8229_v25 }
  0x63   :  { %6916 = vmatprep.mubr.msk.bf16.mxu0 %vm261_vm0, %v8234_v26 }
  0x6a   :  { %6917 = vmatmul.mubr.msk.bf16.gmra.mrb[48].mxu0 %vm261_vm0, %v8077_v28 }
  0x6b   :  { %6920 = vmatprep.mubr.msk.bf16.mxu0 %vm261_vm0, %v8078_v29 }
  0x72   :  { %6921 = vmatmul.mubr.msk.bf16.gmra.mrb[52].mxu0 %vm261_vm0, %v8079_v31 }
  0x73   :  { %6924 = vmatprep.mubr.msk.bf16.mxu0 %vm261_vm0, %v8080_v32 }
  0x7a   :  { %6925 = vmatmul.mubr.msk.bf16.gmra.mrb[56].mxu0 %vm261_vm0, %v8081_v33 }
  0x7b   :  { %6928 = vmatprep.mubr.msk.bf16.mxu0 %vm261_vm0, %v8082_v34 }
  0x82   :  { %6929 = vmatmul.mubr.msk.bf16.gmra.mrb[60].mxu0 %vm261_vm0, %v8083_v35 }
  0xdd   :  { %v6870_v36 = vpop.f32.mrb[0].mxu0 }
  0xde   :  { %v649_v38 = vmax.f32 %v6870_v36, 0.0  ;;  %v392_v39 = vpop.f32.mrb[1].mxu0 }
  0xdf   :  { %v647_v40 = vmax.f32 %v392_v39, 0.0  ;;  %v6871_v41 = vpop.f32.mrb[2].mxu0 }
  0xe0   :  { %876 = vst.msk [vmem:[#allocation2 + $0x31] sm:$0xff] %vm711_vm1, %v649_v38  ;;  %v650_v42 = vmax.f32 %v6871_v41, 0.0  ;;  %v395_v43 = vpop.f32.mrb[3].mxu0 }
  0xe1   :  { %874 = vst.msk [vmem:[#allocation2 + $0x11] sm:$0xff] %vm711_vm1, %v647_v40  ;;  %v648_v44 = vmax.f32 %v395_v43, 0.0 }
  0xe2   :  { %877 = vst.msk [vmem:[#allocation2 + $0x41] sm:$0xff] %vm711_vm1, %v650_v42 }
  0xe3   :  { %875 = vst.msk [vmem:[#allocation2 + $0x21] sm:$0xff] %vm711_vm1, %v648_v44 }
  0xe5   :  { %v6874_v45 = vpop.f32.mrb[4].mxu0 }
  0xe6   :  { %v653_v47 = vmax.f32 %v6874_v45, 0.0  ;;  %v408_v48 = vpop.f32.mrb[5].mxu0 }
  0xe7   :  { %v651_v50 = vmax.f32 %v408_v48, 0.0  ;;  %v6875_v51 = vpop.f32.mrb[6].mxu0  ;;  %v8616_v58 = vld [vmem:[#allocation2 + $0x31] sm:$0xff] }
  0xe8   :  { %880 = vst.msk [vmem:[#allocation2 + $0x71] sm:$0xff] %vm711_vm1, %v653_v47  ;;  %v654_v53 = vmax.f32 %v6875_v51, 0.0  ;;  %v411_v54 = vpop.f32.mrb[7].mxu0  ;;  %v8612_v55 = vld [vmem:[#allocation2 + $0x11] sm:$0xff]  ;;  %v1052_v51 = vld [vmem:[#allocation2 + $0x141] sm:$0xff] }
  0xe9   :  { %878 = vst.msk [vmem:[#allocation2 + $0x51] sm:$0xff] %vm711_vm1, %v651_v50  ;;  %v652_v56 = vmax.f32 %v411_v54, 0.0  ;;  %v1100_v57 = vpack.c.bf16 %v8612_v55, %v1036_v49  ;;  %v8618_v59 = vld [vmem:[#allocation2 + $0x41] sm:$0xff] }
  0xea   :  { %881 = vst.msk [vmem:[#allocation2 + $0x81] sm:$0xff] %vm711_vm1, %v654_v53  ;;  %v8621_v60 = vld [vmem:[#allocation2 + $0x21] sm:$0xff] }
  0xeb   :  { %879 = vst.msk [vmem:[#allocation2 + $0x61] sm:$0xff] %vm711_vm1, %v652_v56  ;;  %6934 = vmatprep.mubr.msk.bf16.mxu0 %vm711_vm1, %v1100_v57  ;;  %v1101_v62 = vpack.c.bf16 %v8616_v58, %v8621_v60 }
  0xed   :  { %v6878_v0 = vpop.f32.mrb[8].mxu0  ;;  %6935 = vmatmul.mubr.msk.bf16.vlgmr.msra.gmra.mrb[64].mxu0 %vm711_vm1, %v1101_v62 }
  0xee   :  { %v657_v1 = vmax.f32 %v6878_v0, 0.0  ;;  %v424_v2 = vpop.f32.mrb[9].mxu0  ;;  %6999 = vmatpush3.bf16.msra.mxu0 %v8087_v52 }
  0xef   :  { %v655_v3 = vmax.f32 %v424_v2, 0.0  ;;  %v6879_v4 = vpop.f32.mrb[10].mxu0  ;;  %v8641_v11 = vld [vmem:[#allocation2 + $0x71] sm:$0xff] }
  0xf0   :  { %884 = vst.msk [vmem:[#allocation2 + $0xd1] sm:$0xff] %vm711_vm1, %v657_v1  ;;  %v658_v5 = vmax.f32 %v6879_v4, 0.0  ;;  %v427_v6 = vpop.f32.mrb[11].mxu0  ;;  %v8633_v7 = vld [vmem:[#allocation2 + $0x51] sm:$0xff] }
  0xf1   :  { %882 = vst.msk [vmem:[#allocation2 + $0xb1] sm:$0xff] %vm711_vm1, %v655_v3  ;;  %v656_v8 = vmax.f32 %v427_v6, 0.0  ;;  %v1102_v9 = vpack.c.bf16 %v8633_v7, %v8618_v59 }
  0xf2   :  { %885 = vst.msk [vmem:[#allocation2 + $0xe1] sm:$0xff] %vm711_vm1, %v658_v5  ;;  %v8639_v10 = vld [vmem:[#allocation2 + $0x61] sm:$0xff] }
  0xf3   :  { %883 = vst.msk [vmem:[#allocation2 + $0xc1] sm:$0xff] %vm711_vm1, %v656_v8  ;;  %6938 = vmatprep.mubr.msk.bf16.mxu0 %vm711_vm1, %v1102_v9  ;;  %v1103_v12 = vpack.c.bf16 %v8641_v11, %v8639_v10 }
  0xf5   :  { %v6882_v14 = vpop.f32.mrb[12].mxu0  ;;  %6939 = vmatmul.mubr.msk.bf16.gmra.mrb[68].mxu0 %vm711_vm1, %v1103_v12 }
  0xf6   :  { %v661_v15 = vmax.f32 %v6882_v14, 0.0  ;;  %v440_v16 = vpop.f32.mrb[13].mxu0 }
  0xf7   :  { %v659_v18 = vmax.f32 %v440_v16, 0.0  ;;  %v6883_v19 = vpop.f32.mrb[14].mxu0  ;;  %v8655_v25 = vld [vmem:[#allocation2 + $0xd1] sm:$0xff] }
  0xf8   :  { %888 = vst.msk [vmem:[#allocation2 + $0x111] sm:$0xff] %vm711_vm1, %v661_v15  ;;  %v662_v20 = vmax.f32 %v6883_v19, 0.0  ;;  %v443_v21 = vpop.f32.mrb[15].mxu0  ;;  %v8651_v22 = vld [vmem:[#allocation2 + $0xb1] sm:$0xff] }
  0xf9   :  { %886 = vst.msk [vmem:[#allocation2 + $0xf1] sm:$0xff] %vm711_vm1, %v659_v18  ;;  %v660_v23 = vmax.f32 %v443_v21, 0.0  ;;  %v1104_v24 = vpack.c.bf16 %v8651_v22, %v1044_v17  ;;  %v8657_v26 = vld [vmem:[#allocation2 + $0xe1] sm:$0xff] }
  0xfa   :  { %889 = vst.msk [vmem:[#allocation2 + $0x121] sm:$0xff] %vm711_vm1, %v662_v20  ;;  %v8660_v28 = vld [vmem:[#allocation2 + $0xc1] sm:$0xff] }
  0xfb   :  { %887 = vst.msk [vmem:[#allocation2 + $0x101] sm:$0xff] %vm711_vm1, %v660_v23  ;;  %6942 = vmatprep.mubr.msk.bf16.mxu0 %vm711_vm1, %v1104_v24  ;;  %v1105_v30 = vpack.c.bf16 %v8655_v25, %v8660_v28 }
  0xfd   :  { %v6886_v32 = vpop.f32.mrb[16].mxu0  ;;  %6943 = vmatmul.mubr.msk.bf16.gmra.mrb[72].mxu0 %vm711_vm1, %v1105_v30 }
  0xfe   :  { %v665_v33 = vmax.f32 %v6886_v32, 0.0  ;;  %v456_v34 = vpop.f32.mrb[17].mxu0 }
  0xff   :  { %v663_v35 = vmax.f32 %v456_v34, 0.0  ;;  %v6887_v36 = vpop.f32.mrb[18].mxu0  ;;  %v8680_v44 = vld [vmem:[#allocation2 + $0x111] sm:$0xff] }
 0x100   :  { %892 = vst.msk [vmem:[#allocation2 + $0x171] sm:$0xff] %vm711_vm1, %v665_v33  ;;  %v666_v38 = vmax.f32 %v6887_v36, 0.0  ;;  %v459_v39 = vpop.f32.mrb[19].mxu0  ;;  %v8672_v40 = vld [vmem:[#allocation2 + $0xf1] sm:$0xff] }
 0x101   :  { %890 = vst.msk [vmem:[#allocation2 + $0x151] sm:$0xff] %vm711_vm1, %v663_v35  ;;  %v664_v41 = vmax.f32 %v459_v39, 0.0  ;;  %v1106_v42 = vpack.c.bf16 %v8672_v40, %v8657_v26  ;;  %v1060_v35 = vld [vmem:[#allocation2 + $0x1e1] sm:$0xff] }
 0x102   :  { %893 = vst.msk [vmem:[#allocation2 + $0x181] sm:$0xff] %vm711_vm1, %v666_v38  ;;  %v8678_v43 = vld [vmem:[#allocation2 + $0x101] sm:$0xff] }
 0x103   :  { %891 = vst.msk [vmem:[#allocation2 + $0x161] sm:$0xff] %vm711_vm1, %v664_v41  ;;  %6946 = vmatprep.mubr.msk.bf16.mxu0 %vm711_vm1, %v1106_v42  ;;  %v1107_v45 = vpack.c.bf16 %v8680_v44, %v8678_v43 }
 0x105   :  { %v6890_v48 = vpop.f32.mrb[20].mxu0  ;;  %6947 = vmatmul.mubr.msk.bf16.gmra.mrb[76].mxu0 %vm711_vm1, %v1107_v45 }
 0x106   :  { %v669_v49 = vmax.f32 %v6890_v48, 0.0  ;;  %v472_v50 = vpop.f32.mrb[21].mxu0 }
 0x107   :  { %v667_v52 = vmax.f32 %v472_v50, 0.0  ;;  %v6891_v53 = vpop.f32.mrb[22].mxu0  ;;  %v8694_v1 = vld [vmem:[#allocation2 + $0x171] sm:$0xff] }
 0x108   :  { %896 = vst.msk [vmem:[#allocation2 + $0x1b1] sm:$0xff] %vm711_vm1, %v669_v49  ;;  %v670_v54 = vmax.f32 %v6891_v53, 0.0  ;;  %v475_v56 = vpop.f32.mrb[23].mxu0  ;;  %v8690_v57 = vld [vmem:[#allocation2 + $0x151] sm:$0xff] }
 0x109   :  { %894 = vst.msk [vmem:[#allocation2 + $0x191] sm:$0xff] %vm711_vm1, %v667_v52  ;;  %v668_v62 = vmax.f32 %v475_v56, 0.0  ;;  %v1108_v0 = vpack.c.bf16 %v8690_v57, %v1052_v51  ;;  %v8696_v2 = vld [vmem:[#allocation2 + $0x181] sm:$0xff] }
 0x10a   :  { %897 = vst.msk [vmem:[#allocation2 + $0x1c1] sm:$0xff] %vm711_vm1, %v670_v54  ;;  %v8699_v3 = vld [vmem:[#allocation2 + $0x161] sm:$0xff] }
 0x10b   :  { %895 = vst.msk [vmem:[#allocation2 + $0x1a1] sm:$0xff] %vm711_vm1, %v668_v62  ;;  %6950 = vmatprep.mubr.msk.bf16.mxu0 %vm711_vm1, %v1108_v0  ;;  %v1109_v5 = vpack.c.bf16 %v8694_v1, %v8699_v3 }
 0x10d   :  { %v6894_v8 = vpop.f32.mrb[24].mxu0  ;;  %6951 = vmatmul.mubr.msk.bf16.gmra.mrb[80].mxu0 %vm711_vm1, %v1109_v5 }
 0x10e   :  { %v673_v9 = vmax.f32 %v6894_v8, 0.0  ;;  %v488_v12 = vpop.f32.mrb[25].mxu0 }
 0x10f   :  { %v671_v14 = vmax.f32 %v488_v12, 0.0  ;;  %v6895_v15 = vpop.f32.mrb[26].mxu0  ;;  %v8719_v23 = vld [vmem:[#allocation2 + $0x1b1] sm:$0xff] }
 0x110   :  { %900 = vst.msk [vmem:[#allocation2 + $0x211] sm:$0xff] %vm711_vm1, %v673_v9  ;;  %v674_v16 = vmax.f32 %v6895_v15, 0.0  ;;  %v491_v17 = vpop.f32.mrb[27].mxu0  ;;  %v8711_v18 = vld [vmem:[#allocation2 + $0x191] sm:$0xff] }
 0x111   :  { %898 = vst.msk [vmem:[#allocation2 + $0x1f1] sm:$0xff] %vm711_vm1, %v671_v14  ;;  %v672_v19 = vmax.f32 %v491_v17, 0.0  ;;  %v1110_v20 = vpack.c.bf16 %v8711_v18, %v8696_v2 }
 0x112   :  { %901 = vst.msk [vmem:[#allocation2 + $0x221] sm:$0xff] %vm711_vm1, %v674_v16  ;;  %v8717_v21 = vld [vmem:[#allocation2 + $0x1a1] sm:$0xff] }
 0x113   :  { %899 = vst.msk [vmem:[#allocation2 + $0x201] sm:$0xff] %vm711_vm1, %v672_v19  ;;  %6954 = vmatprep.mubr.msk.bf16.mxu0 %vm711_vm1, %v1110_v20  ;;  %v1111_v24 = vpack.c.bf16 %v8719_v23, %v8717_v21 }
 0x115   :  { %v6898_v32 = vpop.f32.mrb[28].mxu0  ;;  %6955 = vmatmul.mubr.msk.bf16.gmra.mrb[84].mxu0 %vm711_vm1, %v1111_v24 }
 0x116   :  { %v677_v33 = vmax.f32 %v6898_v32, 0.0  ;;  %v504_v34 = vpop.f32.mrb[29].mxu0 }
 0x117   :  { %v675_v36 = vmax.f32 %v504_v34, 0.0  ;;  %v6899_v38 = vpop.f32.mrb[30].mxu0  ;;  %v8733_v49 = vld [vmem:[#allocation2 + $0x211] sm:$0xff] }
 0x118   :  { %904 = vst.msk [vmem:[#allocation2 + $0x251] sm:$0xff] %vm711_vm1, %v677_v33  ;;  %v678_v39 = vmax.f32 %v6899_v38, 0.0  ;;  %v507_v41 = vpop.f32.mrb[31].mxu0  ;;  %v8729_v42 = vld [vmem:[#allocation2 + $0x1f1] sm:$0xff] }
 0x119   :  { %902 = vst.msk [vmem:[#allocation2 + $0x231] sm:$0xff] %vm711_vm1, %v675_v36  ;;  %v676_v45 = vmax.f32 %v507_v41, 0.0  ;;  %v1112_v48 = vpack.c.bf16 %v8729_v42, %v1060_v35  ;;  %v8735_v50 = vld [vmem:[#allocation2 + $0x221] sm:$0xff] }
 0x11a   :  { %905 = vst.msk [vmem:[#allocation2 + $0x261] sm:$0xff] %vm711_vm1, %v678_v39  ;;  %v8738_v51 = vld [vmem:[#allocation2 + $0x201] sm:$0xff] }
 0x11b   :  { %903 = vst.msk [vmem:[#allocation2 + $0x241] sm:$0xff] %vm711_vm1, %v676_v45  ;;  %6958 = vmatprep.mubr.msk.bf16.mxu0 %vm711_vm1, %v1112_v48  ;;  %v1113_v53 = vpack.c.bf16 %v8733_v49, %v8738_v51  ;;  %v1068_v35 = vld [vmem:[#allocation2 + $0x281] sm:$0xff] }
 0x11d   :  { %v6902_v56 = vpop.f32.mrb[32].mxu0  ;;  %6959 = vmatmul.mubr.msk.bf16.gmra.mrb[88].mxu0 %vm711_vm1, %v1113_v53 }
 0x11e   :  { %v681_v62 = vmax.f32 %v6902_v56, 0.0  ;;  %v520_v0 = vpop.f32.mrb[33].mxu0 }
 0x11f   :  { %v679_v5 = vmax.f32 %v520_v0, 0.0  ;;  %v6903_v8 = vpop.f32.mrb[34].mxu0  ;;  %v8758_v19 = vld [vmem:[#allocation2 + $0x251] sm:$0xff] }
 0x120   :  { %908 = vst.msk [vmem:[#allocation2 + $0x2b1] sm:$0xff] %vm711_vm1, %v681_v62  ;;  %v682_v9 = vmax.f32 %v6903_v8, 0.0  ;;  %v523_v12 = vpop.f32.mrb[35].mxu0  ;;  %v8750_v14 = vld [vmem:[#allocation2 + $0x231] sm:$0xff] }
 0x121   :  { %906 = vst.msk [vmem:[#allocation2 + $0x291] sm:$0xff] %vm711_vm1, %v679_v5  ;;  %v680_v15 = vmax.f32 %v523_v12, 0.0  ;;  %v1114_v16 = vpack.c.bf16 %v8750_v14, %v8735_v50 }
 0x122   :  { %909 = vst.msk [vmem:[#allocation2 + $0x2c1] sm:$0xff] %vm711_vm1, %v682_v9  ;;  %v8756_v17 = vld [vmem:[#allocation2 + $0x241] sm:$0xff] }
 0x123   :  { %907 = vst.msk [vmem:[#allocation2 + $0x2a1] sm:$0xff] %vm711_vm1, %v680_v15  ;;  %6962 = vmatprep.mubr.msk.bf16.mxu0 %vm711_vm1, %v1114_v16  ;;  %v1115_v20 = vpack.c.bf16 %v8758_v19, %v8756_v17 }
 0x125   :  { %v6906_v32 = vpop.f32.mrb[36].mxu0  ;;  %6963 = vmatmul.mubr.msk.bf16.gmra.mrb[92].mxu0 %vm711_vm1, %v1115_v20 }
 0x126   :  { %v685_v33 = vmax.f32 %v6906_v32, 0.0  ;;  %v536_v34 = vpop.f32.mrb[37].mxu0 }
 0x127   :  { %v683_v36 = vmax.f32 %v536_v34, 0.0  ;;  %v6907_v38 = vpop.f32.mrb[38].mxu0  ;;  %v8772_v56 = vld [vmem:[#allocation2 + $0x2b1] sm:$0xff] }
 0x128   :  { %912 = vst.msk [vmem:[#allocation2 + $0x2f1] sm:$0xff] %vm711_vm1, %v685_v33  ;;  %v686_v39 = vmax.f32 %v6907_v38, 0.0  ;;  %v539_v41 = vpop.f32.mrb[39].mxu0  ;;  %v8768_v45 = vld [vmem:[#allocation2 + $0x291] sm:$0xff] }
 0x129   :  { %910 = vst.msk [vmem:[#allocation2 + $0x2d1] sm:$0xff] %vm711_vm1, %v683_v36  ;;  %v684_v48 = vmax.f32 %v539_v41, 0.0  ;;  %v1116_v53 = vpack.c.bf16 %v8768_v45, %v1068_v35  ;;  %v8774_v62 = vld [vmem:[#allocation2 + $0x2c1] sm:$0xff] }
 0x12a   :  { %913 = vst.msk [vmem:[#allocation2 + $0x301] sm:$0xff] %vm711_vm1, %v686_v39  ;;  %v8777_v0 = vld [vmem:[#allocation2 + $0x2a1] sm:$0xff] }
 0x12b   :  { %911 = vst.msk [vmem:[#allocation2 + $0x2e1] sm:$0xff] %vm711_vm1, %v684_v48  ;;  %6966 = vmatprep.mubr.msk.bf16.mxu0 %vm711_vm1, %v1116_v53  ;;  %v1117_v8 = vpack.c.bf16 %v8772_v56, %v8777_v0 }
 0x12d   :  { %v6910_v12 = vpop.f32.mrb[40].mxu0  ;;  %6967 = vmatmul.mubr.msk.bf16.gmra.mrb[96].mxu0 %vm711_vm1, %v1117_v8 }
 0x12e   :  { %v689_v15 = vmax.f32 %v6910_v12, 0.0  ;;  %v552_v16 = vpop.f32.mrb[41].mxu0 }
 0x12f   :  { %v687_v20 = vmax.f32 %v552_v16, 0.0  ;;  %v6911_v32 = vpop.f32.mrb[42].mxu0  ;;  %v8797_v41 = vld [vmem:[#allocation2 + $0x2f1] sm:$0xff]  ;;  %v1076_v16 = vld [vmem:[#allocation2 + $0x321] sm:$0xff] }
 0x130   :  { %916 = vst.msk [vmem:[#allocation2 + $0x351] sm:$0xff] %vm711_vm1, %v689_v15  ;;  %v690_v33 = vmax.f32 %v6911_v32, 0.0  ;;  %v555_v34 = vpop.f32.mrb[43].mxu0  ;;  %v8789_v35 = vld [vmem:[#allocation2 + $0x2d1] sm:$0xff] }
 0x131   :  { %914 = vst.msk [vmem:[#allocation2 + $0x331] sm:$0xff] %vm711_vm1, %v687_v20  ;;  %v688_v36 = vmax.f32 %v555_v34, 0.0  ;;  %v1118_v38 = vpack.c.bf16 %v8789_v35, %v8774_v62 }
 0x132   :  { %917 = vst.msk [vmem:[#allocation2 + $0x361] sm:$0xff] %vm711_vm1, %v690_v33  ;;  %v8795_v39 = vld [vmem:[#allocation2 + $0x2e1] sm:$0xff] }
 0x133   :  { %915 = vst.msk [vmem:[#allocation2 + $0x341] sm:$0xff] %vm711_vm1, %v688_v36  ;;  %6970 = vmatprep.mubr.msk.bf16.mxu0 %vm711_vm1, %v1118_v38  ;;  %v1119_v48 = vpack.c.bf16 %v8797_v41, %v8795_v39 }
 0x135   :  { %v6914_v8 = vpop.f32.mrb[44].mxu0  ;;  %6971 = vmatmul.mubr.msk.bf16.gmra.mrb[100].mxu0 %vm711_vm1, %v1119_v48 }
 0x136   :  { %v693_v12 = vmax.f32 %v6914_v8, 0.0  ;;  %v568_v15 = vpop.f32.mrb[45].mxu0 }
 0x137   :  { %v691_v20 = vmax.f32 %v568_v15, 0.0  ;;  %v6915_v32 = vpop.f32.mrb[46].mxu0  ;;  %v8811_v53 = vld [vmem:[#allocation2 + $0x351] sm:$0xff] }
 0x138   :  { %920 = vst.msk [vmem:[#allocation2 + $0x391] sm:$0xff] %vm711_vm1, %v693_v12  ;;  %v694_v33 = vmax.f32 %v6915_v32, 0.0  ;;  %v571_v34 = vpop.f32.mrb[47].mxu0  ;;  %v8807_v36 = vld [vmem:[#allocation2 + $0x331] sm:$0xff] }
 0x139   :  { %918 = vst.msk [vmem:[#allocation2 + $0x371] sm:$0xff] %vm711_vm1, %v691_v20  ;;  %v692_v38 = vmax.f32 %v571_v34, 0.0  ;;  %v1120_v27 = vpack.c.bf16 %v8807_v36, %v1076_v16  ;;  %v8813_v5 = vld [vmem:[#allocation2 + $0x361] sm:$0xff] }
 0x13a   :  { %921 = vst.msk [vmem:[#allocation2 + $0x3a1] sm:$0xff] %vm711_vm1, %v694_v33  ;;  %v8816_v48 = vld [vmem:[#allocation2 + $0x341] sm:$0xff] }
 0x13b   :  { %919 = vst.msk [vmem:[#allocation2 + $0x381] sm:$0xff] %vm711_vm1, %v692_v38  ;;  %6974 = vmatprep.mubr.msk.bf16.mxu0 %vm711_vm1, %v1120_v27  ;;  %v1121_v12 = vpack.c.bf16 %v8811_v53, %v8816_v48 }
 0x13d   :  { %v6918_v16 = vpop.f32.mrb[48].mxu0  ;;  %6975 = vmatmul.mubr.msk.bf16.gmra.mrb[104].mxu0 %vm711_vm1, %v1121_v12 }
 0x13e   :  { %v697_v20 = vmax.f32 %v6918_v16, 0.0  ;;  %v584_v32 = vpop.f32.mrb[49].mxu0 }
 0x13f   :  { %v695_v33 = vmax.f32 %v584_v32, 0.0  ;;  %v6919_v34 = vpop.f32.mrb[50].mxu0  ;;  %v8836_v12 = vld [vmem:[#allocation2 + $0x391] sm:$0xff] }
 0x140   :  { %924 = vst.msk [vmem:[#allocation2 + $0x3f1] sm:$0xff] %vm711_vm1, %v697_v20  ;;  %v698_v8 = vmax.f32 %v6919_v34, 0.0  ;;  %v587_v9 = vpop.f32.mrb[51].mxu0  ;;  %v8828_v38 = vld [vmem:[#allocation2 + $0x371] sm:$0xff] }
 0x141   :  { %922 = vst.msk [vmem:[#allocation2 + $0x3d1] sm:$0xff] %vm711_vm1, %v695_v33  ;;  %v696_v27 = vmax.f32 %v587_v9, 0.0  ;;  %v1122_v24 = vpack.c.bf16 %v8828_v38, %v8813_v5 }
 0x142   :  { %925 = vst.msk [vmem:[#allocation2 + $0x401] sm:$0xff] %vm711_vm1, %v698_v8  ;;  %v8834_v15 = vld [vmem:[#allocation2 + $0x381] sm:$0xff] }
 0x143   :  { %923 = vst.msk [vmem:[#allocation2 + $0x3e1] sm:$0xff] %vm711_vm1, %v696_v27  ;;  %6978 = vmatprep.mubr.msk.bf16.mxu0 %vm711_vm1, %v1122_v24  ;;  %v1123_v16 = vpack.c.bf16 %v8836_v12, %v8834_v15  ;;  %v1084_v8 = vld [vmem:[#allocation2 + $0x3c1] sm:$0xff] }
 0x145   :  { %v6922_v9 = vpop.f32.mrb[52].mxu0  ;;  %6979 = vmatmul.mubr.msk.bf16.gmra.mrb[108].mxu0 %vm711_vm1, %v1123_v16 }
 0x146   :  { %v701_v32 = vmax.f32 %v6922_v9, 0.0  ;;  %v600_v33 = vpop.f32.mrb[53].mxu0 }
 0x147   :  { %v699_v34 = vmax.f32 %v600_v33, 0.0  ;;  %v6923_v52 = vpop.f32.mrb[54].mxu0  ;;  %v8850_v20 = vld [vmem:[#allocation2 + $0x3f1] sm:$0xff] }
 0x148   :  { %928 = vst.msk [vmem:[#allocation2 + $0x431] sm:$0xff] %vm711_vm1, %v701_v32  ;;  %v702_v54 = vmax.f32 %v6923_v52, 0.0  ;;  %v603_v27 = vpop.f32.mrb[55].mxu0  ;;  %v8846_v30 = vld [vmem:[#allocation2 + $0x3d1] sm:$0xff]  ;;  %9590 = vst [vmem:[#allocation3_spill] sm:$0xff] %v8850_v20 }
 0x149   :  { %926 = vst.msk [vmem:[#allocation2 + $0x411] sm:$0xff] %vm711_vm1, %v699_v34  ;;  %v700_v24 = vmax.f32 %v603_v27, 0.0  ;;  %v1124_v4 = vpack.c.bf16 %v8846_v30, %v1084_v8  ;;  %v8852_v6 = vld [vmem:[#allocation2 + $0x401] sm:$0xff] }
 0x14a   :  { %929 = vst.msk [vmem:[#allocation2 + $0x441] sm:$0xff] %vm711_vm1, %v702_v54  ;;  %v8855_v16 = vld [vmem:[#allocation2 + $0x3e1] sm:$0xff] }
 0x14b   :  { %927 = vst.msk [vmem:[#allocation2 + $0x421] sm:$0xff] %vm711_vm1, %v700_v24  ;;  %6982 = vmatprep.mubr.msk.bf16.mxu0 %vm711_vm1, %v1124_v4  ;;  %v1125_v52 = vpack.c.bf16 %v8850_v20, %v8855_v16  ;;  %v8088_v20 = vld [vmem:[%s9576_s2 + $0x28] sm:$0xff]  }
 0x14d   :  { %v6926_v33 = vpop.f32.mrb[56].mxu0  ;;  %6983 = vmatmul.mubr.msk.bf16.gmra.mrb[112].mxu0 %vm711_vm1, %v1125_v52 }
 0x14e   :  { %v705_v8 = vmax.f32 %v6926_v33, 0.0  ;;  %v616_v54 = vpop.f32.mrb[57].mxu0 }
 0x14f   :  { %v703_v34 = vmax.f32 %v616_v54, 0.0  ;;  %v6927_v27 = vpop.f32.mrb[58].mxu0  ;;  %v8875_v52 = vld [vmem:[#allocation2 + $0x431] sm:$0xff] }
 0x150   :  { %932 = vst.msk [vmem:[#allocation2 + $0x491] sm:$0xff] %vm711_vm1, %v705_v8  ;;  %v706_v9 = vmax.f32 %v6927_v27, 0.0  ;;  %v619_v47 = vpop.f32.mrb[59].mxu0  ;;  %v8867_v24 = vld [vmem:[#allocation2 + $0x411] sm:$0xff]  ;;  %9593 = vst [vmem:[#allocation6_spill] sm:$0xff] %v8875_v52 }
 0x151   :  { %9591 = vst [vmem:[#allocation4_spill] sm:$0xff] %v8867_v24  ;;  %930 = vst.msk [vmem:[#allocation2 + $0x471] sm:$0xff] %vm711_vm1, %v703_v34  ;;  %v704_v4 = vmax.f32 %v619_v47, 0.0  ;;  %v1126_v29 = vpack.c.bf16 %v8867_v24, %v8852_v6 }
 0x152   :  { %933 = vst.msk [vmem:[#allocation2 + $0x4a1] sm:$0xff] %vm711_vm1, %v706_v9  ;;  %v8873_v32 = vld [vmem:[#allocation2 + $0x421] sm:$0xff] }
 0x153   :  { %9592 = vst [vmem:[#allocation5_spill] sm:$0xff] %v8873_v32  ;;  %931 = vst.msk [vmem:[#allocation2 + $0x481] sm:$0xff] %vm711_vm1, %v704_v4  ;;  %6986 = vmatprep.mubr.msk.bf16.mxu0 %vm711_vm1, %v1126_v29  ;;  %v1127_v33 = vpack.c.bf16 %v8875_v52, %v8873_v32  ;;  %v1092_v9 = vld [vmem:[#allocation2 + $0x461] sm:$0xff] }
 0x155   :  { %v6930_v47 = vpop.f32.mrb[60].mxu0  ;;  %6987 = vmatmul.mubr.msk.bf16.gmra.mrb[116].mxu0 %vm711_vm1, %v1127_v33 }
 0x156   :  { %v709_v54 = vmax.f32 %v6930_v47, 0.0  ;;  %v632_v34 = vpop.f32.mrb[61].mxu0 }
 0x157   :  { %v707_v27 = vmax.f32 %v632_v34, 0.0  ;;  %v6931_v31 = vpop.f32.mrb[62].mxu0  ;;  %v8889_v8 = vld [vmem:[#allocation2 + $0x491] sm:$0xff] }
 0x158   :  { %936 = vst.msk [vmem:[#allocation2 + $0x4d1] sm:$0xff] %vm711_vm1, %v709_v54  ;;  %v710_v13 = vmax.f32 %v6931_v31, 0.0  ;;  %v635_v4 = vpop.f32.mrb[63].mxu0  ;;  %v8885_v61 = vld [vmem:[#allocation2 + $0x471] sm:$0xff]  ;;  %9595 = vst [vmem:[#allocation8_spill] sm:$0xff] %v8889_v8 }
 0x159   :  { %9594 = vst [vmem:[#allocation7_spill] sm:$0xff] %v8885_v61  ;;  %934 = vst.msk [vmem:[#allocation2 + $0x4b1] sm:$0xff] %vm711_vm1, %v707_v27  ;;  %v708_v29 = vmax.f32 %v635_v4, 0.0  ;;  %v1128_v63 = vpack.c.bf16 %v8885_v61, %v1092_v9  ;;  %v8891_v52 = vld [vmem:[#allocation2 + $0x4a1] sm:$0xff]  ;;  %v939_v9 = vld [vmem:[#allocation2 + $0x10] sm:$0xff] }
 0x15a   :  { %9596 = vst [vmem:[#allocation9_spill] sm:$0xff] %v8891_v52  ;;  %937 = vst.msk [vmem:[#allocation2 + $0x4e1] sm:$0xff] %vm711_vm1, %v710_v13  ;;  %v8894_v33 = vld [vmem:[#allocation2 + $0x481] sm:$0xff] }
 0x15b   :  { %9597 = vst [vmem:[#allocation10_spill] sm:$0xff] %v8894_v33  ;;  %935 = vst.msk [vmem:[#allocation2 + $0x4c1] sm:$0xff] %vm711_vm1, %v708_v29  ;;  %6990 = vmatprep.mubr.msk.bf16.mxu0 %vm711_vm1, %v1128_v63  ;;  %v1129_v31 = vpack.c.bf16 %v8889_v8, %v8894_v33  ;;  %v938_v13 = vld [vmem:[#allocation2] sm:$0xff] }
 0x15c   :  { %v1002_v33 = vpack.c.bf16 %v939_v9, %v938_v13  ;;  %v8089_v13 = vld [vmem:[%s9576_s2 + $0x10] sm:$0xff]   ;;  %v940_v9 = vld [vmem:[#allocation2 + $0x20] sm:$0xff] }
 0x15d   :  { %6991 = vmatmul.mubr.msk.bf16.gmra.mrb[120].mxu0 %vm711_vm1, %v1129_v31  ;;  %7064 = vmatprep.subr.bf16.mxu0 %v8089_v13 }
 0x15f   :  { %v8909_v4 = vld [vmem:[#allocation2 + $0x4d1] sm:$0xff] }
 0x160   :  { %v8905_v34 = vld [vmem:[#allocation2 + $0x4b1] sm:$0xff] }
 0x161   :  { %v1130_v27 = vpack.c.bf16 %v8905_v34, %v8891_v52  ;;  %v8911_v29 = vld [vmem:[#allocation2 + $0x4d0] sm:$0xff]  ;;  %v2534_v63 = vld [vmem:[#allocation2 + $0x4e0] sm:$0xff] }
 0x162   :  { %v8913_v47 = vld [vmem:[#allocation2 + $0x4c1] sm:$0xff]  ;;  %v8915_v8 = vld [vmem:[#allocation2 + $0x4b0] sm:$0xff]  ;;  %v2566_v32 = vpack.c.bf16 %v2534_v63, %v8911_v29 }
 0x163   :  { %v8917_v24 = vld [vmem:[#allocation2 + $0x4c0] sm:$0xff]  ;;  %6994 = vmatprep.mubr.msk.bf16.mxu0 %vm711_vm1, %v1130_v27  ;;  %v1131_v31 = vpack.c.bf16 %v8909_v4, %v8913_v47  ;;  %v3119_v52 = vpack.c.bf16 %v8913_v47, %v8905_v34  ;;  %v9598_v27 = vpack.c.bf16 %v8621_v60, %v8612_v55  ;;  %v943_v63 = vld [vmem:[#allocation2 + $0x50] sm:$0xff]  ;;  %v9599_v55 = vpack.c.bf16 %v8618_v59, %v8616_v58 }
 0x164   :  { %v2565_v54 = vpack.c.bf16 %v8917_v24, %v8915_v8  ;;  %v9600_v60 = vpack.c.bf16 %v8639_v10, %v8633_v7  ;;  %v9601_v7 = vpack.c.bf16 %v8660_v28, %v8651_v22  ;;  %v948_v10 = vld [vmem:[#allocation2 + $0xc0] sm:$0xff]  ;;  %v9603_v22 = vpack.c.bf16 %v8678_v43, %v8672_v40  ;;  %v959_v40 = vld [vmem:[#allocation2 + $0x190] sm:$0xff] }
 0x165   :  { %6995 = vmatmul.mubr.msk.bf16.gmra.mrb[124].mxu0 %vm711_vm1, %v1131_v31  ;;  %v952_v28 = vld [vmem:[#allocation2 + $0x100] sm:$0xff]  ;;  %v957_v43 = vld [vmem:[#allocation2 + $0x170] sm:$0xff] }
 0x166   :  { %7192 = vmatprep.mubr.msk.bf16.mxu1 %vm711_vm1, %v2565_v54  ;;  %7000 = vmatprep.mubr.msk.bf16.mxu0 %vm711_vm1, %v1002_v33  ;;  %v941_v54 = vld [vmem:[#allocation2 + $0x30] sm:$0xff]  ;;  %v942_v33 = vld [vmem:[#allocation2 + $0x40] sm:$0xff] }
 0x167   :  { %7193 = vmatmul.mubr.msk.bf16.vlgmr.msra.gmra.mrb[0].mxu1 %vm711_vm1, %v2566_v32  ;;  %v1003_v31 = vpack.c.bf16 %v941_v54, %v940_v9  ;;  %v1004_v61 = vpack.c.bf16 %v943_v63, %v942_v33  ;;  %v944_v32 = vld [vmem:[#allocation2 + $0x60] sm:$0xff]  ;;  %v947_v9 = vld [vmem:[#allocation2 + $0xb0] sm:$0xff] }
 0x168   :  { %7197 = vmatpush3.bf16.msra.mxu1 %v8605_v46  ;;  %7198 = vmatprep.mubr.msk.bf16.mxu1 %vm711_vm1, %v9598_v27  ;;  %v8948_v46 = vld [vmem:[%s9576_s2 + $0x30] sm:$0xff]   ;;  %v946_v27 = vld [vmem:[#allocation2 + $0xa0] sm:$0xff] }
 0x169   :  { %7262 = vmatprep.subr.bf16.mxu1 %v8088_v20  ;;  %v3032_v63 = vld [vmem:[#allocation2 + $0x81] sm:$0xff]  ;;  %v1006_v58 = vpack.c.bf16 %v947_v9, %v946_v27  ;;  %v953_v27 = vld [vmem:[#allocation2 + $0x110] sm:$0xff] }
 0x16a   :  { %v3092_v59 = vpack.c.bf16 %v3032_v63, %v8641_v11  ;;  %v9602_v11 = vpack.c.bf16 %v8657_v26, %v8655_v25  ;;  %v1009_v9 = vpack.c.bf16 %v953_v27, %v952_v28  ;;  %v9604_v25 = vpack.c.bf16 %v8699_v3, %v8690_v57  ;;  %v956_v26 = vld [vmem:[#allocation2 + $0x160] sm:$0xff]  ;;  %v969_v27 = vld [vmem:[#allocation2 + $0x250] sm:$0xff] }
 0x16b   :  { %v9606_v57 = vpack.c.bf16 %v8717_v21, %v8711_v18  ;;  %v960_v3 = vld [vmem:[#allocation2 + $0x1a0] sm:$0xff]  ;;  %v967_v18 = vld [vmem:[#allocation2 + $0x230] sm:$0xff] }
 0x16c   :  { %v965_v21 = vld [vmem:[#allocation2 + $0x210] sm:$0xff] }
 0x16d   :  { %7001 = vmatmul.mubr.msk.bf16.vlgmr.msra.gmra.mrb[64].mxu0 %vm711_vm1, %v1003_v31  ;;  %v950_v31 = vld [vmem:[#allocation2 + $0xe0] sm:$0xff]  ;;  %v1922_v47 = vld [vmem:[#allocation2 + $0x52] sm:$0xff] }
 0x16e   :  { %7004 = vmatprep.mubr.msk.bf16.mxu0 %vm711_vm1, %v1004_v61  ;;  %7065 = vmatpush3.bf16.msra.mxu0 %v8089_v13  ;;  %v945_v61 = vld [vmem:[#allocation2 + $0x70] sm:$0xff] }
 0x16f   :  { %7199 = vmatmul.mubr.msk.bf16.vlgmr.msra.gmra.mrb[4].mxu1 %vm711_vm1, %v9599_v55  ;;  %7130 = vmatprep.subr.bf16.mxu0 %v8594_v37  ;;  %v1005_v54 = vpack.c.bf16 %v945_v61, %v944_v32  ;;  %v949_v13 = vld [vmem:[#allocation2 + $0xd0] sm:$0xff]  ;;  %v954_v55 = vld [vmem:[#allocation2 + $0x140] sm:$0xff] }
 0x170   :  { %7263 = vmatpush3.bf16.msra.mxu1 %v8088_v20  ;;  %7202 = vmatprep.mubr.msk.bf16.mxu1 %vm711_vm1, %v9600_v60  ;;  %v951_v20 = vld [vmem:[#allocation2 + $0xf0] sm:$0xff]  ;;  %v1007_v37 = vpack.c.bf16 %v949_v13, %v948_v10  ;;  %v3040_v32 = vld [vmem:[#allocation2 + $0x121] sm:$0xff] }
 0x171   :  { %7328 = vmatprep.subr.bf16.mxu1 %v8948_v46  ;;  %v1008_v33 = vpack.c.bf16 %v951_v20, %v950_v31  ;;  %v955_v60 = vld [vmem:[#allocation2 + $0x150] sm:$0xff]  ;;  %v3096_v61 = vpack.c.bf16 %v3040_v32, %v8680_v44  ;;  %v9605_v44 = vpack.c.bf16 %v8696_v2, %v8694_v1  ;;  %v3048_v20 = vld [vmem:[#allocation2 + $0x1c1] sm:$0xff]  ;;  %v9607_v1 = vpack.c.bf16 %v8738_v51, %v8729_v42 }
 0x172   :  { %v1010_v63 = vpack.c.bf16 %v955_v60, %v954_v55  ;;  %v963_v10 = vld [vmem:[#allocation2 + $0x1f0] sm:$0xff]  ;;  %v964_v2 = vld [vmem:[#allocation2 + $0x200] sm:$0xff]  ;;  %v9609_v42 = vpack.c.bf16 %v8756_v17, %v8750_v14 }
 0x173   :  { %v961_v13 = vld [vmem:[#allocation2 + $0x1b0] sm:$0xff]  ;;  %v968_v51 = vld [vmem:[#allocation2 + $0x240] sm:$0xff] }
 0x174   :  { %v970_v55 = vld [vmem:[#allocation2 + $0x280] sm:$0xff]  ;;  %v971_v60 = vld [vmem:[#allocation2 + $0x290] sm:$0xff] }
 0x175   :  { %7005 = vmatmul.mubr.msk.bf16.gmra.mrb[68].mxu0 %vm711_vm1, %v1005_v54  ;;  %v1011_v54 = vpack.c.bf16 %v957_v43, %v956_v26  ;;  %v3056_v32 = vld [vmem:[#allocation2 + $0x261] sm:$0xff]  ;;  %v975_v14 = vld [vmem:[#allocation2 + $0x2d0] sm:$0xff] }
 0x176   :  { %7008 = vmatprep.mubr.msk.bf16.mxu0 %vm711_vm1, %v1006_v58  ;;  %v958_v58 = vld [vmem:[#allocation2 + $0x180] sm:$0xff]  ;;  %v973_v17 = vld [vmem:[#allocation2 + $0x2b0] sm:$0xff] }
 0x177   :  { %7203 = vmatmul.mubr.msk.bf16.gmra.mrb[8].mxu1 %vm711_vm1, %v3092_v59  ;;  %v1012_v59 = vpack.c.bf16 %v959_v40, %v958_v58  ;;  %v974_v26 = vld [vmem:[#allocation2 + $0x2c0] sm:$0xff]  ;;  %v1920_v34 = vld [vmem:[#allocation2 + $0x32] sm:$0xff] }
 0x178   :  { %7206 = vmatprep.mubr.msk.bf16.mxu1 %vm711_vm1, %v9601_v7  ;;  %v962_v7 = vld [vmem:[#allocation2 + $0x1e0] sm:$0xff]  ;;  %v1020_v40 = vpack.c.bf16 %v975_v14, %v974_v26 }
 0x179   :  { %v1014_v31 = vpack.c.bf16 %v963_v10, %v962_v7  ;;  %v978_v43 = vld [vmem:[#allocation2 + $0x320] sm:$0xff] }
 0x17a   :  { %v3064_v58 = vld [vmem:[#allocation2 + $0x301] sm:$0xff] }
 0x17b   :  { %v982_v10 = vld [vmem:[#allocation2 + $0x360] sm:$0xff] }
 0x17c   :  { %v996_v14 = vld [vmem:[#allocation2 + $0x480] sm:$0xff] }
 0x17d   :  { %7009 = vmatmul.mubr.msk.bf16.gmra.mrb[72].mxu0 %vm711_vm1, %v1007_v37  ;;  %v1013_v37 = vpack.c.bf16 %v961_v13, %v960_v3  ;;  %v3108_v3 = vpack.c.bf16 %v3064_v58, %v8797_v41  ;;  %v9614_v41 = vpack.c.bf16 %v8813_v5, %v8811_v53  ;;  %v986_v13 = vld [vmem:[#allocation2 + $0x3c0] sm:$0xff]  ;;  %v9616_v5 = vpack.c.bf16 %v8855_v16, %v8846_v30 }
 0x17e   :  { %7012 = vmatprep.mubr.msk.bf16.mxu0 %vm711_vm1, %v1008_v33  ;;  %v3100_v33 = vpack.c.bf16 %v3048_v20, %v8719_v23  ;;  %v9608_v23 = vpack.c.bf16 %v8735_v50, %v8733_v49  ;;  %v9610_v49 = vpack.c.bf16 %v8777_v0, %v8768_v45  ;;  %v972_v50 = vld [vmem:[#allocation2 + $0x2a0] sm:$0xff]  ;;  %v9612_v45 = vpack.c.bf16 %v8795_v39, %v8789_v35  ;;  %v983_v35 = vld [vmem:[#allocation2 + $0x370] sm:$0xff] }
 0x17f   :  { %7207 = vmatmul.mubr.msk.bf16.gmra.mrb[12].mxu1 %vm711_vm1, %v9602_v11  ;;  %v1015_v11 = vpack.c.bf16 %v965_v21, %v964_v2  ;;  %v976_v0 = vld [vmem:[#allocation2 + $0x2e0] sm:$0xff]  ;;  %v981_v39 = vld [vmem:[#allocation2 + $0x350] sm:$0xff]  ;;  %v1024_v20 = vpack.c.bf16 %v983_v35, %v982_v10 }
 0x180   :  { %7210 = vmatprep.mubr.msk.bf16.mxu1 %vm711_vm1, %v9603_v22  ;;  %v966_v22 = vld [vmem:[#allocation2 + $0x220] sm:$0xff]  ;;  %v1926_v10 = vld [vmem:[#allocation2 + $0xb2] sm:$0xff] }
 0x181   :  { %v1016_v28 = vpack.c.bf16 %v967_v18, %v966_v22  ;;  %v988_v53 = vld [vmem:[#allocation2 + $0x3e0] sm:$0xff] }
 0x182   :  { %v992_v16 = vld [vmem:[#allocation2 + $0x420] sm:$0xff] }
 0x183   :  { %v998_v26 = vld [vmem:[#allocation2 + $0x4a0] sm:$0xff] }
 0x184   :  { %v3088_v58 = vld [vmem:[#allocation2 + $0x4e1] sm:$0xff] }
 0x185   :  { %7013 = vmatmul.mubr.msk.bf16.gmra.mrb[76].mxu0 %vm711_vm1, %v1009_v9  ;;  %v1017_v9 = vpack.c.bf16 %v969_v27, %v968_v51  ;;  %v994_v51 = vld [vmem:[#allocation2 + $0x460] sm:$0xff] }
 0x186   :  { %7016 = vmatprep.mubr.msk.bf16.mxu0 %vm711_vm1, %v1010_v63  ;;  %v1018_v63 = vpack.c.bf16 %v971_v60, %v970_v55  ;;  %v995_v55 = vld [vmem:[#allocation2 + $0x470] sm:$0xff]  ;;  %v3080_v60 = vld [vmem:[#allocation2 + $0x441] sm:$0xff] }
 0x187   :  { %7211 = vmatmul.mubr.msk.bf16.gmra.mrb[16].mxu1 %vm711_vm1, %v3096_v61  ;;  %v3104_v61 = vpack.c.bf16 %v3056_v32, %v8758_v19  ;;  %v9611_v19 = vpack.c.bf16 %v8774_v62, %v8772_v56  ;;  %v9613_v56 = vpack.c.bf16 %v8816_v48, %v8807_v36  ;;  %v980_v62 = vld [vmem:[#allocation2 + $0x340] sm:$0xff]  ;;  %v9615_v36 = vpack.c.bf16 %v8834_v15, %v8828_v38  ;;  %v991_v15 = vld [vmem:[#allocation2 + $0x410] sm:$0xff] }
 0x188   :  { %7214 = vmatprep.mubr.msk.bf16.mxu1 %vm711_vm1, %v9604_v25  ;;  %v1019_v25 = vpack.c.bf16 %v973_v17, %v972_v50  ;;  %v1023_v7 = vpack.c.bf16 %v981_v39, %v980_v62  ;;  %v984_v48 = vld [vmem:[#allocation2 + $0x380] sm:$0xff]  ;;  %v989_v38 = vld [vmem:[#allocation2 + $0x3f0] sm:$0xff] }
 0x189   :  { %v1027_v21 = vpack.c.bf16 %v989_v38, %v988_v53  ;;  %v993_v32 = vld [vmem:[#allocation2 + $0x430] sm:$0xff] }
 0x18a   :  { %v1029_v27 = vpack.c.bf16 %v993_v32, %v992_v16  ;;  %v997_v17 = vld [vmem:[#allocation2 + $0x490] sm:$0xff]  ;;  %v3600_v32 = vld [vmem:[#allocation2 + $0x1a2] sm:$0xff] }
 0x18d   :  { %7017 = vmatmul.mubr.msk.bf16.gmra.mrb[80].mxu0 %vm711_vm1, %v1011_v54  ;;  %v979_v54 = vld [vmem:[#allocation2 + $0x330] sm:$0xff] }
 0x18e   :  { %7020 = vmatprep.mubr.msk.bf16.mxu0 %vm711_vm1, %v1012_v59  ;;  %v977_v59 = vld [vmem:[#allocation2 + $0x2f0] sm:$0xff] }
 0x18f   :  { %7215 = vmatmul.mubr.msk.bf16.gmra.mrb[20].mxu1 %vm711_vm1, %v9605_v44  ;;  %v1021_v44 = vpack.c.bf16 %v977_v59, %v976_v0  ;;  %v3580_v59 = vld [vmem:[#allocation2 + $0x22] sm:$0xff] }
 0x190   :  { %7218 = vmatprep.mubr.msk.bf16.mxu1 %vm711_vm1, %v9606_v57  ;;  %v1022_v57 = vpack.c.bf16 %v979_v54, %v978_v43  ;;  %v1917_v43 = vld [vmem:[#allocation2 + $0x2] sm:$0xff]  ;;  %v1918_v54 = vld [vmem:[#allocation2 + $0x12] sm:$0xff]  ;;  %v1982_v62 = vpack.c.bf16 %v1920_v34, %v3580_v59 }
 0x195   :  { %7021 = vmatmul.mubr.msk.bf16.gmra.mrb[84].mxu0 %vm711_vm1, %v1013_v37  ;;  %v987_v37 = vld [vmem:[#allocation2 + $0x3d0] sm:$0xff] }
 0x196   :  { %7024 = vmatprep.mubr.msk.bf16.mxu0 %vm711_vm1, %v1014_v31  ;;  %v3072_v31 = vld [vmem:[#allocation2 + $0x3a1] sm:$0xff]  ;;  %v1026_v2 = vpack.c.bf16 %v987_v37, %v986_v13 }
 0x197   :  { %7219 = vmatmul.mubr.msk.bf16.gmra.mrb[24].mxu1 %vm711_vm1, %v3100_v33  ;;  %v985_v33 = vld [vmem:[#allocation2 + $0x390] sm:$0xff]  ;;  %v3112_v18 = vpack.c.bf16 %v3072_v31, %v8836_v12  ;;  %v9617_v12 = vld [vmem:[#allocation3_spill] sm:$0xff] }
 0x198   :  { %7222 = vmatprep.mubr.msk.bf16.mxu1 %vm711_vm1, %v9607_v1  ;;  %v1025_v1 = vpack.c.bf16 %v985_v33, %v984_v48  ;;  %v3588_v48 = vld [vmem:[#allocation2 + $0xc2] sm:$0xff] }
 0x199   :  { %v1929_v33 = vld [vmem:[#allocation2 + $0xe2] sm:$0xff] }
 0x19d   :  { %7025 = vmatmul.mubr.msk.bf16.gmra.mrb[88].mxu0 %vm711_vm1, %v1015_v11  ;;  %v990_v11 = vld [vmem:[#allocation2 + $0x400] sm:$0xff] }
 0x19e   :  { %7028 = vmatprep.mubr.msk.bf16.mxu0 %vm711_vm1, %v1016_v28  ;;  %v1028_v22 = vpack.c.bf16 %v991_v15, %v990_v11  ;;  %v9618_v28 = vpack.c.bf16 %v8852_v6, %v9617_v12  ;;  %v9623_v6 = vld [vmem:[#allocation10_spill] sm:$0xff] }
 0x19f   :  { %7223 = vmatmul.mubr.msk.bf16.gmra.mrb[28].mxu1 %vm711_vm1, %v9608_v23  ;;  %v9619_v23 = vld [vmem:[#allocation5_spill] sm:$0xff] }
 0x1a0   :  { %7226 = vmatprep.mubr.msk.bf16.mxu1 %vm711_vm1, %v9609_v42  ;;  %v9620_v42 = vld [vmem:[#allocation4_spill] sm:$0xff]  ;;  %v1934_v11 = vld [vmem:[#allocation2 + $0x152] sm:$0xff] }
 0x1a1   :  { %v9621_v30 = vpack.c.bf16 %v9619_v23, %v9620_v42  ;;  %v1932_v12 = vld [vmem:[#allocation2 + $0x112] sm:$0xff] }
 0x1a5   :  { %7029 = vmatmul.mubr.msk.bf16.gmra.mrb[92].mxu0 %vm711_vm1, %v1017_v9  ;;  %v1030_v9 = vpack.c.bf16 %v995_v55, %v994_v51  ;;  %v1937_v51 = vld [vmem:[#allocation2 + $0x182] sm:$0xff]  ;;  %v1938_v55 = vld [vmem:[#allocation2 + $0x192] sm:$0xff] }
 0x1a6   :  { %7032 = vmatprep.mubr.msk.bf16.mxu0 %vm711_vm1, %v1018_v63  ;;  %v9622_v63 = vld [vmem:[#allocation6_spill] sm:$0xff] }
 0x1a7   :  { %7227 = vmatmul.mubr.msk.bf16.gmra.mrb[32].mxu1 %vm711_vm1, %v3104_v61  ;;  %v3116_v61 = vpack.c.bf16 %v3080_v60, %v9622_v63  ;;  %v1936_v60 = vld [vmem:[#allocation2 + $0x172] sm:$0xff] }
 0x1a8   :  { %7230 = vmatprep.mubr.msk.bf16.mxu1 %vm711_vm1, %v9610_v49  ;;  %v9624_v49 = vld [vmem:[#allocation7_spill] sm:$0xff]  ;;  %v3652_v63 = vpack.c.bf16 %v1937_v51, %v1936_v60 }
 0x1a9   :  { %v9625_v50 = vpack.c.bf16 %v9623_v6, %v9624_v49  ;;  %v1941_v6 = vld [vmem:[#allocation2 + $0x1e2] sm:$0xff]  ;;  %v1942_v49 = vld [vmem:[#allocation2 + $0x1f2] sm:$0xff] }
 0x1ad   :  { %7033 = vmatmul.mubr.msk.bf16.gmra.mrb[96].mxu0 %vm711_vm1, %v1019_v25  ;;  %v1031_v25 = vpack.c.bf16 %v997_v17, %v996_v14  ;;  %v1940_v14 = vld [vmem:[#allocation2 + $0x1b2] sm:$0xff]  ;;  %v3604_v17 = vld [vmem:[#allocation2 + $0x202] sm:$0xff] }
 0x1ae   :  { %7036 = vmatprep.mubr.msk.bf16.mxu0 %vm711_vm1, %v1020_v40  ;;  %v1032_v40 = vpack.c.bf16 %v8915_v8, %v998_v26  ;;  %v3120_v8 = vpack.c.bf16 %v3088_v58, %v8909_v4  ;;  %v1993_v26 = vpack.c.bf16 %v1942_v49, %v1941_v6  ;;  %v1968_v6 = vld [vmem:[#allocation2 + $0x3f2] sm:$0xff] }
 0x1af   :  { %7231 = vmatmul.mubr.msk.bf16.gmra.mrb[36].mxu1 %vm711_vm1, %v9611_v19  ;;  %v9626_v19 = vld [vmem:[#allocation9_spill] sm:$0xff] }
 0x1b0   :  { %7234 = vmatprep.mubr.msk.bf16.mxu1 %vm711_vm1, %v9612_v45  ;;  %v9627_v45 = vld [vmem:[#allocation8_spill] sm:$0xff] }
 0x1b1   :  { %v9628_v0 = vpack.c.bf16 %v9626_v19, %v9627_v45  ;;  %v3655_v19 = vpack.c.bf16 %v3604_v17, %v1942_v49  ;;  %v1945_v45 = vld [vmem:[#allocation2 + $0x222] sm:$0xff] }
 0x1b2   :  { %v3632_v49 = vld [vmem:[#allocation2 + $0x422] sm:$0xff] }
 0x1b5   :  { %7037 = vmatmul.mubr.msk.bf16.gmra.mrb[100].mxu0 %vm711_vm1, %v1021_v44  ;;  %v1981_v44 = vpack.c.bf16 %v1918_v54, %v1917_v43  ;;  %v1944_v43 = vld [vmem:[#allocation2 + $0x212] sm:$0xff] }
 0x1b6   :  { %7040 = vmatprep.mubr.msk.bf16.mxu0 %vm711_vm1, %v1022_v57  ;;  %v9629_v57 = vpack.c.bf16 %v8911_v29, %v8917_v24  ;;  %v9100_v24 = vld [vmem:[%s9576_s2 + $0x38] sm:$0xff]   ;;  %v1994_v58 = vpack.c.bf16 %v1944_v43, %v3604_v17 }
 0x1b7   :  { %7235 = vmatmul.mubr.msk.bf16.gmra.mrb[40].mxu1 %vm711_vm1, %v3108_v3  ;;  %v3643_v3 = vpack.c.bf16 %v3580_v59, %v1918_v54  ;;  %v8095_v29 = vld [vmem:[%s9576_s2 + $0x18] sm:$0xff]   ;;  %v3608_v54 = vld [vmem:[#allocation2 + $0x242] sm:$0xff] }
 0x1b8   :  { %7238 = vmatprep.mubr.msk.bf16.mxu1 %vm711_vm1, %v9613_v56  ;;  %v3584_v56 = vld [vmem:[#allocation2 + $0x62] sm:$0xff] }
 0x1b9   :  { %v3645_v4 = vpack.c.bf16 %v3584_v56, %v1922_v47 }
 0x1bd   :  { %7041 = vmatmul.mubr.msk.bf16.gmra.mrb[104].mxu0 %vm711_vm1, %v1023_v7  ;;  %v1925_v7 = vld [vmem:[#allocation2 + $0xa2] sm:$0xff] }
 0x1be   :  { %7044 = vmatprep.mubr.msk.bf16.mxu0 %vm711_vm1, %v1024_v20  ;;  %v3586_v20 = vld [vmem:[#allocation2 + $0x82] sm:$0xff]  ;;  %v1985_v37 = vpack.c.bf16 %v1926_v10, %v1925_v7  ;;  %v1952_v7 = vld [vmem:[#allocation2 + $0x2b2] sm:$0xff] }
 0x1bf   :  { %7239 = vmatmul.mubr.msk.bf16.gmra.mrb[44].mxu1 %vm711_vm1, %v9614_v41  ;;  %v9630_v41 = vmov 0.0  }
 0x1c0   :  { %7242 = vmatprep.mubr.msk.bf16.mxu1 %vm711_vm1, %v9615_v36  ;;  %v1924_v36 = vld [vmem:[#allocation2 + $0x72] sm:$0xff] }
 0x1c1   :  { %v1984_v13 = vpack.c.bf16 %v1924_v36, %v3584_v56  ;;  %v3646_v31 = vpack.c.bf16 %v3586_v20, %v1924_v36 }
 0x1c5   :  { %7045 = vmatmul.mubr.msk.bf16.gmra.mrb[108].mxu0 %vm711_vm1, %v1025_v1  ;;  %v1930_v1 = vld [vmem:[#allocation2 + $0xf2] sm:$0xff] }
 0x1c6   :  { %7048 = vmatprep.mubr.msk.bf16.mxu0 %vm711_vm1, %v1026_v2  ;;  %v1928_v2 = vld [vmem:[#allocation2 + $0xd2] sm:$0xff]  ;;  %v1987_v53 = vpack.c.bf16 %v1930_v1, %v1929_v33 }
 0x1c7   :  { %7243 = vmatmul.mubr.msk.bf16.gmra.mrb[48].mxu1 %vm711_vm1, %v3112_v18  ;;  %v3592_v18 = vld [vmem:[#allocation2 + $0x102] sm:$0xff]  ;;  %v3648_v15 = vpack.c.bf16 %v1929_v33, %v1928_v2  ;;  %v1956_v33 = vld [vmem:[#allocation2 + $0x2f2] sm:$0xff] }
 0x1c8   :  { %7246 = vmatprep.mubr.msk.bf16.mxu1 %vm711_vm1, %v9616_v5  ;;  %v1986_v5 = vpack.c.bf16 %v1928_v2, %v3588_v48  ;;  %v3649_v38 = vpack.c.bf16 %v3592_v18, %v1930_v1  ;;  %v1988_v23 = vpack.c.bf16 %v1932_v12, %v3592_v18  ;;  %v3620_v1 = vld [vmem:[#allocation2 + $0x342] sm:$0xff] }
 0x1cd   :  { %7049 = vmatmul.mubr.msk.bf16.gmra.mrb[112].mxu0 %vm711_vm1, %v1027_v21  ;;  %v1933_v21 = vld [vmem:[#allocation2 + $0x142] sm:$0xff] }
 0x1ce   :  { %7052 = vmatprep.mubr.msk.bf16.mxu0 %vm711_vm1, %v1028_v22  ;;  %v3594_v22 = vld [vmem:[#allocation2 + $0x122] sm:$0xff]  ;;  %v1989_v42 = vpack.c.bf16 %v1934_v11, %v1933_v21  ;;  %v1960_v21 = vld [vmem:[#allocation2 + $0x352] sm:$0xff] }
 0x1cf   :  { %7247 = vmatmul.mubr.msk.bf16.gmra.mrb[52].mxu1 %vm711_vm1, %v9618_v28  ;;  %v3596_v28 = vld [vmem:[#allocation2 + $0x162] sm:$0xff] }
 0x1d0   :  { %7250 = vmatprep.mubr.msk.bf16.mxu1 %vm711_vm1, %v9621_v30  ;;  %v3650_v30 = vpack.c.bf16 %v3594_v22, %v1932_v12  ;;  %v3651_v16 = vpack.c.bf16 %v3596_v28, %v1934_v11  ;;  %v3624_v11 = vld [vmem:[#allocation2 + $0x382] sm:$0xff]  ;;  %v2002_v22 = vpack.c.bf16 %v1960_v21, %v3620_v1 }
 0x1d5   :  { %7053 = vmatmul.mubr.msk.bf16.gmra.mrb[116].mxu0 %vm711_vm1, %v1029_v27  ;;  %v1990_v27 = vpack.c.bf16 %v1936_v60, %v3596_v28 }
 0x1d6   :  { %7056 = vmatprep.mubr.msk.bf16.mxu0 %vm711_vm1, %v1030_v9  ;;  %v1991_v9 = vpack.c.bf16 %v1938_v55, %v1937_v51  ;;  %v1964_v51 = vld [vmem:[#allocation2 + $0x392] sm:$0xff] }
 0x1d7   :  { %7251 = vmatmul.mubr.msk.bf16.gmra.mrb[56].mxu1 %vm711_vm1, %v3116_v61  ;;  %v3653_v61 = vpack.c.bf16 %v3600_v32, %v1938_v55  ;;  %v3628_v55 = vld [vmem:[#allocation2 + $0x3e2] sm:$0xff]  ;;  %v2004_v60 = vpack.c.bf16 %v1964_v51, %v3624_v11 }
 0x1d8   :  { %7254 = vmatprep.mubr.msk.bf16.mxu1 %vm711_vm1, %v9625_v50  ;;  %v3602_v50 = vld [vmem:[#allocation2 + $0x1c2] sm:$0xff] }
 0x1dd   :  { %7057 = vmatmul.mubr.msk.bf16.gmra.mrb[120].mxu0 %vm711_vm1, %v1031_v25  ;;  %v1992_v25 = vpack.c.bf16 %v1940_v14, %v3600_v32 }
 0x1de   :  { %7060 = vmatprep.mubr.msk.bf16.mxu0 %vm711_vm1, %v1032_v40  ;;  %v3654_v40 = vpack.c.bf16 %v3602_v50, %v1940_v14  ;;  %v2006_v50 = vpack.c.bf16 %v1968_v6, %v3628_v55 }
 0x1df   :  { %7255 = vmatmul.mubr.msk.bf16.gmra.mrb[60].mxu1 %vm711_vm1, %v9628_v0  ;;  %v1946_v0 = vld [vmem:[#allocation2 + $0x232] sm:$0xff] }
 0x1e0   :  { %7258 = vmatprep.mubr.msk.bf16.mxu1 %vm711_vm1, %v3119_v52  ;;  %v1921_v52 = vld [vmem:[#allocation2 + $0x42] sm:$0xff]  ;;  %v1995_v59 = vpack.c.bf16 %v1946_v0, %v1945_v45 }
 0x1e1   :  { %v1983_v35 = vpack.c.bf16 %v1922_v47, %v1921_v52  ;;  %v3644_v39 = vpack.c.bf16 %v1921_v52, %v1920_v34  ;;  %v3610_v52 = vld [vmem:[#allocation2 + $0x262] sm:$0xff]  ;;  %v1948_v47 = vld [vmem:[#allocation2 + $0x252] sm:$0xff] }
 0x1e2   :  { %v3612_v34 = vld [vmem:[#allocation2 + $0x2a2] sm:$0xff]  ;;  %v1996_v56 = vpack.c.bf16 %v1948_v47, %v3608_v54 }
 0x1e3   :  { %v1998_v20 = vpack.c.bf16 %v1952_v7, %v3612_v34 }
 0x1e5   :  { %7061 = vmatmul.mubr.msk.bf16.gmra.mrb[124].mxu0 %vm711_vm1, %v9629_v57  ;;  %v1949_v57 = vld [vmem:[#allocation2 + $0x282] sm:$0xff] }
 0x1e6   :  { %7066 = vmatprep.mubr.msk.bf16.mxu0 %vm711_vm1, %v1981_v44  ;;  %v3656_v44 = vpack.c.bf16 %v1945_v45, %v1944_v43  ;;  %v1972_v45 = vld [vmem:[#allocation2 + $0x432] sm:$0xff] }
 0x1e7   :  { %7259 = vmatmul.mubr.msk.bf16.gmra.mrb[0].mxu1 %vm711_vm1, %v3120_v8  ;;  %v3657_v8 = vpack.c.bf16 %v3608_v54, %v1946_v0  ;;  %v3636_v0 = vld [vmem:[#allocation2 + $0x482] sm:$0xff]  ;;  %v2008_v43 = vpack.c.bf16 %v1972_v45, %v3632_v49 }
 0x1e8   :  { %7264 = vmatprep.mubr.msk.bf16.mxu1 %vm711_vm1, %v3643_v3  ;;  %v1950_v3 = vld [vmem:[#allocation2 + $0x292] sm:$0xff] }
 0x1ed   :  { %7067 = vmatmul.mubr.msk.bf16.vlgmr.msra.gmra.mrb[64].mxu0 %vm711_vm1, %v1982_v62  ;;  %v1997_v62 = vpack.c.bf16 %v1950_v3, %v1949_v57  ;;  %v1976_v57 = vld [vmem:[#allocation2 + $0x492] sm:$0xff] }
 0x1ee   :  { %7070 = vmatprep.mubr.msk.bf16.mxu0 %vm711_vm1, %v1983_v35  ;;  %7131 = vmatpush3.bf16.msra.mxu0 %v8095_v29  ;;  %v3658_v35 = vpack.c.bf16 %v3610_v52, %v1948_v47  ;;  %v1954_v29 = vld [vmem:[#allocation2 + $0x2d2] sm:$0xff]  ;;  %v2010_v52 = vpack.c.bf16 %v1976_v57, %v3636_v0 }
 0x1ef   :  { %7265 = vmatmul.mubr.msk.bf16.vlgmr.msra.gmra.mrb[4].mxu1 %vm711_vm1, %v3644_v39  ;;  %7526 = vmatprep.subr.bf16.mxu0 %v9630_v41  ;;  %v3659_v39 = vpack.c.bf16 %v3612_v34, %v1950_v3  ;;  %v3640_v3 = vld [vmem:[#allocation2 + $0x4c2] sm:$0xff] }
 0x1f0   :  { %7329 = vmatpush3.bf16.msra.mxu1 %v8948_v46  ;;  %7268 = vmatprep.mubr.msk.bf16.mxu1 %vm711_vm1, %v3645_v4  ;;  %v3647_v46 = vpack.c.bf16 %v3588_v48, %v1926_v10  ;;  %v1953_v4 = vld [vmem:[#allocation2 + $0x2c2] sm:$0xff] }
 0x1f1   :  { %7394 = vmatprep.subr.bf16.mxu1 %v9100_v24  ;;  %v3616_v10 = vld [vmem:[#allocation2 + $0x2e2] sm:$0xff]  ;;  %v1999_v36 = vpack.c.bf16 %v1954_v29, %v1953_v4  ;;  %v3660_v48 = vpack.c.bf16 %v1953_v4, %v1952_v7 }
 0x1f2   :  { %v2000_v2 = vpack.c.bf16 %v1956_v33, %v3616_v10 }
 0x1f5   :  { %7071 = vmatmul.mubr.msk.bf16.gmra.mrb[68].mxu0 %vm711_vm1, %v1984_v13  ;;  %v3661_v13 = vpack.c.bf16 %v3616_v10, %v1954_v29  ;;  %v2471_v29 = vld [vmem:[#allocation2 + $0x10] sm:$0xff] }
 0x1f6   :  { %7074 = vmatprep.mubr.msk.bf16.mxu0 %vm711_vm1, %v1985_v37  ;;  %v1957_v37 = vld [vmem:[#allocation2 + $0x322] sm:$0xff] }
 0x1f7   :  { %7269 = vmatmul.mubr.msk.bf16.gmra.mrb[8].mxu1 %vm711_vm1, %v3646_v31  ;;  %v1958_v31 = vld [vmem:[#allocation2 + $0x332] sm:$0xff] }
 0x1f8   :  { %7272 = vmatprep.mubr.msk.bf16.mxu1 %vm711_vm1, %v3647_v46  ;;  %v3618_v46 = vld [vmem:[#allocation2 + $0x302] sm:$0xff]  ;;  %v2001_v18 = vpack.c.bf16 %v1958_v31, %v1957_v37 }
 0x1f9   :  { %v2476_v37 = vld [vmem:[#allocation2 + $0x60] sm:$0xff] }
 0x1fd   :  { %7075 = vmatmul.mubr.msk.bf16.gmra.mrb[72].mxu0 %vm711_vm1, %v1986_v5  ;;  %v3662_v5 = vpack.c.bf16 %v3618_v46, %v1956_v33 }
 0x1fe   :  { %7078 = vmatprep.mubr.msk.bf16.mxu0 %vm711_vm1, %v1987_v53  ;;  %v3663_v53 = vpack.c.bf16 %v3620_v1, %v1958_v31  ;;  %v4139_v1 = vld [vmem:[#allocation2 + $0x70] sm:$0xff] }
 0x1ff   :  { %7273 = vmatmul.mubr.msk.bf16.gmra.mrb[12].mxu1 %vm711_vm1, %v3648_v15  ;;  %v1961_v15 = vld [vmem:[#allocation2 + $0x362] sm:$0xff] }
 0x200   :  { %7276 = vmatprep.mubr.msk.bf16.mxu1 %vm711_vm1, %v3649_v38  ;;  %v1962_v38 = vld [vmem:[#allocation2 + $0x372] sm:$0xff]  ;;  %v3664_v28 = vpack.c.bf16 %v1961_v15, %v1960_v21 }
 0x201   :  { %v2003_v12 = vpack.c.bf16 %v1962_v38, %v1961_v15  ;;  %v4141_v15 = vld [vmem:[#allocation2 + $0x90] sm:$0xff] }
 0x202   :  { %v2479_v21 = vld [vmem:[#allocation2 + $0xb0] sm:$0xff] }
 0x205   :  { %7079 = vmatmul.mubr.msk.bf16.gmra.mrb[76].mxu0 %vm711_vm1, %v1988_v23  ;;  %v3665_v23 = vpack.c.bf16 %v3624_v11, %v1962_v38 }
 0x206   :  { %7082 = vmatprep.mubr.msk.bf16.mxu0 %vm711_vm1, %v1989_v42  ;;  %v1965_v42 = vld [vmem:[#allocation2 + $0x3c2] sm:$0xff] }
 0x207   :  { %7277 = vmatmul.mubr.msk.bf16.gmra.mrb[16].mxu1 %vm711_vm1, %v3650_v30  ;;  %v1966_v30 = vld [vmem:[#allocation2 + $0x3d2] sm:$0xff] }
 0x208   :  { %7280 = vmatprep.mubr.msk.bf16.mxu1 %vm711_vm1, %v3651_v16  ;;  %v3626_v16 = vld [vmem:[#allocation2 + $0x3a2] sm:$0xff]  ;;  %v2005_v32 = vpack.c.bf16 %v1966_v30, %v1965_v42 }
 0x209   :  { %v2484_v42 = vld [vmem:[#allocation2 + $0x100] sm:$0xff] }
 0x20d   :  { %7083 = vmatmul.mubr.msk.bf16.gmra.mrb[80].mxu0 %vm711_vm1, %v1990_v27  ;;  %v3666_v27 = vpack.c.bf16 %v3626_v16, %v1964_v51 }
 0x20e   :  { %7086 = vmatprep.mubr.msk.bf16.mxu0 %vm711_vm1, %v1991_v9  ;;  %v3667_v9 = vpack.c.bf16 %v3628_v55, %v1966_v30  ;;  %v4147_v55 = vld [vmem:[#allocation2 + $0x110] sm:$0xff] }
 0x20f   :  { %7281 = vmatmul.mubr.msk.bf16.gmra.mrb[20].mxu1 %vm711_vm1, %v3652_v63  ;;  %v1969_v63 = vld [vmem:[#allocation2 + $0x402] sm:$0xff] }
 0x210   :  { %7284 = vmatprep.mubr.msk.bf16.mxu1 %vm711_vm1, %v3653_v61  ;;  %v1970_v61 = vld [vmem:[#allocation2 + $0x412] sm:$0xff]  ;;  %v3668_v17 = vpack.c.bf16 %v1969_v63, %v1968_v6 }
 0x211   :  { %v2007_v14 = vpack.c.bf16 %v1970_v61, %v1969_v63 }
 0x215   :  { %7087 = vmatmul.mubr.msk.bf16.gmra.mrb[84].mxu0 %vm711_vm1, %v1992_v25  ;;  %v3669_v25 = vpack.c.bf16 %v3632_v49, %v1970_v61  ;;  %v2487_v61 = vld [vmem:[#allocation2 + $0x150] sm:$0xff] }
 0x216   :  { %7090 = vmatprep.mubr.msk.bf16.mxu0 %vm711_vm1, %v1993_v26  ;;  %v1973_v26 = vld [vmem:[#allocation2 + $0x462] sm:$0xff] }
 0x217   :  { %7285 = vmatmul.mubr.msk.bf16.gmra.mrb[24].mxu1 %vm711_vm1, %v3654_v40  ;;  %v1974_v40 = vld [vmem:[#allocation2 + $0x472] sm:$0xff] }
 0x218   :  { %7288 = vmatprep.mubr.msk.bf16.mxu1 %vm711_vm1, %v3655_v19  ;;  %v3634_v19 = vld [vmem:[#allocation2 + $0x442] sm:$0xff]  ;;  %v2009_v54 = vpack.c.bf16 %v1974_v40, %v1973_v26 }
 0x219   :  { %v2492_v26 = vld [vmem:[#allocation2 + $0x1a0] sm:$0xff] }
 0x21d   :  { %7091 = vmatmul.mubr.msk.bf16.gmra.mrb[88].mxu0 %vm711_vm1, %v1994_v58  ;;  %v3670_v58 = vpack.c.bf16 %v3634_v19, %v1972_v45 }
 0x21e   :  { %7094 = vmatprep.mubr.msk.bf16.mxu0 %vm711_vm1, %v1995_v59  ;;  %v3671_v59 = vpack.c.bf16 %v3636_v0, %v1974_v40  ;;  %v4155_v0 = vld [vmem:[#allocation2 + $0x1b0] sm:$0xff] }
 0x21f   :  { %7289 = vmatmul.mubr.msk.bf16.gmra.mrb[28].mxu1 %vm711_vm1, %v3656_v44  ;;  %v1977_v44 = vld [vmem:[#allocation2 + $0x4a2] sm:$0xff] }
 0x220   :  { %7292 = vmatprep.mubr.msk.bf16.mxu1 %vm711_vm1, %v3657_v8  ;;  %v1978_v8 = vld [vmem:[#allocation2 + $0x4b2] sm:$0xff]  ;;  %v3672_v34 = vpack.c.bf16 %v1977_v44, %v1976_v57 }
 0x221   :  { %v2011_v47 = vpack.c.bf16 %v1978_v8, %v1977_v44 }
 0x225   :  { %7095 = vmatmul.mubr.msk.bf16.gmra.mrb[92].mxu0 %vm711_vm1, %v1996_v56  ;;  %v3673_v56 = vpack.c.bf16 %v3640_v3, %v1978_v8  ;;  %v2495_v8 = vld [vmem:[#allocation2 + $0x1f0] sm:$0xff] }
 0x226   :  { %7098 = vmatprep.mubr.msk.bf16.mxu0 %vm711_vm1, %v1997_v62  ;;  %v2472_v62 = vld [vmem:[#allocation2 + $0x20] sm:$0xff] }
 0x227   :  { %7293 = vmatmul.mubr.msk.bf16.gmra.mrb[32].mxu1 %vm711_vm1, %v3658_v35  ;;  %v3642_v35 = vld [vmem:[#allocation2 + $0x4e2] sm:$0xff]  ;;  %v2535_v7 = vpack.c.bf16 %v2472_v62, %v2471_v29  ;;  %v4163_v29 = vld [vmem:[#allocation2 + $0x250] sm:$0xff] }
 0x228   :  { %7296 = vmatprep.mubr.msk.bf16.mxu1 %vm711_vm1, %v3659_v39  ;;  %v1980_v39 = vld [vmem:[#allocation2 + $0x4d2] sm:$0xff] }
 0x229   :  { %v2012_v4 = vpack.c.bf16 %v1980_v39, %v3640_v3  ;;  %v3674_v10 = vpack.c.bf16 %v3642_v35, %v1980_v39 }
 0x22d   :  { %7099 = vmatmul.mubr.msk.bf16.gmra.mrb[96].mxu0 %vm711_vm1, %v1998_v20  ;;  %v4135_v20 = vld [vmem:[#allocation2 + $0x30] sm:$0xff] }
 0x22e   :  { %7102 = vmatprep.mubr.msk.bf16.mxu0 %vm711_vm1, %v1999_v36  ;;  %v4198_v36 = vpack.c.bf16 %v4135_v20, %v2472_v62  ;;  %v2500_v62 = vld [vmem:[#allocation2 + $0x240] sm:$0xff] }
 0x22f   :  { %7297 = vmatmul.mubr.msk.bf16.gmra.mrb[36].mxu1 %vm711_vm1, %v3660_v48  ;;  %v2474_v48 = vld [vmem:[#allocation2 + $0x40] sm:$0xff] }
 0x230   :  { %7300 = vmatprep.mubr.msk.bf16.mxu1 %vm711_vm1, %v3661_v13  ;;  %v2475_v13 = vld [vmem:[#allocation2 + $0x50] sm:$0xff]  ;;  %v2536_v31 = vpack.c.bf16 %v2474_v48, %v4135_v20  ;;  %v2504_v20 = vld [vmem:[#allocation2 + $0x2a0] sm:$0xff] }
 0x231   :  { %v2537_v46 = vpack.c.bf16 %v2476_v37, %v2475_v13  ;;  %v4199_v33 = vpack.c.bf16 %v2475_v13, %v2474_v48  ;;  %v2503_v13 = vld [vmem:[#allocation2 + $0x290] sm:$0xff] }
 0x235   :  { %7103 = vmatmul.mubr.msk.bf16.gmra.mrb[100].mxu0 %vm711_vm1, %v2000_v2  ;;  %v9174_v2 = vld [vmem:[%s9576_s2 + $0x40] sm:$0xff]  }
 0x236   :  { %7106 = vmatprep.mubr.msk.bf16.mxu0 %vm711_vm1, %v2001_v18  ;;  %v4200_v18 = vpack.c.bf16 %v4139_v1, %v2476_v37  ;;  %v2551_v37 = vpack.c.bf16 %v2504_v20, %v2503_v13 }
 0x237   :  { %7301 = vmatmul.mubr.msk.bf16.gmra.mrb[40].mxu1 %vm711_vm1, %v3662_v5  ;;  %v2478_v5 = vld [vmem:[#allocation2 + $0x80] sm:$0xff] }
 0x238   :  { %7304 = vmatprep.mubr.msk.bf16.mxu1 %vm711_vm1, %v3663_v53  ;;  %v2480_v53 = vld [vmem:[#allocation2 + $0xc0] sm:$0xff]  ;;  %v2538_v38 = vpack.c.bf16 %v2478_v5, %v4139_v1 }
 0x239   :  { %v2539_v11 = vpack.c.bf16 %v2480_v53, %v2479_v21  ;;  %v2506_v1 = vld [vmem:[#allocation2 + $0x2c0] sm:$0xff]  ;;  %v4171_v21 = vld [vmem:[#allocation2 + $0x2f0] sm:$0xff] }
 0x23d   :  { %7107 = vmatmul.mubr.msk.bf16.gmra.mrb[104].mxu0 %vm711_vm1, %v2002_v22  ;;  %v4201_v22 = vpack.c.bf16 %v4141_v15, %v2478_v5  ;;  %v2508_v5 = vld [vmem:[#allocation2 + $0x2e0] sm:$0xff] }
 0x23e   :  { %7110 = vmatprep.mubr.msk.bf16.mxu0 %vm711_vm1, %v2003_v12  ;;  %v4143_v12 = vld [vmem:[#allocation2 + $0xd0] sm:$0xff] }
 0x23f   :  { %7305 = vmatmul.mubr.msk.bf16.gmra.mrb[44].mxu1 %vm711_vm1, %v3664_v28  ;;  %v4202_v28 = vpack.c.bf16 %v4143_v12, %v2480_v53 }
 0x240   :  { %7308 = vmatprep.mubr.msk.bf16.mxu1 %vm711_vm1, %v3665_v23  ;;  %v2483_v23 = vld [vmem:[#allocation2 + $0xf0] sm:$0xff] }
 0x241   :  { %v2541_v16 = vpack.c.bf16 %v2484_v42, %v2483_v23 }
 0x245   :  { %7111 = vmatmul.mubr.msk.bf16.gmra.mrb[108].mxu0 %vm711_vm1, %v2004_v60  ;;  %v4204_v60 = vpack.c.bf16 %v4147_v55, %v2484_v42 }
 0x246   :  { %7114 = vmatprep.mubr.msk.bf16.mxu0 %vm711_vm1, %v2005_v32  ;;  %v2486_v32 = vld [vmem:[#allocation2 + $0x120] sm:$0xff] }
 0x247   :  { %7309 = vmatmul.mubr.msk.bf16.gmra.mrb[48].mxu1 %vm711_vm1, %v3666_v27  ;;  %v2488_v27 = vld [vmem:[#allocation2 + $0x160] sm:$0xff]  ;;  %v2542_v63 = vpack.c.bf16 %v2486_v32, %v4147_v55 }
 0x248   :  { %7312 = vmatprep.mubr.msk.bf16.mxu1 %vm711_vm1, %v3667_v9  ;;  %v4149_v9 = vld [vmem:[#allocation2 + $0x130] sm:$0xff]  ;;  %v2543_v6 = vpack.c.bf16 %v2488_v27, %v2487_v61  ;;  %v2514_v55 = vld [vmem:[#allocation2 + $0x360] sm:$0xff] }
 0x249   :  { %v4205_v49 = vpack.c.bf16 %v4149_v9, %v2486_v32  ;;  %v2516_v32 = vld [vmem:[#allocation2 + $0x380] sm:$0xff]  ;;  %v4179_v61 = vld [vmem:[#allocation2 + $0x390] sm:$0xff] }
 0x24d   :  { %7115 = vmatmul.mubr.msk.bf16.gmra.mrb[112].mxu0 %vm711_vm1, %v2006_v50  ;;  %v4151_v50 = vld [vmem:[#allocation2 + $0x170] sm:$0xff] }
 0x24e   :  { %7118 = vmatprep.mubr.msk.bf16.mxu0 %vm711_vm1, %v2007_v14  ;;  %v4206_v14 = vpack.c.bf16 %v4151_v50, %v2488_v27 }
 0x24f   :  { %7313 = vmatmul.mubr.msk.bf16.gmra.mrb[52].mxu1 %vm711_vm1, %v3668_v17  ;;  %v2490_v17 = vld [vmem:[#allocation2 + $0x180] sm:$0xff] }
 0x250   :  { %7316 = vmatprep.mubr.msk.bf16.mxu1 %vm711_vm1, %v3669_v25  ;;  %v2491_v25 = vld [vmem:[#allocation2 + $0x190] sm:$0xff]  ;;  %v2544_v40 = vpack.c.bf16 %v2490_v17, %v4151_v50  ;;  %v2520_v50 = vld [vmem:[#allocation2 + $0x3e0] sm:$0xff] }
 0x251   :  { %v2545_v19 = vpack.c.bf16 %v2492_v26, %v2491_v25  ;;  %v4207_v45 = vpack.c.bf16 %v2491_v25, %v2490_v17  ;;  %v2519_v25 = vld [vmem:[#allocation2 + $0x3d0] sm:$0xff] }
 0x255   :  { %7119 = vmatmul.mubr.msk.bf16.gmra.mrb[116].mxu0 %vm711_vm1, %v2008_v43  ;;  %v4208_v43 = vpack.c.bf16 %v4155_v0, %v2492_v26  ;;  %v2559_v26 = vpack.c.bf16 %v2520_v50, %v2519_v25  ;;  %v4709_v25 = vld [vmem:[#allocation2 + $0x1b1] sm:$0xff] }
 0x256   :  { %7122 = vmatprep.mubr.msk.bf16.mxu0 %vm711_vm1, %v2009_v54  ;;  %v2494_v54 = vld [vmem:[#allocation2 + $0x1c0] sm:$0xff] }
 0x257   :  { %7317 = vmatmul.mubr.msk.bf16.gmra.mrb[56].mxu1 %vm711_vm1, %v3670_v58  ;;  %v2496_v58 = vld [vmem:[#allocation2 + $0x200] sm:$0xff]  ;;  %v2546_v44 = vpack.c.bf16 %v2494_v54, %v4155_v0 }
 0x258   :  { %7320 = vmatprep.mubr.msk.bf16.mxu1 %vm711_vm1, %v3671_v59  ;;  %v4157_v59 = vld [vmem:[#allocation2 + $0x1d0] sm:$0xff]  ;;  %v2547_v57 = vpack.c.bf16 %v2496_v58, %v2495_v8  ;;  %v2522_v0 = vld [vmem:[#allocation2 + $0x400] sm:$0xff] }
 0x259   :  { %v4209_v3 = vpack.c.bf16 %v4157_v59, %v2494_v54  ;;  %v2524_v54 = vld [vmem:[#allocation2 + $0x420] sm:$0xff]  ;;  %v4187_v8 = vld [vmem:[#allocation2 + $0x430] sm:$0xff] }
 0x25d   :  { %7123 = vmatmul.mubr.msk.bf16.gmra.mrb[120].mxu0 %vm711_vm1, %v2010_v52  ;;  %v4159_v52 = vld [vmem:[#allocation2 + $0x210] sm:$0xff] }
 0x25e   :  { %7126 = vmatprep.mubr.msk.bf16.mxu0 %vm711_vm1, %v2011_v47  ;;  %v4210_v47 = vpack.c.bf16 %v4159_v52, %v2496_v58 }
 0x25f   :  { %7321 = vmatmul.mubr.msk.bf16.gmra.mrb[60].mxu1 %vm711_vm1, %v3672_v34  ;;  %v2498_v34 = vld [vmem:[#allocation2 + $0x220] sm:$0xff] }
 0x260   :  { %7324 = vmatprep.mubr.msk.bf16.mxu1 %vm711_vm1, %v3673_v56  ;;  %v2499_v56 = vld [vmem:[#allocation2 + $0x230] sm:$0xff]  ;;  %v2548_v35 = vpack.c.bf16 %v2498_v34, %v4159_v52  ;;  %v2528_v52 = vld [vmem:[#allocation2 + $0x480] sm:$0xff] }
 0x261   :  { %v2549_v39 = vpack.c.bf16 %v2500_v62, %v2499_v56 }
 0x265   :  { %7127 = vmatmul.mubr.msk.bf16.gmra.mrb[124].mxu0 %vm711_vm1, %v2012_v4  ;;  %v4211_v4 = vpack.c.bf16 %v2499_v56, %v2498_v34  ;;  %v2527_v56 = vld [vmem:[#allocation2 + $0x470] sm:$0xff] }
 0x266   :  { %7132 = vmatprep.mubr.msk.bf16.mxu0 %vm711_vm1, %v2535_v7  ;;  %v4212_v7 = vpack.c.bf16 %v4163_v29, %v2500_v62  ;;  %v2563_v62 = vpack.c.bf16 %v2528_v52, %v2527_v56 }
 0x267   :  { %7325 = vmatmul.mubr.msk.bf16.gmra.mrb[0].mxu1 %vm711_vm1, %v3674_v10  ;;  %v2502_v10 = vld [vmem:[#allocation2 + $0x260] sm:$0xff] }
 0x268   :  { %7330 = vmatprep.mubr.msk.bf16.mxu1 %vm711_vm1, %v4198_v36  ;;  %v4165_v36 = vld [vmem:[#allocation2 + $0x270] sm:$0xff]  ;;  %v2550_v48 = vpack.c.bf16 %v2502_v10, %v4163_v29  ;;  %v2530_v29 = vld [vmem:[#allocation2 + $0x4a0] sm:$0xff] }
 0x26d   :  { %7133 = vmatmul.mubr.msk.bf16.vlgmr.msra.gmra.mrb[64].mxu0 %vm711_vm1, %v2536_v31  ;;  %v4213_v31 = vpack.c.bf16 %v4165_v36, %v2502_v10  ;;  %v4194_v10 = vld [vmem:[#allocation2 + $0x4c0] sm:$0xff] }
 0x26e   :  { %7136 = vmatprep.mubr.msk.bf16.mxu0 %vm711_vm1, %v2537_v46  ;;  %v4167_v46 = vld [vmem:[#allocation2 + $0x2b0] sm:$0xff] }
 0x26f   :  { %7331 = vmatmul.mubr.msk.bf16.vlgmr.msra.gmra.mrb[4].mxu1 %vm711_vm1, %v4199_v33  ;;  %v4214_v33 = vpack.c.bf16 %v4167_v46, %v2504_v20  ;;  %v2552_v53 = vpack.c.bf16 %v2506_v1, %v4167_v46  ;;  %v4688_v46 = vld [vmem:[#allocation2 + $0x21] sm:$0xff] }
 0x270   :  { %7395 = vmatpush3.bf16.msra.mxu1 %v9100_v24  ;;  %7334 = vmatprep.mubr.msk.bf16.mxu1 %vm711_vm1, %v4200_v18  ;;  %v2482_v24 = vld [vmem:[#allocation2 + $0xe0] sm:$0xff]  ;;  %v2507_v18 = vld [vmem:[#allocation2 + $0x2d0] sm:$0xff] }
 0x271   :  { %7460 = vmatprep.subr.bf16.mxu1 %v9174_v2  ;;  %v2540_v30 = vpack.c.bf16 %v2482_v24, %v4143_v12  ;;  %v4203_v51 = vpack.c.bf16 %v2483_v23, %v2482_v24  ;;  %v2553_v15 = vpack.c.bf16 %v2508_v5, %v2507_v18  ;;  %v2512_v12 = vld [vmem:[#allocation2 + $0x340] sm:$0xff]  ;;  %v2511_v23 = vld [vmem:[#allocation2 + $0x330] sm:$0xff] }
 0x272   :  { %v2555_v42 = vpack.c.bf16 %v2512_v12, %v2511_v23  ;;  %v4697_v23 = vld [vmem:[#allocation2 + $0xd1] sm:$0xff] }
 0x275   :  { %7137 = vmatmul.mubr.msk.bf16.gmra.mrb[68].mxu0 %vm711_vm1, %v2538_v38  ;;  %v4215_v38 = vpack.c.bf16 %v2507_v18, %v2506_v1  ;;  %v4689_v1 = vld [vmem:[#allocation2 + $0x31] sm:$0xff] }
 0x276   :  { %7140 = vmatprep.mubr.msk.bf16.mxu0 %vm711_vm1, %v2539_v11  ;;  %v4216_v11 = vpack.c.bf16 %v4171_v21, %v2508_v5  ;;  %v4752_v18 = vpack.c.bf16 %v4689_v1, %v4688_v46  ;;  %v4691_v5 = vld [vmem:[#allocation2 + $0x51] sm:$0xff] }
 0x277   :  { %7335 = vmatmul.mubr.msk.bf16.gmra.mrb[8].mxu1 %vm711_vm1, %v4201_v22  ;;  %v2510_v22 = vld [vmem:[#allocation2 + $0x300] sm:$0xff] }
 0x278   :  { %7338 = vmatprep.mubr.msk.bf16.mxu1 %vm711_vm1, %v4202_v28  ;;  %v4173_v28 = vld [vmem:[#allocation2 + $0x310] sm:$0xff]  ;;  %v2554_v24 = vpack.c.bf16 %v2510_v22, %v4171_v21 }
 0x279   :  { %v4693_v21 = vld [vmem:[#allocation2 + $0x71] sm:$0xff] }
 0x27d   :  { %7141 = vmatmul.mubr.msk.bf16.gmra.mrb[72].mxu0 %vm711_vm1, %v2540_v30  ;;  %v4217_v30 = vpack.c.bf16 %v4173_v28, %v2510_v22  ;;  %v4694_v22 = vld [vmem:[#allocation2 + $0x81] sm:$0xff] }
 0x27e   :  { %7144 = vmatprep.mubr.msk.bf16.mxu0 %vm711_vm1, %v2541_v16  ;;  %v4175_v16 = vld [vmem:[#allocation2 + $0x350] sm:$0xff]  ;;  %v4696_v28 = vld [vmem:[#allocation2 + $0xc1] sm:$0xff] }
 0x27f   :  { %7339 = vmatmul.mubr.msk.bf16.gmra.mrb[12].mxu1 %vm711_vm1, %v4203_v51  ;;  %v4218_v51 = vpack.c.bf16 %v4175_v16, %v2512_v12  ;;  %v2556_v27 = vpack.c.bf16 %v2514_v55, %v4175_v16  ;;  %v4695_v12 = vld [vmem:[#allocation2 + $0x91] sm:$0xff]  ;;  %v4700_v16 = vld [vmem:[#allocation2 + $0x101] sm:$0xff] }
 0x280   :  { %7342 = vmatprep.mubr.msk.bf16.mxu1 %vm711_vm1, %v4204_v60  ;;  %v2515_v60 = vld [vmem:[#allocation2 + $0x370] sm:$0xff] }
 0x281   :  { %v2557_v9 = vpack.c.bf16 %v2516_v32, %v2515_v60 }
 0x285   :  { %7145 = vmatmul.mubr.msk.bf16.gmra.mrb[76].mxu0 %vm711_vm1, %v2542_v63  ;;  %v4219_v63 = vpack.c.bf16 %v2515_v60, %v2514_v55  ;;  %v4701_v60 = vld [vmem:[#allocation2 + $0x111] sm:$0xff] }
 0x286   :  { %7148 = vmatprep.mubr.msk.bf16.mxu0 %vm711_vm1, %v2543_v6  ;;  %v4220_v6 = vpack.c.bf16 %v4179_v61, %v2516_v32  ;;  %v4758_v32 = vpack.c.bf16 %v4701_v60, %v4700_v16 }
 0x287   :  { %7343 = vmatmul.mubr.msk.bf16.gmra.mrb[16].mxu1 %vm711_vm1, %v4205_v49  ;;  %v2518_v49 = vld [vmem:[#allocation2 + $0x3a0] sm:$0xff] }
 0x288   :  { %7346 = vmatprep.mubr.msk.bf16.mxu1 %vm711_vm1, %v4206_v14  ;;  %v4181_v14 = vld [vmem:[#allocation2 + $0x3b0] sm:$0xff]  ;;  %v2558_v17 = vpack.c.bf16 %v2518_v49, %v4179_v61 }
 0x289   :  { %v4705_v61 = vld [vmem:[#allocation2 + $0x171] sm:$0xff] }
 0x28d   :  { %7149 = vmatmul.mubr.msk.bf16.gmra.mrb[80].mxu0 %vm711_vm1, %v2544_v40  ;;  %v4221_v40 = vpack.c.bf16 %v4181_v14, %v2518_v49  ;;  %v4707_v49 = vld [vmem:[#allocation2 + $0x191] sm:$0xff]  ;;  %v4706_v14 = vld [vmem:[#allocation2 + $0x181] sm:$0xff] }
 0x28e   :  { %7152 = vmatprep.mubr.msk.bf16.mxu0 %vm711_vm1, %v2545_v19  ;;  %v4183_v19 = vld [vmem:[#allocation2 + $0x3f0] sm:$0xff] }
 0x28f   :  { %7347 = vmatmul.mubr.msk.bf16.gmra.mrb[20].mxu1 %vm711_vm1, %v4207_v45  ;;  %v4222_v45 = vpack.c.bf16 %v4183_v19, %v2520_v50  ;;  %v2560_v58 = vpack.c.bf16 %v2522_v0, %v4183_v19  ;;  %v4708_v50 = vld [vmem:[#allocation2 + $0x1a1] sm:$0xff]  ;;  %v4711_v19 = vld [vmem:[#allocation2 + $0x1d1] sm:$0xff] }
 0x290   :  { %7350 = vmatprep.mubr.msk.bf16.mxu1 %vm711_vm1, %v4208_v43  ;;  %v2523_v43 = vld [vmem:[#allocation2 + $0x410] sm:$0xff] }
 0x291   :  { %v2561_v59 = vpack.c.bf16 %v2524_v54, %v2523_v43 }
 0x295   :  { %7153 = vmatmul.mubr.msk.bf16.gmra.mrb[84].mxu0 %vm711_vm1, %v2546_v44  ;;  %v4223_v44 = vpack.c.bf16 %v2523_v43, %v2522_v0  ;;  %v4713_v43 = vld [vmem:[#allocation2 + $0x211] sm:$0xff] }
 0x296   :  { %7156 = vmatprep.mubr.msk.bf16.mxu0 %vm711_vm1, %v2547_v57  ;;  %v4224_v57 = vpack.c.bf16 %v4187_v8, %v2524_v54 }
 0x297   :  { %7351 = vmatmul.mubr.msk.bf16.gmra.mrb[24].mxu1 %vm711_vm1, %v4209_v3  ;;  %v2526_v3 = vld [vmem:[#allocation2 + $0x440] sm:$0xff] }
 0x298   :  { %7354 = vmatprep.mubr.msk.bf16.mxu1 %vm711_vm1, %v4210_v47  ;;  %v4189_v47 = vld [vmem:[#allocation2 + $0x450] sm:$0xff]  ;;  %v2562_v34 = vpack.c.bf16 %v2526_v3, %v4187_v8 }
 0x29d   :  { %7157 = vmatmul.mubr.msk.bf16.gmra.mrb[88].mxu0 %vm711_vm1, %v2548_v35  ;;  %v4225_v35 = vpack.c.bf16 %v4189_v47, %v2526_v3  ;;  %v4719_v47 = vld [vmem:[#allocation2 + $0x271] sm:$0xff] }
 0x29e   :  { %7160 = vmatprep.mubr.msk.bf16.mxu0 %vm711_vm1, %v2549_v39  ;;  %v4191_v39 = vld [vmem:[#allocation2 + $0x490] sm:$0xff] }
 0x29f   :  { %7355 = vmatmul.mubr.msk.bf16.gmra.mrb[28].mxu1 %vm711_vm1, %v4211_v4  ;;  %v4226_v4 = vpack.c.bf16 %v4191_v39, %v2528_v52  ;;  %v2564_v20 = vpack.c.bf16 %v2530_v29, %v4191_v39  ;;  %v4718_v52 = vld [vmem:[#allocation2 + $0x261] sm:$0xff]  ;;  %v4723_v39 = vld [vmem:[#allocation2 + $0x2d1] sm:$0xff] }
 0x2a0   :  { %7358 = vmatprep.mubr.msk.bf16.mxu1 %vm711_vm1, %v4212_v7  ;;  %v4193_v7 = vld [vmem:[#allocation2 + $0x4b0] sm:$0xff]  ;;  %v4767_v56 = vpack.c.bf16 %v4719_v47, %v4718_v52  ;;  %v4746_v47 = vld [vmem:[#allocation2 + $0x4a1] sm:$0xff] }
 0x2a1   :  { %v4227_v36 = vpack.c.bf16 %v4193_v7, %v2530_v29  ;;  %v4722_v29 = vld [vmem:[#allocation2 + $0x2c1] sm:$0xff] }
 0x2a2   :  { %v4769_v7 = vpack.c.bf16 %v4723_v39, %v4722_v29  ;;  %v4751_v29 = vld [vmem:[#allocation2 + $0x4f1] sm:$0xff] }
 0x2a5   :  { %7161 = vmatmul.mubr.msk.bf16.gmra.mrb[92].mxu0 %vm711_vm1, %v2550_v48  ;;  %v4195_v48 = vld [vmem:[#allocation2 + $0x4d0] sm:$0xff] }
 0x2a6   :  { %7164 = vmatprep.mubr.msk.bf16.mxu0 %vm711_vm1, %v2551_v37  ;;  %v4228_v13 = vpack.c.bf16 %v4195_v48, %v4194_v10  ;;  %v4196_v37 = vld [vmem:[#allocation2 + $0x4e0] sm:$0xff]  ;;  %v4725_v10 = vld [vmem:[#allocation2 + $0x2f1] sm:$0xff] }
 0x2a7   :  { %7359 = vmatmul.mubr.msk.bf16.gmra.mrb[32].mxu1 %vm711_vm1, %v4213_v31  ;;  %v4197_v31 = vld [vmem:[#allocation2 + $0x4f0] sm:$0xff] }
 0x2a8   :  { %7362 = vmatprep.mubr.msk.bf16.mxu1 %vm711_vm1, %v4214_v33  ;;  %v4229_v33 = vpack.c.bf16 %v4197_v31, %v4196_v37  ;;  %v4727_v48 = vld [vmem:[#allocation2 + $0x311] sm:$0xff] }
 0x2a9   :  { %v4729_v31 = vld [vmem:[#allocation2 + $0x351] sm:$0xff] }
 0x2ad   :  { %7165 = vmatmul.mubr.msk.bf16.gmra.mrb[96].mxu0 %vm711_vm1, %v2552_v53  ;;  %v4692_v53 = vld [vmem:[#allocation2 + $0x61] sm:$0xff] }
 0x2ae   :  { %7168 = vmatprep.mubr.msk.bf16.mxu0 %vm711_vm1, %v2553_v15  ;;  %v4690_v15 = vld [vmem:[#allocation2 + $0x41] sm:$0xff] }
 0x2af   :  { %7363 = vmatmul.mubr.msk.bf16.gmra.mrb[36].mxu1 %vm711_vm1, %v4215_v38  ;;  %v4753_v38 = vpack.c.bf16 %v4691_v5, %v4690_v15 }
 0x2b0   :  { %7366 = vmatprep.mubr.msk.bf16.mxu1 %vm711_vm1, %v4216_v11  ;;  %v4754_v11 = vpack.c.bf16 %v4693_v21, %v4692_v53  ;;  %v4732_v53 = vld [vmem:[#allocation2 + $0x381] sm:$0xff] }
 0x2b5   :  { %7169 = vmatmul.mubr.msk.bf16.gmra.mrb[100].mxu0 %vm711_vm1, %v2554_v24  ;;  %v4755_v24 = vpack.c.bf16 %v4695_v12, %v4694_v22 }
 0x2b6   :  { %7172 = vmatprep.mubr.msk.bf16.mxu0 %vm711_vm1, %v2555_v42  ;;  %v4756_v42 = vpack.c.bf16 %v4697_v23, %v4696_v28  ;;  %v4735_v23 = vld [vmem:[#allocation2 + $0x3b1] sm:$0xff] }
 0x2b7   :  { %7367 = vmatmul.mubr.msk.bf16.gmra.mrb[40].mxu1 %vm711_vm1, %v4217_v30  ;;  %v4699_v30 = vld [vmem:[#allocation2 + $0xf1] sm:$0xff] }
 0x2b8   :  { %7370 = vmatprep.mubr.msk.bf16.mxu1 %vm711_vm1, %v4218_v51  ;;  %v4698_v51 = vld [vmem:[#allocation2 + $0xe1] sm:$0xff] }
 0x2b9   :  { %v4757_v55 = vpack.c.bf16 %v4699_v30, %v4698_v51  ;;  %v4736_v30 = vld [vmem:[#allocation2 + $0x3e1] sm:$0xff] }
 0x2bd   :  { %7173 = vmatmul.mubr.msk.bf16.gmra.mrb[104].mxu0 %vm711_vm1, %v2556_v27  ;;  %v4703_v27 = vld [vmem:[#allocation2 + $0x131] sm:$0xff] }
 0x2be   :  { %7176 = vmatprep.mubr.msk.bf16.mxu0 %vm711_vm1, %v2557_v9  ;;  %v4704_v9 = vld [vmem:[#allocation2 + $0x161] sm:$0xff] }
 0x2bf   :  { %7371 = vmatmul.mubr.msk.bf16.gmra.mrb[44].mxu1 %vm711_vm1, %v4219_v63 }
 0x2c0   :  { %7374 = vmatprep.mubr.msk.bf16.mxu1 %vm711_vm1, %v4220_v6  ;;  %v4760_v6 = vpack.c.bf16 %v4705_v61, %v4704_v9 }
 0x2c5   :  { %7177 = vmatmul.mubr.msk.bf16.gmra.mrb[108].mxu0 %vm711_vm1, %v2558_v17  ;;  %v4761_v17 = vpack.c.bf16 %v4707_v49, %v4706_v14 }
 0x2c6   :  { %7180 = vmatprep.mubr.msk.bf16.mxu0 %vm711_vm1, %v2559_v26  ;;  %v4762_v26 = vpack.c.bf16 %v4709_v25, %v4708_v50  ;;  %v4741_v50 = vld [vmem:[#allocation2 + $0x431] sm:$0xff] }
 0x2c7   :  { %7375 = vmatmul.mubr.msk.bf16.gmra.mrb[48].mxu1 %vm711_vm1, %v4221_v40  ;;  %v4710_v40 = vld [vmem:[#allocation2 + $0x1c1] sm:$0xff] }
 0x2c8   :  { %7378 = vmatprep.mubr.msk.bf16.mxu1 %vm711_vm1, %v4222_v45  ;;  %v4712_v45 = vld [vmem:[#allocation2 + $0x201] sm:$0xff]  ;;  %v4763_v0 = vpack.c.bf16 %v4711_v19, %v4710_v40  ;;  %v4743_v40 = vld [vmem:[#allocation2 + $0x451] sm:$0xff] }
 0x2c9   :  { %v4764_v54 = vpack.c.bf16 %v4713_v43, %v4712_v45  ;;  %v4744_v45 = vld [vmem:[#allocation2 + $0x481] sm:$0xff] }
 0x2cd   :  { %7181 = vmatmul.mubr.msk.bf16.gmra.mrb[112].mxu0 %vm711_vm1, %v2560_v58  ;;  %v4715_v58 = vld [vmem:[#allocation2 + $0x231] sm:$0xff] }
 0x2ce   :  { %7184 = vmatprep.mubr.msk.bf16.mxu0 %vm711_vm1, %v2561_v59  ;;  %v4716_v59 = vld [vmem:[#allocation2 + $0x241] sm:$0xff] }
 0x2cf   :  { %7379 = vmatmul.mubr.msk.bf16.gmra.mrb[52].mxu1 %vm711_vm1, %v4223_v44  ;;  %v4714_v44 = vld [vmem:[#allocation2 + $0x221] sm:$0xff] }
 0x2d0   :  { %7382 = vmatprep.mubr.msk.bf16.mxu1 %vm711_vm1, %v4224_v57  ;;  %v4765_v8 = vpack.c.bf16 %v4715_v58, %v4714_v44  ;;  %v4717_v57 = vld [vmem:[#allocation2 + $0x251] sm:$0xff] }
 0x2d1   :  { %v4766_v3 = vpack.c.bf16 %v4717_v57, %v4716_v59 }
 0x2d5   :  { %7185 = vmatmul.mubr.msk.bf16.gmra.mrb[116].mxu0 %vm711_vm1, %v2562_v34  ;;  %v4720_v34 = vld [vmem:[#allocation2 + $0x2a1] sm:$0xff] }
 0x2d6   :  { %7188 = vmatprep.mubr.msk.bf16.mxu0 %vm711_vm1, %v2563_v62  ;;  %v4721_v62 = vld [vmem:[#allocation2 + $0x2b1] sm:$0xff] }
 0x2d7   :  { %7383 = vmatmul.mubr.msk.bf16.gmra.mrb[56].mxu1 %vm711_vm1, %v4225_v35  ;;  %v4768_v35 = vpack.c.bf16 %v4721_v62, %v4720_v34 }
 0x2d8   :  { %7386 = vmatprep.mubr.msk.bf16.mxu1 %vm711_vm1, %v4226_v4  ;;  %v4724_v4 = vld [vmem:[#allocation2 + $0x2e1] sm:$0xff] }
 0x2dd   :  { %7189 = vmatmul.mubr.msk.bf16.gmra.mrb[120].mxu0 %vm711_vm1, %v2564_v20  ;;  %v4770_v20 = vpack.c.bf16 %v4725_v10, %v4724_v4  ;;  %v4750_v4 = vld [vmem:[#allocation2 + $0x4e1] sm:$0xff] }
 0x2de   :  { %v5242_v10 = vld [vmem:[#allocation2 + $0x22] sm:$0xff]  ;;  %7530 = vmatprep.mubr.msk.bf16.mxu0 %vm8097_vm3, %v9630_v41 }
 0x2df   :  { %7387 = vmatmul.mubr.msk.bf16.gmra.mrb[60].mxu1 %vm711_vm1, %v4227_v36  ;;  %v4726_v36 = vld [vmem:[#allocation2 + $0x301] sm:$0xff] }
 0x2e0   :  { %7390 = vmatprep.mubr.msk.bf16.mxu1 %vm711_vm1, %v4228_v13  ;;  %v4728_v13 = vld [vmem:[#allocation2 + $0x341] sm:$0xff]  ;;  %v4771_v37 = vpack.c.bf16 %v4727_v48, %v4726_v36  ;;  %v4783_v36 = vpack.c.bf16 %v4751_v29, %v4750_v4  ;;  %v5243_v48 = vld [vmem:[#allocation2 + $0x32] sm:$0xff] }
 0x2e1   :  { %v4772_v46 = vpack.c.bf16 %v4729_v31, %v4728_v13  ;;  %v5306_v13 = vpack.c.bf16 %v5243_v48, %v5242_v10  ;;  %v5257_v4 = vld [vmem:[#allocation2 + $0x132] sm:$0xff]  ;;  %v5258_v10 = vld [vmem:[#allocation2 + $0x162] sm:$0xff] }
 0x2e7   :  { %7391 = vmatmul.mubr.msk.bf16.gmra.mrb[0].mxu1 %vm711_vm1, %v4229_v33 }
 0x2e8   :  { %7396 = vmatprep.mubr.msk.bf16.mxu1 %vm711_vm1, %v4752_v18  ;;  %v4731_v18 = vld [vmem:[#allocation2 + $0x371] sm:$0xff] }
 0x2ef   :  { %7397 = vmatmul.mubr.msk.bf16.vlgmr.msra.gmra.mrb[4].mxu1 %vm711_vm1, %v4753_v38  ;;  %v4730_v38 = vld [vmem:[#allocation2 + $0x361] sm:$0xff] }
 0x2f0   :  { %7461 = vmatpush3.bf16.msra.mxu1 %v9174_v2  ;;  %7400 = vmatprep.mubr.msk.bf16.mxu1 %vm711_vm1, %v4754_v11  ;;  %v4702_v2 = vld [vmem:[#allocation2 + $0x121] sm:$0xff]  ;;  %v4773_v21 = vpack.c.bf16 %v4731_v18, %v4730_v38  ;;  %v4733_v11 = vld [vmem:[#allocation2 + $0x391] sm:$0xff] }
 0x2f1   :  { %v4759_v63 = vpack.c.bf16 %v4703_v27, %v4702_v2  ;;  %v4774_v22 = vpack.c.bf16 %v4733_v11, %v4732_v53  ;;  %v4739_v27 = vld [vmem:[#allocation2 + $0x411] sm:$0xff]  ;;  %v5246_v53 = vld [vmem:[#allocation2 + $0x62] sm:$0xff] }
 0x2f7   :  { %7401 = vmatmul.mubr.msk.bf16.gmra.mrb[8].mxu1 %vm711_vm1, %v4755_v24  ;;  %v4734_v24 = vld [vmem:[#allocation2 + $0x3a1] sm:$0xff] }
 0x2f8   :  { %7404 = vmatprep.mubr.msk.bf16.mxu1 %vm711_vm1, %v4756_v42  ;;  %v4775_v51 = vpack.c.bf16 %v4735_v23, %v4734_v24 }
 0x2ff   :  { %7405 = vmatmul.mubr.msk.bf16.gmra.mrb[12].mxu1 %vm711_vm1, %v4757_v55  ;;  %v4737_v55 = vld [vmem:[#allocation2 + $0x3f1] sm:$0xff] }
 0x300   :  { %7408 = vmatprep.mubr.msk.bf16.mxu1 %vm711_vm1, %v4758_v32  ;;  %v4776_v60 = vpack.c.bf16 %v4737_v55, %v4736_v30  ;;  %v5249_v55 = vld [vmem:[#allocation2 + $0x92] sm:$0xff] }
 0x307   :  { %7409 = vmatmul.mubr.msk.bf16.gmra.mrb[16].mxu1 %vm711_vm1, %v4759_v63  ;;  %v4740_v63 = vld [vmem:[#allocation2 + $0x421] sm:$0xff] }
 0x308   :  { %7412 = vmatprep.mubr.msk.bf16.mxu1 %vm711_vm1, %v4760_v6  ;;  %v4738_v6 = vld [vmem:[#allocation2 + $0x401] sm:$0xff]  ;;  %v4778_v14 = vpack.c.bf16 %v4741_v50, %v4740_v63 }
 0x309   :  { %v4777_v49 = vpack.c.bf16 %v4739_v27, %v4738_v6  ;;  %v5250_v27 = vld [vmem:[#allocation2 + $0xc2] sm:$0xff] }
 0x30f   :  { %7413 = vmatmul.mubr.msk.bf16.gmra.mrb[20].mxu1 %vm711_vm1, %v4761_v17 }
 0x310   :  { %7416 = vmatprep.mubr.msk.bf16.mxu1 %vm711_vm1, %v4762_v26  ;;  %v4742_v26 = vld [vmem:[#allocation2 + $0x441] sm:$0xff] }
 0x311   :  { %v4779_v43 = vpack.c.bf16 %v4743_v40, %v4742_v26  ;;  %v5253_v40 = vld [vmem:[#allocation2 + $0xf2] sm:$0xff] }
 0x317   :  { %7417 = vmatmul.mubr.msk.bf16.gmra.mrb[24].mxu1 %vm711_vm1, %v4763_v0 }
 0x318   :  { %7420 = vmatprep.mubr.msk.bf16.mxu1 %vm711_vm1, %v4764_v54  ;;  %v4745_v54 = vld [vmem:[#allocation2 + $0x491] sm:$0xff] }
 0x319   :  { %v4780_v58 = vpack.c.bf16 %v4745_v54, %v4744_v45 }
 0x31f   :  { %7421 = vmatmul.mubr.msk.bf16.gmra.mrb[28].mxu1 %vm711_vm1, %v4765_v8  ;;  %v4747_v8 = vld [vmem:[#allocation2 + $0x4b1] sm:$0xff] }
 0x320   :  { %7424 = vmatprep.mubr.msk.bf16.mxu1 %vm711_vm1, %v4766_v3  ;;  %v4748_v3 = vld [vmem:[#allocation2 + $0x4c1] sm:$0xff]  ;;  %v4781_v34 = vpack.c.bf16 %v4747_v8, %v4746_v47 }
 0x327   :  { %7425 = vmatmul.mubr.msk.bf16.gmra.mrb[32].mxu1 %vm711_vm1, %v4767_v56  ;;  %v4749_v56 = vld [vmem:[#allocation2 + $0x4d1] sm:$0xff] }
 0x328   :  { %7428 = vmatprep.mubr.msk.bf16.mxu1 %vm711_vm1, %v4768_v35  ;;  %v4782_v62 = vpack.c.bf16 %v4749_v56, %v4748_v3  ;;  %v5255_v3 = vld [vmem:[#allocation2 + $0x112] sm:$0xff] }
 0x32f   :  { %7429 = vmatmul.mubr.msk.bf16.gmra.mrb[36].mxu1 %vm711_vm1, %v4769_v7 }
 0x330   :  { %7432 = vmatprep.mubr.msk.bf16.mxu1 %vm711_vm1, %v4770_v20 }
 0x337   :  { %7433 = vmatmul.mubr.msk.bf16.gmra.mrb[40].mxu1 %vm711_vm1, %v4771_v37 }
 0x338   :  { %7436 = vmatprep.mubr.msk.bf16.mxu1 %vm711_vm1, %v4772_v46  ;;  %v9260_v33 = vpop.f32.mrb[124].mxu0  ;;  %v5245_v46 = vld [vmem:[#allocation2 + $0x52] sm:$0xff] }
 0x339   :  { %9631 = vst [vmem:[#allocation3_spill] sm:$0xff] %v9260_v33  ;;  %v9262_v1 = vpop.f32.mrb[125].mxu0  ;;  %v5275_v33 = vld [vmem:[#allocation2 + $0x2b2] sm:$0xff] }
 0x33a   :  { %9632 = vst [vmem:[#allocation5_spill] sm:$0xff] %v9262_v1  ;;  %v9264_v5 = vpop.f32.mrb[126].mxu0 }
 0x33b   :  { %9633 = vst [vmem:[#allocation4_spill] sm:$0xff] %v9264_v5  ;;  %v9266_v15 = vpop.f32.mrb[127].mxu0 }
 0x33c   :  { %9634 = vst [vmem:[#allocation6_spill] sm:$0xff] %v9266_v15  ;;  %v5274_v15 = vld [vmem:[#allocation2 + $0x2a2] sm:$0xff] }
 0x33f   :  { %7437 = vmatmul.mubr.msk.bf16.gmra.mrb[44].mxu1 %vm711_vm1, %v4773_v21  ;;  %v5244_v21 = vld [vmem:[#allocation2 + $0x42] sm:$0xff] }
 0x340   :  { %7440 = vmatprep.mubr.msk.bf16.mxu1 %vm711_vm1, %v4774_v22  ;;  %v9270_v12 = vpop.f32.mrb[64].mxu0  ;;  %v5307_v11 = vpack.c.bf16 %v5245_v46, %v5244_v21  ;;  %v5247_v22 = vld [vmem:[#allocation2 + $0x72] sm:$0xff] }
 0x341   :  { %v9272_v28 = vpop.f32.mrb[65].mxu0  ;;  %v5308_v24 = vpack.c.bf16 %v5247_v22, %v5246_v53 }
 0x342   :  { %v9274_v42 = vpop.f32.mrb[66].mxu0 }
 0x343   :  { %v9276_v16 = vpop.f32.mrb[67].mxu0 }
 0x347   :  { %7441 = vmatmul.mubr.msk.bf16.gmra.mrb[48].mxu1 %vm711_vm1, %v4775_v51  ;;  %v5248_v51 = vld [vmem:[#allocation2 + $0x82] sm:$0xff] }
 0x348   :  { %7444 = vmatprep.mubr.msk.bf16.mxu1 %vm711_vm1, %v4776_v60  ;;  %v9280_v32 = vpop.f32.mrb[68].mxu0  ;;  %v5309_v6 = vpack.c.bf16 %v5249_v55, %v5248_v51  ;;  %v5260_v55 = vld [vmem:[#allocation2 + $0x182] sm:$0xff] }
 0x349   :  { %v9282_v2 = vpop.f32.mrb[69].mxu0 }
 0x34a   :  { %v9284_v9 = vpop.f32.mrb[70].mxu0 }
 0x34b   :  { %v9286_v61 = vpop.f32.mrb[71].mxu0 }
 0x34f   :  { %7445 = vmatmul.mubr.msk.bf16.gmra.mrb[52].mxu1 %vm711_vm1, %v4777_v49  ;;  %v5251_v49 = vld [vmem:[#allocation2 + $0xd2] sm:$0xff] }
 0x350   :  { %7448 = vmatprep.mubr.msk.bf16.mxu1 %vm711_vm1, %v4778_v14  ;;  %v9290_v17 = vpop.f32.mrb[72].mxu0  ;;  %v5310_v50 = vpack.c.bf16 %v5251_v49, %v5250_v27 }
 0x351   :  { %v9292_v25 = vpop.f32.mrb[73].mxu0 }
 0x352   :  { %v9294_v19 = vpop.f32.mrb[74].mxu0 }
 0x353   :  { %v9296_v0 = vpop.f32.mrb[75].mxu0 }
 0x357   :  { %7449 = vmatmul.mubr.msk.bf16.gmra.mrb[56].mxu1 %vm711_vm1, %v4779_v43  ;;  %v5254_v43 = vld [vmem:[#allocation2 + $0x102] sm:$0xff] }
 0x358   :  { %7452 = vmatprep.mubr.msk.bf16.mxu1 %vm711_vm1, %v4780_v58  ;;  %v9300_v59 = vpop.f32.mrb[76].mxu0  ;;  %v5252_v58 = vld [vmem:[#allocation2 + $0xe2] sm:$0xff]  ;;  %v5312_v47 = vpack.c.bf16 %v5255_v3, %v5254_v43 }
 0x359   :  { %v9302_v44 = vpop.f32.mrb[77].mxu0  ;;  %v5311_v8 = vpack.c.bf16 %v5253_v40, %v5252_v58  ;;  %v5264_v43 = vld [vmem:[#allocation2 + $0x1c2] sm:$0xff]  ;;  %v5265_v58 = vld [vmem:[#allocation2 + $0x1d2] sm:$0xff] }
 0x35a   :  { %v9304_v57 = vpop.f32.mrb[78].mxu0  ;;  %v5266_v3 = vld [vmem:[#allocation2 + $0x202] sm:$0xff] }
 0x35b   :  { %v9306_v52 = vpop.f32.mrb[79].mxu0 }
 0x35f   :  { %7453 = vmatmul.mubr.msk.bf16.gmra.mrb[60].mxu1 %vm711_vm1, %v4781_v34 }
 0x360   :  { %7456 = vmatprep.mubr.msk.bf16.mxu1 %vm711_vm1, %v4782_v62  ;;  %v9310_v35 = vpop.f32.mrb[80].mxu0  ;;  %v5256_v62 = vld [vmem:[#allocation2 + $0x122] sm:$0xff] }
 0x361   :  { %v9312_v39 = vpop.f32.mrb[81].mxu0  ;;  %v5313_v48 = vpack.c.bf16 %v5257_v4, %v5256_v62  ;;  %v5317_v62 = vpack.c.bf16 %v5265_v58, %v5264_v43  ;;  %v5267_v4 = vld [vmem:[#allocation2 + $0x212] sm:$0xff] }
 0x362   :  { %v9314_v7 = vpop.f32.mrb[82].mxu0 }
 0x363   :  { %v9316_v20 = vpop.f32.mrb[83].mxu0 }
 0x367   :  { %7457 = vmatmul.mubr.msk.bf16.gmra.mrb[0].mxu1 %vm711_vm1, %v4783_v36 }
 0x368   :  { %7462 = vmatprep.mubr.msk.bf16.mxu1 %vm711_vm1, %v5306_v13  ;;  %v9320_v37 = vpop.f32.mrb[84].mxu0  ;;  %v5259_v13 = vld [vmem:[#allocation2 + $0x172] sm:$0xff] }
 0x369   :  { %v9322_v31 = vpop.f32.mrb[85].mxu0  ;;  %v5314_v46 = vpack.c.bf16 %v5259_v13, %v5258_v10  ;;  %v5318_v10 = vpack.c.bf16 %v5267_v4, %v5266_v3  ;;  %v5273_v4 = vld [vmem:[#allocation2 + $0x272] sm:$0xff] }
 0x36a   :  { %v9324_v18 = vpop.f32.mrb[86].mxu0 }
 0x36b   :  { %v9326_v38 = vpop.f32.mrb[87].mxu0 }
 0x36f   :  { %7463 = vmatmul.mubr.msk.bf16.vlgmr.msra.gmra.mrb[4].mxu1 %vm711_vm1, %v5307_v11  ;;  %v5261_v11 = vld [vmem:[#allocation2 + $0x192] sm:$0xff] }
 0x370   :  { %7466 = vmatprep.mubr.msk.bf16.mxu1 %vm711_vm1, %v5308_v24  ;;  %v9330_v23 = vpop.f32.mrb[88].mxu0  ;;  %v5262_v24 = vld [vmem:[#allocation2 + $0x1a2] sm:$0xff]  ;;  %v5315_v27 = vpack.c.bf16 %v5261_v11, %v5260_v55 }
 0x371   :  { %v9332_v30 = vpop.f32.mrb[89].mxu0 }
 0x372   :  { %v9334_v60 = vpop.f32.mrb[90].mxu0 }
 0x373   :  { %v9336_v63 = vpop.f32.mrb[91].mxu0 }
 0x377   :  { %7467 = vmatmul.mubr.msk.bf16.gmra.mrb[8].mxu1 %vm711_vm1, %v5309_v6  ;;  %v5263_v6 = vld [vmem:[#allocation2 + $0x1b2] sm:$0xff] }
 0x378   :  { %7470 = vmatprep.mubr.msk.bf16.mxu1 %vm711_vm1, %v5310_v50  ;;  %v9340_v14 = vpop.f32.mrb[92].mxu0  ;;  %v5316_v49 = vpack.c.bf16 %v5263_v6, %v5262_v24  ;;  %v5270_v24 = vld [vmem:[#allocation2 + $0x242] sm:$0xff] }
 0x379   :  { %v9342_v26 = vpop.f32.mrb[93].mxu0 }
 0x37a   :  { %v9344_v45 = vpop.f32.mrb[94].mxu0 }
 0x37b   :  { %v9346_v54 = vpop.f32.mrb[95].mxu0 }
 0x37f   :  { %7471 = vmatmul.mubr.msk.bf16.gmra.mrb[12].mxu1 %vm711_vm1, %v5311_v8 }
 0x380   :  { %7474 = vmatprep.mubr.msk.bf16.mxu1 %vm711_vm1, %v5312_v47  ;;  %v9350_v34 = vpop.f32.mrb[96].mxu0 }
 0x381   :  { %v9352_v56 = vpop.f32.mrb[97].mxu0 }
 0x382   :  { %v9354_v29 = vpop.f32.mrb[98].mxu0 }
 0x383   :  { %v9356_v36 = vpop.f32.mrb[99].mxu0 }
 0x387   :  { %7475 = vmatmul.mubr.msk.bf16.gmra.mrb[16].mxu1 %vm711_vm1, %v5313_v48 }
 0x388   :  { %7478 = vmatprep.mubr.msk.bf16.mxu1 %vm711_vm1, %v5314_v46  ;;  %v9360_v53 = vpop.f32.mrb[100].mxu0  ;;  %v5269_v46 = vld [vmem:[#allocation2 + $0x232] sm:$0xff] }
 0x389   :  { %v9362_v21 = vpop.f32.mrb[101].mxu0 }
 0x38a   :  { %v9364_v22 = vpop.f32.mrb[102].mxu0 }
 0x38b   :  { %v9366_v51 = vpop.f32.mrb[103].mxu0 }
 0x38f   :  { %7479 = vmatmul.mubr.msk.bf16.gmra.mrb[20].mxu1 %vm711_vm1, %v5315_v27  ;;  %v5268_v27 = vld [vmem:[#allocation2 + $0x222] sm:$0xff] }
 0x390   :  { %7482 = vmatprep.mubr.msk.bf16.mxu1 %vm711_vm1, %v5316_v49  ;;  %v9370_v50 = vpop.f32.mrb[104].mxu0  ;;  %v5319_v6 = vpack.c.bf16 %v5269_v46, %v5268_v27  ;;  %v5271_v49 = vld [vmem:[#allocation2 + $0x252] sm:$0xff]  ;;  %v5322_v46 = vpack.c.bf16 %v5275_v33, %v5274_v15  ;;  %v5280_v15 = vld [vmem:[#allocation2 + $0x302] sm:$0xff] }
 0x391   :  { %v9372_v40 = vpop.f32.mrb[105].mxu0  ;;  %v5320_v43 = vpack.c.bf16 %v5271_v49, %v5270_v24 }
 0x392   :  { %v9374_v8 = vpop.f32.mrb[106].mxu0 }
 0x393   :  { %v9376_v47 = vpop.f32.mrb[107].mxu0 }
 0x397   :  { %7483 = vmatmul.mubr.msk.bf16.gmra.mrb[24].mxu1 %vm711_vm1, %v5317_v62  ;;  %v5272_v62 = vld [vmem:[#allocation2 + $0x262] sm:$0xff] }
 0x398   :  { %7486 = vmatprep.mubr.msk.bf16.mxu1 %vm711_vm1, %v5318_v10  ;;  %v9380_v48 = vpop.f32.mrb[108].mxu0  ;;  %v5321_v1 = vpack.c.bf16 %v5273_v4, %v5272_v62  ;;  %v5281_v4 = vld [vmem:[#allocation2 + $0x312] sm:$0xff] }
 0x399   :  { %v9382_v13 = vpop.f32.mrb[109].mxu0 }
 0x39a   :  { %v9384_v11 = vpop.f32.mrb[110].mxu0 }
 0x39b   :  { %v9386_v55 = vpop.f32.mrb[111].mxu0 }
 0x39c   :  { %9635 = vst [vmem:[#allocation10_spill] sm:$0xff] %v9386_v55 }
 0x39f   :  { %7487 = vmatmul.mubr.msk.bf16.gmra.mrb[28].mxu1 %vm711_vm1, %v5319_v6  ;;  %v5277_v6 = vld [vmem:[#allocation2 + $0x2d2] sm:$0xff] }
 0x3a0   :  { %7490 = vmatprep.mubr.msk.bf16.mxu1 %vm711_vm1, %v5320_v43  ;;  %v9390_v58 = vpop.f32.mrb[112].mxu0  ;;  %v5278_v43 = vld [vmem:[#allocation2 + $0x2e2] sm:$0xff] }
 0x3a1   :  { %9636 = vst [vmem:[#allocation7_spill] sm:$0xff] %v9390_v58  ;;  %v9392_v3 = vpop.f32.mrb[113].mxu0 }
 0x3a2   :  { %9637 = vst [vmem:[#allocation9_spill] sm:$0xff] %v9392_v3  ;;  %v9394_v10 = vpop.f32.mrb[114].mxu0 }
 0x3a3   :  { %9638 = vst [vmem:[#allocation8_spill] sm:$0xff] %v9394_v10  ;;  %v9396_v5 = vpop.f32.mrb[115].mxu0  ;;  %v5276_v10 = vld [vmem:[#allocation2 + $0x2c2] sm:$0xff] }
 0x3a4   :  { %9639 = vst [vmem:[#allocation11_spill] sm:$0xff] %v9396_v5  ;;  %v5323_v58 = vpack.c.bf16 %v5277_v6, %v5276_v10  ;;  %v5279_v5 = vld [vmem:[#allocation2 + $0x2f2] sm:$0xff]  ;;  %v5284_v6 = vld [vmem:[#allocation2 + $0x362] sm:$0xff] }
 0x3a5   :  { %v5324_v62 = vpack.c.bf16 %v5279_v5, %v5278_v43  ;;  %v5285_v5 = vld [vmem:[#allocation2 + $0x372] sm:$0xff] }
 0x3a6   :  { %v5327_v43 = vpack.c.bf16 %v5285_v5, %v5284_v6  ;;  %v5295_v6 = vld [vmem:[#allocation2 + $0x432] sm:$0xff] }
 0x3a7   :  { %7491 = vmatmul.mubr.msk.bf16.gmra.mrb[32].mxu1 %vm711_vm1, %v5321_v1 }
 0x3a8   :  { %7494 = vmatprep.mubr.msk.bf16.mxu1 %vm711_vm1, %v5322_v46  ;;  %v9400_v24 = vpop.f32.mrb[116].mxu0 }
 0x3a9   :  { %9640 = vst [vmem:[#allocation12_spill] sm:$0xff] %v9400_v24  ;;  %v9402_v27 = vpop.f32.mrb[117].mxu0  ;;  %v5283_v24 = vld [vmem:[#allocation2 + $0x352] sm:$0xff] }
 0x3aa   :  { %9641 = vst [vmem:[#allocation13_spill] sm:$0xff] %v9402_v27  ;;  %v9404_v49 = vpop.f32.mrb[118].mxu0 }
 0x3ab   :  { %9642 = vst [vmem:[#allocation14_spill] sm:$0xff] %v9404_v49  ;;  %v9406_v3 = vpop.f32.mrb[119].mxu0  ;;  %v5282_v49 = vld [vmem:[#allocation2 + $0x342] sm:$0xff] }
 0x3ac   :  { %9643 = vst [vmem:[#allocation15_spill] sm:$0xff] %v9406_v3  ;;  %v5325_v3 = vpack.c.bf16 %v5281_v4, %v5280_v15  ;;  %v5326_v10 = vpack.c.bf16 %v5283_v24, %v5282_v49  ;;  %v5291_v4 = vld [vmem:[#allocation2 + $0x3f2] sm:$0xff]  ;;  %v5294_v49 = vld [vmem:[#allocation2 + $0x422] sm:$0xff] }
 0x3af   :  { %7495 = vmatmul.mubr.msk.bf16.gmra.mrb[36].mxu1 %vm711_vm1, %v5323_v58  ;;  %v5286_v58 = vld [vmem:[#allocation2 + $0x382] sm:$0xff] }
 0x3b0   :  { %7498 = vmatprep.mubr.msk.bf16.mxu1 %vm711_vm1, %v5324_v62  ;;  %v9410_v33 = vpop.f32.mrb[120].mxu0  ;;  %v5287_v62 = vld [vmem:[#allocation2 + $0x392] sm:$0xff] }
 0x3b1   :  { %9644 = vst [vmem:[#allocation16_spill] sm:$0xff] %v9410_v33  ;;  %v9412_v1 = vpop.f32.mrb[121].mxu0  ;;  %v5289_v33 = vld [vmem:[#allocation2 + $0x3b2] sm:$0xff] }
 0x3b2   :  { %9645 = vst [vmem:[#allocation17_spill] sm:$0xff] %v9412_v1  ;;  %v9414_v46 = vpop.f32.mrb[122].mxu0  ;;  %v5328_v1 = vpack.c.bf16 %v5287_v62, %v5286_v58  ;;  %v5332_v58 = vpack.c.bf16 %v5295_v6, %v5294_v49  ;;  %v5298_v62 = vld [vmem:[#allocation2 + $0x482] sm:$0xff]  ;;  %v5305_v6 = vld [vmem:[#allocation2 + $0x4f2] sm:$0xff] }
 0x3b3   :  { %9646 = vst [vmem:[#allocation18_spill] sm:$0xff] %v9414_v46  ;;  %v9416_v27 = vpop.f32.mrb[123].mxu0  ;;  %v5288_v46 = vld [vmem:[#allocation2 + $0x3a2] sm:$0xff] }
 0x3b4   :  { %9647 = vst [vmem:[#allocation19_spill] sm:$0xff] %v9416_v27  ;;  %v5290_v27 = vld [vmem:[#allocation2 + $0x3e2] sm:$0xff]  ;;  %v5329_v15 = vpack.c.bf16 %v5289_v33, %v5288_v46  ;;  %v5299_v46 = vld [vmem:[#allocation2 + $0x492] sm:$0xff] }
 0x3b5   :  { %v5330_v24 = vpack.c.bf16 %v5291_v4, %v5290_v27  ;;  %v5334_v27 = vpack.c.bf16 %v5299_v46, %v5298_v62  ;;  %v5302_v4 = vld [vmem:[#allocation2 + $0x4c2] sm:$0xff] }
 0x3b7   :  { %7499 = vmatmul.mubr.msk.bf16.gmra.mrb[40].mxu1 %vm711_vm1, %v5325_v3  ;;  %v5293_v3 = vld [vmem:[#allocation2 + $0x412] sm:$0xff] }
 0x3b8   :  { %7502 = vmatprep.mubr.msk.bf16.mxu1 %vm711_vm1, %v5326_v10  ;;  %v5292_v10 = vld [vmem:[#allocation2 + $0x402] sm:$0xff] }
 0x3b9   :  { %v5331_v5 = vpack.c.bf16 %v5293_v3, %v5292_v10  ;;  %v5303_v10 = vld [vmem:[#allocation2 + $0x4d2] sm:$0xff] }
 0x3ba   :  { %v5336_v49 = vpack.c.bf16 %v5303_v10, %v5302_v4 }
 0x3bf   :  { %7503 = vmatmul.mubr.msk.bf16.gmra.mrb[44].mxu1 %vm711_vm1, %v5327_v43  ;;  %v5297_v43 = vld [vmem:[#allocation2 + $0x452] sm:$0xff] }
 0x3c0   :  { %7506 = vmatprep.mubr.msk.bf16.mxu1 %vm711_vm1, %v5328_v1  ;;  %v5296_v1 = vld [vmem:[#allocation2 + $0x442] sm:$0xff] }
 0x3c1   :  { %v5333_v33 = vpack.c.bf16 %v5297_v43, %v5296_v1  ;;  %v8093_v1 = vld [vmem:[%s9577_s3] sm:$0xff]   ;;  %v8094_v43 = vld [vmem:[%s9577_s3 + $0x8] sm:$0xff]  }
 0x3c2   :  { %7527 = vmatpush3.bf16.msra.mxu0 %v8093_v1 }
 0x3c3   :  { %7528 = vmatprep.subr.bf16.mxu0 %v9630_v41 }
 0x3c6   :  { %7529 = vmatpush3.bf16.msra.mxu0 %v8094_v43 }
 0x3c7   :  { %7507 = vmatmul.mubr.msk.bf16.gmra.mrb[48].mxu1 %vm711_vm1, %v5329_v15  ;;  %v5301_v15 = vld [vmem:[#allocation2 + $0x4b2] sm:$0xff] }
 0x3c8   :  { %7510 = vmatprep.mubr.msk.bf16.mxu1 %vm711_vm1, %v5330_v24  ;;  %v5300_v24 = vld [vmem:[#allocation2 + $0x4a2] sm:$0xff] }
 0x3c9   :  { %v5335_v3 = vpack.c.bf16 %v5301_v15, %v5300_v24 }
 0x3cf   :  { %7511 = vmatmul.mubr.msk.bf16.gmra.mrb[52].mxu1 %vm711_vm1, %v5331_v5  ;;  %v5304_v5 = vld [vmem:[#allocation2 + $0x4e2] sm:$0xff] }
 0x3d0   :  { %7514 = vmatprep.mubr.msk.bf16.mxu1 %vm711_vm1, %v5332_v58  ;;  %v5337_v58 = vpack.c.bf16 %v5305_v6, %v5304_v5 }
 0x3d7   :  { %7515 = vmatmul.mubr.msk.bf16.gmra.mrb[56].mxu1 %vm711_vm1, %v5333_v33 }
 0x3d8   :  { %7518 = vmatprep.mubr.msk.bf16.mxu1 %vm711_vm1, %v5334_v27 }
 0x3df   :  { %7519 = vmatmul.mubr.msk.bf16.gmra.mrb[60].mxu1 %vm711_vm1, %v5335_v3 }
 0x3e0   :  { %7522 = vmatprep.mubr.msk.bf16.mxu1 %vm711_vm1, %v5336_v49 }
 0x3e7   :  { %7523 = vmatmul.mubr.msk.bf16.gmra.mrb[0].mxu1 %vm711_vm1, %v5337_v58 }
 0x442   :  { %v7464_v62 = vpop.f32.mrb[4].mxu1 }
 0x443   :  { %v7536_v33 = vadd.f32 %v7464_v62, %v9270_v12  ;;  %v5477_v46 = vpop.f32.mrb[5].mxu1 }
 0x444   :  { %v7537_v27 = vadd.f32 %v5477_v46, %v9272_v28  ;;  %v7465_v15 = vpop.f32.mrb[6].mxu1 }
 0x445   :  { %v7538_v4 = vadd.f32 %v7465_v15, %v9274_v42  ;;  %v5480_v24 = vpop.f32.mrb[7].mxu1  ;;  %v5798_v49 = vmax.f32 %v7536_v33, 0.0 }
 0x446   :  { %v5796_v3 = vmax.f32 %v7537_v27, 0.0  ;;  %v7539_v10 = vadd.f32 %v5480_v24, %v9276_v16 }
 0x447   :  { %v5799_v58 = vmax.f32 %v7538_v4, 0.0  ;;  %v5863_v28 = vsel %vm261_vm0, %v5798_v49, 0.0 }
 0x448   :  { %v5797_v5 = vmax.f32 %v7539_v10, 0.0  ;;  %v5860_v6 = vsel %vm261_vm0, %v5796_v3, 0.0 }
 0x449   :  { %v5865_v15 = vsel %vm261_vm0, %v5799_v58, 0.0 }
 0x44a   :  { %v5861_v1 = vsel %vm261_vm0, %v5797_v5, 0.0  ;;  %v7468_v43 = vpop.f32.mrb[8].mxu1 }
 0x44b   :  { %v5862_v55 = vadd.f32 %v5861_v1, %v5860_v6  ;;  %v7540_v12 = vadd.f32 %v7468_v43, %v9280_v32  ;;  %v5493_v62 = vpop.f32.mrb[9].mxu1 }
 0x44c   :  { %v7541_v42 = vadd.f32 %v5493_v62, %v9282_v2  ;;  %v7469_v46 = vpop.f32.mrb[10].mxu1 }
 0x44d   :  { %v5864_v27 = vadd.f32 %v5863_v28, %v5862_v55  ;;  %v7542_v16 = vadd.f32 %v7469_v46, %v9284_v9  ;;  %v5496_v33 = vpop.f32.mrb[11].mxu1  ;;  %v5802_v10 = vmax.f32 %v7540_v12, 0.0 }
 0x44e   :  { %v5800_v24 = vmax.f32 %v7541_v42, 0.0  ;;  %v7543_v4 = vadd.f32 %v5496_v33, %v9286_v61 }
 0x44f   :  { %v5866_v3 = vadd.f32 %v5865_v15, %v5864_v27  ;;  %v5803_v1 = vmax.f32 %v7542_v16, 0.0  ;;  %v5871_v62 = vsel %vm261_vm0, %v5802_v10, 0.0 }
 0x450   :  { %v5867_v5 = vsel %vm261_vm0, %v5800_v24, 0.0  ;;  %v5801_v32 = vmax.f32 %v7543_v4, 0.0 }
 0x451   :  { %v5868_v6 = vadd.f32 %v5867_v5, %v5866_v3  ;;  %v5873_v46 = vsel %vm261_vm0, %v5803_v1, 0.0 }
 0x452   :  { %v5869_v49 = vsel %vm261_vm0, %v5801_v32, 0.0  ;;  %v7472_v2 = vpop.f32.mrb[12].mxu1 }
 0x453   :  { %v5870_v43 = vadd.f32 %v5869_v49, %v5868_v6  ;;  %v7544_v55 = vadd.f32 %v7472_v2, %v9290_v17  ;;  %v5509_v9 = vpop.f32.mrb[13].mxu1 }
 0x454   :  { %v7545_v58 = vadd.f32 %v5509_v9, %v9292_v25  ;;  %v7473_v28 = vpop.f32.mrb[14].mxu1 }
 0x455   :  { %v5872_v61 = vadd.f32 %v5871_v62, %v5870_v43  ;;  %v7546_v12 = vadd.f32 %v7473_v28, %v9294_v19  ;;  %v5512_v42 = vpop.f32.mrb[15].mxu1  ;;  %v5806_v15 = vmax.f32 %v7544_v55, 0.0 }
 0x456   :  { %v5804_v27 = vmax.f32 %v7545_v58, 0.0  ;;  %v7547_v16 = vadd.f32 %v5512_v42, %v9296_v0 }
 0x457   :  { %v5874_v33 = vadd.f32 %v5873_v46, %v5872_v61  ;;  %v5807_v3 = vmax.f32 %v7546_v12, 0.0  ;;  %v5884_v6 = vsel %vm261_vm0, %v5806_v15, 0.0 }
 0x458   :  { %v5805_v24 = vmax.f32 %v7547_v16, 0.0  ;;  %v5881_v17 = vsel %vm261_vm0, %v5804_v27, 0.0 }
 0x459   :  { %v5875_v4 = vrot.slane %v5874_v33, 4  ;;  %v5886_v9 = vsel %vm261_vm0, %v5807_v3, 0.0 }
 0x45a   :  { %v5882_v10 = vsel %vm261_vm0, %v5805_v24, 0.0  ;;  %v7476_v25 = vpop.f32.mrb[16].mxu1 }
 0x45b   :  { %v5883_v19 = vadd.f32 %v5882_v10, %v5881_v17  ;;  %v7548_v5 = vadd.f32 %v7476_v25, %v9300_v59  ;;  %v5525_v32 = vpop.f32.mrb[17].mxu1  ;;  %v5876_v49 = vadd.f32 %v5875_v4, %v5874_v33 }
 0x45c   :  { %v7549_v0 = vadd.f32 %v5525_v32, %v9302_v44  ;;  %v7477_v1 = vpop.f32.mrb[18].mxu1 }
 0x45d   :  { %v5885_v2 = vadd.f32 %v5884_v6, %v5883_v19  ;;  %v7550_v43 = vadd.f32 %v7477_v1, %v9304_v57  ;;  %v5528_v55 = vpop.f32.mrb[19].mxu1  ;;  %v5810_v28 = vmax.f32 %v7548_v5, 0.0  ;;  %v5877_v12 = vrot.slane %v5876_v49, 2 }
 0x45e   :  { %v5808_v62 = vmax.f32 %v7549_v0, 0.0  ;;  %v7551_v58 = vadd.f32 %v5528_v55, %v9306_v52 }
 0x45f   :  { %v5887_v41 = vadd.f32 %v5886_v9, %v5885_v2  ;;  %v5811_v46 = vmax.f32 %v7550_v43, 0.0  ;;  %v5892_v15 = vsel %vm261_vm0, %v5810_v28, 0.0  ;;  %v5878_v4 = vadd.f32 %v5877_v12, %v5876_v49 }
 0x460   :  { %v5888_v59 = vsel %vm261_vm0, %v5808_v62, 0.0  ;;  %v5809_v61 = vmax.f32 %v7551_v58, 0.0 }
 0x461   :  { %v5889_v42 = vadd.f32 %v5888_v59, %v5887_v41  ;;  %v5894_v25 = vsel %vm261_vm0, %v5811_v46, 0.0 }
 0x462   :  { %v5890_v44 = vsel %vm261_vm0, %v5809_v61, 0.0  ;;  %v7480_v27 = vpop.f32.mrb[20].mxu1 }
 0x463   :  { %v5891_v16 = vadd.f32 %v5890_v44, %v5889_v42  ;;  %v7552_v57 = vadd.f32 %v7480_v27, %v9310_v35  ;;  %v5541_v33 = vpop.f32.mrb[21].mxu1  ;;  %v5879_v35 = vrot.slane %v5878_v4, 1 }
 0x464   :  { %v7553_v24 = vadd.f32 %v5541_v33, %v9312_v39  ;;  %v7481_v52 = vpop.f32.mrb[22].mxu1 }
 0x465   :  { %v5893_v17 = vadd.f32 %v5892_v15, %v5891_v16  ;;  %v7554_v3 = vadd.f32 %v7481_v52, %v9314_v7  ;;  %v5544_v10 = vpop.f32.mrb[23].mxu1  ;;  %v5814_v6 = vmax.f32 %v7552_v57, 0.0  ;;  %v5880_v28 = vadd.f32 %v5879_v35, %v5878_v4 }
 0x466   :  { %v5812_v19 = vmax.f32 %v7553_v24, 0.0  ;;  %v7555_v5 = vadd.f32 %v5544_v10, %v9316_v20 }
 0x467   :  { %v5895_v32 = vadd.f32 %v5894_v25, %v5893_v17  ;;  %v5815_v43 = vmax.f32 %v7554_v3, 0.0  ;;  %v5905_v58 = vsel %vm261_vm0, %v5814_v6, 0.0  ;;  %v6029_v24 = vmul.f32 0.015625, %v5880_v28 }
 0x468   :  { %v5813_v0 = vmax.f32 %v7555_v5, 0.0  ;;  %v5902_v2 = vsel %vm261_vm0, %v5812_v19, 0.0 }
 0x469   :  { %v5896_v1 = vrot.slane %v5895_v32, 4  ;;  %v5907_v46 = vsel %vm261_vm0, %v5815_v43, 0.0  ;;  %v6037_v6 = vpack.c.bf16 %v6029_v24, %v6029_v24 }
 0x46a   :  { %v5903_v39 = vsel %vm261_vm0, %v5813_v0, 0.0  ;;  %v7484_v49 = vpop.f32.mrb[24].mxu1 }
 0x46b   :  { %v5897_v55 = vadd.f32 %v5896_v1, %v5895_v32  ;;  %v5904_v9 = vadd.f32 %v5903_v39, %v5902_v2  ;;  %v7556_v7 = vadd.f32 %v7484_v49, %v9320_v37  ;;  %v5557_v62 = vpop.f32.mrb[25].mxu1 }
 0x46c   :  { %v7557_v20 = vadd.f32 %v5557_v62, %v9322_v31  ;;  %v7485_v41 = vpop.f32.mrb[26].mxu1  ;;  %v6064_v62 = vunpack.c.l.b16 %v6037_v6 }
 0x46d   :  { %v5898_v59 = vrot.slane %v5897_v55, 2  ;;  %v5906_v61 = vadd.f32 %v5905_v58, %v5904_v9  ;;  %v7558_v12 = vadd.f32 %v7485_v41, %v9324_v18  ;;  %v5560_v42 = vpop.f32.mrb[27].mxu1  ;;  %v5818_v37 = vmax.f32 %v7556_v7, 0.0 }
 0x46e   :  { %v5816_v44 = vmax.f32 %v7557_v20, 0.0  ;;  %v7559_v27 = vadd.f32 %v5560_v42, %v9326_v38 }
 0x46f   :  { %v5899_v16 = vadd.f32 %v5898_v59, %v5897_v55  ;;  %v5908_v57 = vadd.f32 %v5907_v46, %v5906_v61  ;;  %v5819_v4 = vmax.f32 %v7558_v12, 0.0  ;;  %v5913_v38 = vsel %vm261_vm0, %v5818_v37, 0.0 }
 0x470   :  { %v5909_v33 = vsel %vm261_vm0, %v5816_v44, 0.0  ;;  %v5817_v15 = vmax.f32 %v7559_v27, 0.0 }
 0x471   :  { %v5900_v31 = vrot.slane %v5899_v16, 1  ;;  %v5910_v52 = vadd.f32 %v5909_v33, %v5908_v57  ;;  %v5915_v43 = vsel %vm261_vm0, %v5819_v4, 0.0 }
 0x472   :  { %v5911_v17 = vsel %vm261_vm0, %v5817_v15, 0.0  ;;  %v7488_v3 = vpop.f32.mrb[28].mxu1 }
 0x473   :  { %v5901_v18 = vadd.f32 %v5900_v31, %v5899_v16  ;;  %v5912_v10 = vadd.f32 %v5911_v17, %v5910_v52  ;;  %v7560_v25 = vadd.f32 %v7488_v3, %v9330_v23  ;;  %v5573_v19 = vpop.f32.mrb[29].mxu1 }
 0x474   :  { %v7561_v5 = vadd.f32 %v5573_v19, %v9332_v30  ;;  %v7489_v32 = vpop.f32.mrb[30].mxu1 }
 0x475   :  { %v6030_v0 = vmul.f32 0.015625, %v5901_v18  ;;  %v5914_v35 = vadd.f32 %v5913_v38, %v5912_v10  ;;  %v7562_v1 = vadd.f32 %v7489_v32, %v9334_v60  ;;  %v5576_v2 = vpop.f32.mrb[31].mxu1  ;;  %v5822_v23 = vmax.f32 %v7560_v25, 0.0 }
 0x476   :  { %v5820_v39 = vmax.f32 %v7561_v5, 0.0  ;;  %v7563_v49 = vadd.f32 %v5576_v2, %v9336_v63 }
 0x477   :  { %v6038_v55 = vpack.c.bf16 %v6030_v0, %v6030_v0  ;;  %v5916_v9 = vadd.f32 %v5915_v43, %v5914_v35  ;;  %v5823_v41 = vmax.f32 %v7562_v1, 0.0  ;;  %v5926_v46 = vsel %vm261_vm0, %v5822_v23, 0.0 }
 0x478   :  { %v5821_v7 = vmax.f32 %v7563_v49, 0.0  ;;  %v5923_v20 = vsel %vm261_vm0, %v5820_v39, 0.0 }
 0x479   :  { %v6065_v58 = vunpack.c.l.b16 %v6038_v55  ;;  %v5917_v30 = vrot.slane %v5916_v9, 4  ;;  %v5928_v15 = vsel %vm261_vm0, %v5823_v41, 0.0 }
 0x47a   :  { %v5924_v28 = vsel %vm261_vm0, %v5821_v7, 0.0  ;;  %v7492_v60 = vpop.f32.mrb[32].mxu1 }
 0x47b   :  { %v6073_v59 = vsel %vm6072_vm4, %v6065_v58, %v6064_v62  ;;  %v5918_v61 = vadd.f32 %v5917_v30, %v5916_v9  ;;  %v5925_v12 = vadd.f32 %v5924_v28, %v5923_v20  ;;  %v7564_v42 = vadd.f32 %v7492_v60, %v9340_v14  ;;  %v5589_v63 = vpop.f32.mrb[33].mxu1 }
 0x47c   :  { %v7565_v44 = vadd.f32 %v5589_v63, %v9342_v26  ;;  %v7493_v27 = vpop.f32.mrb[34].mxu1 }
 0x47d   :  { %v5919_v16 = vrot.slane %v5918_v61, 2  ;;  %v5927_v57 = vadd.f32 %v5926_v46, %v5925_v12  ;;  %v7566_v37 = vadd.f32 %v7493_v27, %v9344_v45  ;;  %v5592_v33 = vpop.f32.mrb[35].mxu1  ;;  %v5826_v17 = vmax.f32 %v7564_v42, 0.0 }
 0x47e   :  { %v5824_v24 = vmax.f32 %v7565_v44, 0.0  ;;  %v7567_v31 = vadd.f32 %v5592_v33, %v9346_v54 }
 0x47f   :  { %v5920_v52 = vadd.f32 %v5919_v16, %v5918_v61  ;;  %v5929_v4 = vadd.f32 %v5928_v15, %v5927_v57  ;;  %v5827_v26 = vmax.f32 %v7566_v37, 0.0  ;;  %v5934_v6 = vsel %vm261_vm0, %v5826_v17, 0.0 }
 0x480   :  { %v5930_v14 = vsel %vm261_vm0, %v5824_v24, 0.0  ;;  %v5825_v3 = vmax.f32 %v7567_v31, 0.0 }
 0x481   :  { %v5921_v18 = vrot.slane %v5920_v52, 1  ;;  %v5931_v10 = vadd.f32 %v5930_v14, %v5929_v4  ;;  %v5936_v39 = vsel %vm261_vm0, %v5827_v26, 0.0 }
 0x482   :  { %v5932_v25 = vsel %vm261_vm0, %v5825_v3, 0.0  ;;  %v7496_v19 = vpop.f32.mrb[36].mxu1 }
 0x483   :  { %v5922_v38 = vadd.f32 %v5921_v18, %v5920_v52  ;;  %v5933_v45 = vadd.f32 %v5932_v25, %v5931_v10  ;;  %v7568_v5 = vadd.f32 %v7496_v19, %v9350_v34  ;;  %v5605_v32 = vpop.f32.mrb[37].mxu1 }
 0x484   :  { %v7569_v54 = vadd.f32 %v5605_v32, %v9352_v56  ;;  %v7497_v0 = vpop.f32.mrb[38].mxu1 }
 0x485   :  { %v6031_v35 = vmul.f32 0.015625, %v5922_v38  ;;  %v5935_v1 = vadd.f32 %v5934_v6, %v5933_v45  ;;  %v7570_v2 = vadd.f32 %v7497_v0, %v9354_v29  ;;  %v5608_v43 = vpop.f32.mrb[39].mxu1  ;;  %v5830_v34 = vmax.f32 %v7568_v5, 0.0 }
 0x486   :  { %v5828_v49 = vmax.f32 %v7569_v54, 0.0  ;;  %v7571_v55 = vadd.f32 %v5608_v43, %v9356_v36 }
 0x487   :  { %v6039_v9 = vpack.c.bf16 %v6031_v35, %v6031_v35  ;;  %v5937_v23 = vadd.f32 %v5936_v39, %v5935_v1  ;;  %v5831_v30 = vmax.f32 %v7570_v2, 0.0  ;;  %v5947_v36 = vsel %vm261_vm0, %v5830_v34, 0.0 }
 0x488   :  { %v5829_v7 = vmax.f32 %v7571_v55, 0.0  ;;  %v5944_v56 = vsel %vm261_vm0, %v5828_v49, 0.0 }
 0x489   :  { %v6066_v62 = vunpack.c.l.b16 %v6039_v9  ;;  %v5938_v58 = vrot.slane %v5937_v23, 4  ;;  %v5949_v57 = vsel %vm261_vm0, %v5831_v30, 0.0 }
 0x48a   :  { %v5945_v20 = vsel %vm261_vm0, %v5829_v7, 0.0  ;;  %v7500_v41 = vpop.f32.mrb[40].mxu1 }
 0x48b   :  { %v6075_v29 = vsel %vm6074_vm5, %v6066_v62, %v6073_v59  ;;  %v5939_v28 = vadd.f32 %v5938_v58, %v5937_v23  ;;  %v5946_v60 = vadd.f32 %v5945_v20, %v5944_v56  ;;  %v7572_v61 = vadd.f32 %v7500_v41, %v9360_v53  ;;  %v5621_v12 = vpop.f32.mrb[41].mxu1 }
 0x48c   :  { %v7573_v42 = vadd.f32 %v5621_v12, %v9362_v21  ;;  %v7501_v63 = vpop.f32.mrb[42].mxu1 }
 0x48d   :  { %v5940_v46 = vrot.slane %v5939_v28, 2  ;;  %v5948_v44 = vadd.f32 %v5947_v36, %v5946_v60  ;;  %v7574_v27 = vadd.f32 %v7501_v63, %v9364_v22  ;;  %v5624_v16 = vpop.f32.mrb[43].mxu1  ;;  %v5834_v24 = vmax.f32 %v7572_v61, 0.0  ;;  %v9648_v61 = vld [vmem:[#allocation10_spill] sm:$0xff] }
 0x48e   :  { %v5832_v37 = vmax.f32 %v7573_v42, 0.0  ;;  %v7575_v59 = vadd.f32 %v5624_v16, %v9366_v51 }
 0x48f   :  { %v5941_v33 = vadd.f32 %v5940_v46, %v5939_v28  ;;  %v5950_v15 = vadd.f32 %v5949_v57, %v5948_v44  ;;  %v5835_v21 = vmax.f32 %v7574_v27, 0.0  ;;  %v5955_v26 = vsel %vm261_vm0, %v5834_v24, 0.0  ;;  %v9650_v24 = vld [vmem:[#allocation9_spill] sm:$0xff] }
 0x490   :  { %v5951_v53 = vsel %vm261_vm0, %v5832_v37, 0.0  ;;  %v5833_v31 = vmax.f32 %v7575_v59, 0.0  ;;  %v9649_v37 = vld [vmem:[#allocation7_spill] sm:$0xff] }
 0x491   :  { %v5942_v52 = vrot.slane %v5941_v33, 1  ;;  %v5952_v4 = vadd.f32 %v5951_v53, %v5950_v15  ;;  %v5957_v32 = vsel %vm261_vm0, %v5835_v21, 0.0  ;;  %v9651_v21 = vld [vmem:[#allocation8_spill] sm:$0xff] }
 0x492   :  { %v5953_v17 = vsel %vm261_vm0, %v5833_v31, 0.0  ;;  %v7504_v14 = vpop.f32.mrb[44].mxu1 }
 0x493   :  { %v5943_v3 = vadd.f32 %v5942_v52, %v5941_v33  ;;  %v5954_v22 = vadd.f32 %v5953_v17, %v5952_v4  ;;  %v7576_v18 = vadd.f32 %v7504_v14, %v9370_v50  ;;  %v5637_v10 = vpop.f32.mrb[45].mxu1 }
 0x494   :  { %v7577_v51 = vadd.f32 %v5637_v10, %v9372_v40  ;;  %v7505_v25 = vpop.f32.mrb[46].mxu1 }
 0x495   :  { %v6032_v19 = vmul.f32 0.015625, %v5943_v3  ;;  %v5956_v38 = vadd.f32 %v5955_v26, %v5954_v22  ;;  %v7578_v45 = vadd.f32 %v7505_v25, %v9374_v8  ;;  %v5640_v5 = vpop.f32.mrb[47].mxu1  ;;  %v5838_v50 = vmax.f32 %v7576_v18, 0.0  ;;  %v9652_v18 = vld [vmem:[#allocation11_spill] sm:$0xff] }
 0x496   :  { %v5836_v6 = vmax.f32 %v7577_v51, 0.0  ;;  %v7579_v54 = vadd.f32 %v5640_v5, %v9376_v47 }
 0x497   :  { %v6040_v0 = vpack.c.bf16 %v6032_v19, %v6032_v19  ;;  %v5958_v35 = vadd.f32 %v5957_v32, %v5956_v38  ;;  %v5839_v39 = vmax.f32 %v7578_v45, 0.0  ;;  %v5968_v47 = vsel %vm261_vm0, %v5838_v50, 0.0 }
 0x498   :  { %v5837_v1 = vmax.f32 %v7579_v54, 0.0  ;;  %v5965_v40 = vsel %vm261_vm0, %v5836_v6, 0.0 }
 0x499   :  { %v6067_v2 = vunpack.c.l.b16 %v6040_v0  ;;  %v5959_v43 = vrot.slane %v5958_v35, 4  ;;  %v5970_v28 = vsel %vm261_vm0, %v5839_v39, 0.0  ;;  %v9654_v39 = vld [vmem:[#allocation13_spill] sm:$0xff] }
 0x49a   :  { %v5966_v49 = vsel %vm261_vm0, %v5837_v1, 0.0  ;;  %v7508_v55 = vpop.f32.mrb[48].mxu1  ;;  %v9653_v1 = vld [vmem:[#allocation12_spill] sm:$0xff] }
 0x49b   :  { %v6077_v8 = vsel %vm6076_vm6, %v6067_v2, %v6075_v29  ;;  %v5960_v9 = vadd.f32 %v5959_v43, %v5958_v35  ;;  %v5967_v23 = vadd.f32 %v5966_v49, %v5965_v40  ;;  %v7580_v34 = vadd.f32 %v7508_v55, %v9380_v48  ;;  %v5653_v7 = vpop.f32.mrb[49].mxu1 }
 0x49c   :  { %v7581_v62 = vadd.f32 %v5653_v7, %v9382_v13  ;;  %v7509_v58 = vpop.f32.mrb[50].mxu1 }
 0x49d   :  { %v5961_v56 = vrot.slane %v5960_v9, 2  ;;  %v5969_v30 = vadd.f32 %v5968_v47, %v5967_v23  ;;  %v7582_v20 = vadd.f32 %v7509_v58, %v9384_v11  ;;  %v5656_v41 = vpop.f32.mrb[51].mxu1  ;;  %v5842_v42 = vmax.f32 %v7580_v34, 0.0  ;;  %v9655_v34 = vld [vmem:[#allocation14_spill] sm:$0xff] }
 0x49e   :  { %v5840_v60 = vmax.f32 %v7581_v62, 0.0  ;;  %v7583_v29 = vadd.f32 %v5656_v41, %v9648_v61 }
 0x49f   :  { %v5962_v12 = vadd.f32 %v5961_v56, %v5960_v9  ;;  %v5971_v36 = vadd.f32 %v5970_v28, %v5969_v30  ;;  %v5843_v13 = vmax.f32 %v7582_v20, 0.0  ;;  %v5976_v15 = vsel %vm261_vm0, %v5842_v42, 0.0  ;;  %v9656_v56 = vld [vmem:[#allocation15_spill] sm:$0xff] }
 0x4a0   :  { %v5972_v48 = vsel %vm261_vm0, %v5840_v60, 0.0  ;;  %v5841_v63 = vmax.f32 %v7583_v29, 0.0 }
 0x4a1   :  { %v5963_v46 = vrot.slane %v5962_v12, 1  ;;  %v5973_v44 = vadd.f32 %v5972_v48, %v5971_v36  ;;  %v5978_v3 = vsel %vm261_vm0, %v5843_v13, 0.0 }
 0x4a2   :  { %v5974_v27 = vsel %vm261_vm0, %v5841_v63, 0.0  ;;  %v7512_v16 = vpop.f32.mrb[52].mxu1 }
 0x4a3   :  { %v5964_v57 = vadd.f32 %v5963_v46, %v5962_v12  ;;  %v5975_v11 = vadd.f32 %v5974_v27, %v5973_v44  ;;  %v7584_v59 = vadd.f32 %v7512_v16, %v9649_v37  ;;  %v5669_v33 = vpop.f32.mrb[53].mxu1  ;;  %v9657_v46 = vld [vmem:[#allocation16_spill] sm:$0xff]  ;;  %v9658_v16 = vld [vmem:[#allocation17_spill] sm:$0xff] }
 0x4a4   :  { %v7585_v53 = vadd.f32 %v5669_v33, %v9650_v24  ;;  %v7513_v31 = vpop.f32.mrb[54].mxu1  ;;  %v9659_v33 = vld [vmem:[#allocation18_spill] sm:$0xff] }
 0x4a5   :  { %v6033_v52 = vmul.f32 0.015625, %v5964_v57  ;;  %v5977_v4 = vadd.f32 %v5976_v15, %v5975_v11  ;;  %v7586_v17 = vadd.f32 %v7513_v31, %v9651_v21  ;;  %v5672_v14 = vpop.f32.mrb[55].mxu1  ;;  %v5846_v25 = vmax.f32 %v7584_v59, 0.0 }
 0x4a6   :  { %v5844_v22 = vmax.f32 %v7585_v53, 0.0  ;;  %v7587_v10 = vadd.f32 %v5672_v14, %v9652_v18 }
 0x4a7   :  { %v6041_v26 = vpack.c.bf16 %v6033_v52, %v6033_v52  ;;  %v5979_v51 = vadd.f32 %v5978_v3, %v5977_v4  ;;  %v5847_v32 = vmax.f32 %v7586_v17, 0.0  ;;  %v5989_v40 = vsel %vm261_vm0, %v5846_v25, 0.0  ;;  %v9660_v52 = vld [vmem:[#allocation19_spill] sm:$0xff] }
 0x4a8   :  { %v5845_v19 = vmax.f32 %v7587_v10, 0.0  ;;  %v5986_v5 = vsel %vm261_vm0, %v5844_v22, 0.0 }
 0x4a9   :  { %v6068_v38 = vunpack.c.l.b16 %v6041_v26  ;;  %v5980_v45 = vrot.slane %v5979_v51, 4  ;;  %v5991_v62 = vsel %vm261_vm0, %v5847_v32, 0.0 }
 0x4aa   :  { %v5987_v6 = vsel %vm261_vm0, %v5845_v19, 0.0  ;;  %v7516_v54 = vpop.f32.mrb[56].mxu1 }
 0x4ab   :  { %v6079_v0 = vsel %vm6078_vm7, %v6068_v38, %v6077_v8  ;;  %v5981_v35 = vadd.f32 %v5980_v45, %v5979_v51  ;;  %v5988_v50 = vadd.f32 %v5987_v6, %v5986_v5  ;;  %v7588_v2 = vadd.f32 %v7516_v54, %v9653_v1  ;;  %v5685_v43 = vpop.f32.mrb[57].mxu1  ;;  %v9661_v5 = vld [vmem:[#allocation3_spill] sm:$0xff] }
 0x4ac   :  { %v7589_v49 = vadd.f32 %v5685_v43, %v9654_v39  ;;  %v7517_v55 = vpop.f32.mrb[58].mxu1 }
 0x4ad   :  { %v5982_v9 = vrot.slane %v5981_v35, 2  ;;  %v5990_v23 = vadd.f32 %v5989_v40, %v5988_v50  ;;  %v7590_v7 = vadd.f32 %v7517_v55, %v9655_v34  ;;  %v5688_v47 = vpop.f32.mrb[59].mxu1  ;;  %v5850_v41 = vmax.f32 %v7588_v2, 0.0  ;;  %v9663_v40 = vld [vmem:[#allocation4_spill] sm:$0xff] }
 0x4ae   :  { %v5848_v58 = vmax.f32 %v7589_v49, 0.0  ;;  %v7591_v8 = vadd.f32 %v5688_v47, %v9656_v56 }
 0x4af   :  { %v5983_v30 = vadd.f32 %v5982_v9, %v5981_v35  ;;  %v5992_v20 = vadd.f32 %v5991_v62, %v5990_v23  ;;  %v5851_v12 = vmax.f32 %v7590_v7, 0.0  ;;  %v5997_v27 = vsel %vm261_vm0, %v5850_v41, 0.0  ;;  %v9662_v35 = vld [vmem:[#allocation5_spill] sm:$0xff]  ;;  %v9664_v23 = vld [vmem:[#allocation6_spill] sm:$0xff] }
 0x4b0   :  { %v5993_v28 = vsel %vm261_vm0, %v5848_v58, 0.0  ;;  %v5849_v60 = vmax.f32 %v7591_v8, 0.0 }
 0x4b1   :  { %v5984_v61 = vrot.slane %v5983_v30, 1  ;;  %v5994_v29 = vadd.f32 %v5993_v28, %v5992_v20  ;;  %v5999_v53 = vsel %vm261_vm0, %v5851_v12, 0.0 }
 0x4b2   :  { %v5995_v36 = vsel %vm261_vm0, %v5849_v60, 0.0  ;;  %v7520_v42 = vpop.f32.mrb[60].mxu1 }
 0x4b3   :  { %v5985_v48 = vadd.f32 %v5984_v61, %v5983_v30  ;;  %v5996_v63 = vadd.f32 %v5995_v36, %v5994_v29  ;;  %v7592_v44 = vadd.f32 %v7520_v42, %v9657_v46  ;;  %v5701_v13 = vpop.f32.mrb[61].mxu1 }
 0x4b4   :  { %v7593_v57 = vadd.f32 %v5701_v13, %v9658_v16  ;;  %v7521_v11 = vpop.f32.mrb[62].mxu1 }
 0x4b5   :  { %v6034_v37 = vmul.f32 0.015625, %v5985_v48  ;;  %v5998_v59 = vadd.f32 %v5997_v27, %v5996_v63  ;;  %v7594_v15 = vadd.f32 %v7521_v11, %v9659_v33  ;;  %v5704_v24 = vpop.f32.mrb[63].mxu1  ;;  %v5854_v14 = vmax.f32 %v7592_v44, 0.0 }
 0x4b6   :  { %v5852_v31 = vmax.f32 %v7593_v57, 0.0  ;;  %v7595_v4 = vadd.f32 %v5704_v24, %v9660_v52  ;;  %v6526_v24 = vld [vmem:[%s9578_s4] ss:$0 sm:$0xff] }
 0x4b7   :  { %v6042_v21 = vpack.c.bf16 %v6034_v37, %v6034_v37  ;;  %v6000_v17 = vadd.f32 %v5999_v53, %v5998_v59  ;;  %v5855_v26 = vmax.f32 %v7594_v15, 0.0  ;;  %v6010_v54 = vsel %vm261_vm0, %v5854_v14, 0.0 }
 0x4b8   :  { %v5853_v3 = vmax.f32 %v7595_v4, 0.0  ;;  %v6007_v10 = vsel %vm261_vm0, %v5852_v31, 0.0 }
 0x4b9   :  { %v6069_v22 = vunpack.c.l.b16 %v6042_v21  ;;  %v6001_v18 = vrot.slane %v6000_v17, 4  ;;  %v6012_v55 = vsel %vm261_vm0, %v5855_v26, 0.0 }
 0x4ba   :  { %v6008_v51 = vsel %vm261_vm0, %v5853_v3, 0.0  ;;  %v7524_v25 = vpop.f32.mrb[0].mxu1 }
 0x4bb   :  { %v6081_v19 = vsel %vm6080_vm8, %v6069_v22, %v6079_v0  ;;  %v6002_v38 = vadd.f32 %v6001_v18, %v6000_v17  ;;  %v6009_v45 = vadd.f32 %v6008_v51, %v6007_v10  ;;  %v7596_v32 = vadd.f32 %v7524_v25, %v9661_v5  ;;  %v5717_v6 = vpop.f32.mrb[1].mxu1 }
 0x4bc   :  { %v7597_v50 = vadd.f32 %v5717_v6, %v9662_v35  ;;  %v7525_v1 = vpop.f32.mrb[2].mxu1 }
 0x4bd   :  { %v6003_v2 = vrot.slane %v6002_v38, 2  ;;  %v6011_v43 = vadd.f32 %v6010_v54, %v6009_v45  ;;  %v7598_v39 = vadd.f32 %v7525_v1, %v9663_v40  ;;  %v5720_v49 = vpop.f32.mrb[3].mxu1  ;;  %v5858_v47 = vmax.f32 %v7596_v32, 0.0 }
 0x4be   :  { %v5856_v9 = vmax.f32 %v7597_v50, 0.0  ;;  %v7599_v0 = vadd.f32 %v5720_v49, %v9664_v23 }
 0x4bf   :  { %v6004_v34 = vadd.f32 %v6003_v2, %v6002_v38  ;;  %v6013_v7 = vadd.f32 %v6012_v55, %v6011_v43  ;;  %v5859_v30 = vmax.f32 %v7598_v39, 0.0  ;;  %v6018_v60 = vsel %vm261_vm0, %v5858_v47, 0.0 }
 0x4c0   :  { %v6014_v62 = vsel %vm261_vm0, %v5856_v9, 0.0  ;;  %v5857_v58 = vmax.f32 %v7599_v0, 0.0 }
 0x4c1   :  { %v6005_v56 = vrot.slane %v6004_v34, 1  ;;  %v6015_v8 = vadd.f32 %v6014_v62, %v6013_v7  ;;  %v6020_v12 = vsel %vm261_vm0, %v5859_v30, 0.0 }
 0x4c2   :  { %v6016_v20 = vsel %vm261_vm0, %v5857_v58, 0.0 }
 0x4c3   :  { %v6006_v41 = vadd.f32 %v6005_v56, %v6004_v34  ;;  %v6017_v28 = vadd.f32 %v6016_v20, %v6015_v8 }
 0x4c5   :  { %v6035_v61 = vmul.f32 0.015625, %v6006_v41  ;;  %v6019_v29 = vadd.f32 %v6018_v60, %v6017_v28 }
 0x4c7   :  { %v6043_v36 = vpack.c.bf16 %v6035_v61, %v6035_v61  ;;  %v6021_v42 = vadd.f32 %v6020_v12, %v6019_v29 }
 0x4c9   :  { %v6070_v48 = vunpack.c.l.b16 %v6043_v36  ;;  %v6022_v63 = vrot.slane %v6021_v42, 4 }
 0x4cb   :  { %v6023_v46 = vadd.f32 %v6022_v63, %v6021_v42  ;;  %v6083_v44 = vsel %vm6082_vm9, %v6070_v48, %v6081_v19 }
 0x4cd   :  { %v6024_v13 = vrot.slane %v6023_v46, 2 }
 0x4cf   :  { %v6025_v27 = vadd.f32 %v6024_v13, %v6023_v46 }
 0x4d1   :  { %v6026_v16 = vrot.slane %v6025_v27, 1 }
 0x4d3   :  { %v6027_v57 = vadd.f32 %v6026_v16, %v6025_v27 }
 0x4d5   :  { %v6036_v11 = vmul.f32 0.015625, %v6027_v57 }
 0x4d7   :  { %v6044_v37 = vpack.c.bf16 %v6036_v11, %v6036_v11 }
 0x4d9   :  { %v6071_v59 = vunpack.c.l.b16 %v6044_v37 }
 0x4db   :  { %v6085_v33 = vsel %vm6084_vm10, %v6071_v59, %v6083_v44 }
 0x4dc   :  { %v6086_v15 = vpack.c.b16 %v6085_v33, %v6085_v33 }
 0x4de   :  { %7531 = vmatmul.mubr.msk.bf16.vlgmr.msra.gmra.mrb[128].mxu0 %vm261_vm0, %v6086_v15 }
 0x5b1   :  { %v6136_v53 = vpop.f32.mrb[128].mxu0 }
 0x5b2   :  { %v6137_v31 = vadd.f32 %v6526_v24, %v6136_v53  ;;  %v7532_v52 = vpop.f32.mrb[129].mxu0 }
 0x5b3   :  { %v6139_v4 = vpop.f32.mrb[130].mxu0 }
 0x5b4   :  { %6142 = vst [vmem:[%s9579_s5] sm:$0xff] %v6137_v31  ;;  %v7533_v21 = vpop.f32.mrb[131].mxu0 }

</bundles_post_ra>
